<compile_context>
chip_gen: v6e
topology: v6e:2x2x1
jax: 0.10.0
libtpu: 0.0.40
codegen_flags: <defaults>
</compile_context>

<pallas_src>
import functools

import jax
import jax.numpy as jnp
from jax import lax
from jax.experimental import pallas as pl
from jax.experimental.pallas import tpu as pltpu


def _round_up(x, m):
    return (x + m - 1) // m * m


def lstm_kernel(xproj_ref, wh0_ref, wx1_ref, wh1_ref, b1_ref, wfc_ref, bfc_ref,
                out_ref, h0_ref, c0_ref, h1_ref, c1_ref, *, t_total):
    """One time-chunk of the 2-layer LSTM recurrence (+ FC + sigmoid on last chunk).

    xproj_ref : (Tc, Bp, 4Hp)  precomputed x_t @ Wx0 + b0 for this chunk (i,f,g,o)
    wh0_ref   : (Hp, 4Hp)      layer-0 recurrent weights (gate-blocked, zero-padded)
    wx1_ref   : (Hp, 4Hp)      layer-1 input weights
    wh1_ref   : (Hp, 4Hp)      layer-1 recurrent weights
    b1_ref    : (1, 4Hp)       layer-1 bias (f32)
    wfc_ref   : (1, Hp)        final FC row (f32, zero-padded)
    bfc_ref   : (1, 1)
    out_ref   : (Bp, 128)      sigmoid(logit) broadcast across lanes (lane-dense store)
    h0/c0/h1/c1_ref : (Bp, Hp) f32 VMEM scratch carrying state across chunks
    """
    t_chunk, Bp, _ = xproj_ref.shape
    Hp = wh0_ref.shape[0]
    w_dtype = wh0_ref.dtype
    chunk = pl.program_id(0)

    @pl.when(chunk == 0)
    def _init():
        z = jnp.zeros((Bp, Hp), jnp.float32)
        h0_ref[...] = z
        c0_ref[...] = z
        h1_ref[...] = z
        c1_ref[...] = z

    # Hoist the bias broadcast out of the time loop (JAX does not CSE broadcast_in_dim).
    b1b = jnp.broadcast_to(b1_ref[...], (Bp, 4 * Hp))

    base = chunk * t_chunk
    # Only the last chunk can be partial; emit masking selects only if padding exists.
    needs_mask = (t_total % t_chunk) != 0

    def gate_act(gates, c_prev):
        # 128-lane-aligned static slices (Hp is a multiple of 128).
        i_g = jax.nn.sigmoid(gates[:, 0 * Hp:1 * Hp])
        f_g = jax.nn.sigmoid(gates[:, 1 * Hp:2 * Hp])
        g_g = jnp.tanh(gates[:, 2 * Hp:3 * Hp])
        o_g = jax.nn.sigmoid(gates[:, 3 * Hp:4 * Hp])
        c_new = f_g * c_prev + i_g * g_g
        h_new = o_g * jnp.tanh(c_new)
        return h_new, c_new

    def step(t, carry):
        h0, c0, h1, c1 = carry
        # Layer 0: input projection precomputed; only the recurrent matmul remains.
        g0 = (xproj_ref[t].astype(jnp.float32)
              + jnp.dot(h0.astype(w_dtype), wh0_ref[...],
                        preferred_element_type=jnp.float32))
        h0n, c0n = gate_act(g0, c0)
        # Layer 1: two accumulating K=Hp dots (no concat copy on the critical path).
        g1 = (jnp.dot(h0n.astype(w_dtype), wx1_ref[...],
                      preferred_element_type=jnp.float32)
              + jnp.dot(h1.astype(w_dtype), wh1_ref[...],
                        preferred_element_type=jnp.float32)
              + b1b)
        h1n, c1n = gate_act(g1, c1)
        if needs_mask:
            valid = (base + t) < t_total
            sel = lambda new, old: jnp.where(valid, new, old)
            h0n, c0n, h1n, c1n = sel(h0n, h0), sel(c0n, c0), sel(h1n, h1), sel(c1n, c1)
        return h0n, c0n, h1n, c1n

    carry0 = (h0_ref[...], c0_ref[...], h1_ref[...], c1_ref[...])
    unroll = t_chunk if t_chunk <= 8 else 4
    h0, c0, h1, c1 = lax.fori_loop(0, t_chunk, step, carry0, unroll=unroll)

    h0_ref[...] = h0
    c0_ref[...] = c0
    h1_ref[...] = h1
    c1_ref[...] = c1

    @pl.when(chunk == pl.num_programs(0) - 1)
    def _finalize():
        # hidden[-1] -> dropout(eval: identity) -> fc -> sigmoid.
        # FC(H,1) as a VPU/XLU reduction (avoids a 1-wide MXU push); lane-dense store.
        logit = jnp.sum(h1 * wfc_ref[...], axis=-1, keepdims=True) + bfc_ref[...]
        out_ref[...] = jnp.broadcast_to(jax.nn.sigmoid(logit), out_ref.shape)


def bidirectional_lstm_forward(x_idx, params, *, stream_dtype=jnp.bfloat16,
                               time_chunk=None):
    """x_idx: [B, T] int32 token ids. Returns [B, 1] float32 sigmoid probabilities."""
    emb = params["embedding"]                     # [V, E]
    B, T = x_idx.shape
    H = params["wh0"].shape[1]                    # PyTorch layout: (4H, H)

    Bp = max(_round_up(B, 8), 8)                  # sublane-aligned batch
    Hp = max(_round_up(H, 128), 128)              # lane-aligned hidden (per gate block)
    OUT_LANES = 128
    HIGH = jax.lax.Precision.HIGHEST
    stream_dtype = jnp.dtype(stream_dtype)

    # --- time-chunk sizing: keep 2 (double-buffer) * Tc * Bp * 4Hp * bytes small ---
    bytes_per_step = Bp * 4 * Hp * stream_dtype.itemsize
    if time_chunk is not None:
        Tc = max(1, min(int(time_chunk), T))
    else:
        budget = 8 << 20                          # ~8 MiB for the x_proj stream
        Tc = max(1, min(T, budget // (2 * bytes_per_step)))
    n_chunks = pl.cdiv(T, Tc)
    T_pad = n_chunks * Tc

    def pad_gate_cols(w_t):
        # (K, 4H) -> (K, 4Hp): zero-pad each gate block (PyTorch gate order i,f,g,o).
        K = w_t.shape[0]
        w4 = jnp.pad(w_t.reshape(K, 4, H), ((0, 0), (0, 0), (0, Hp - H)))
        return w4.reshape(K, 4 * Hp)

    def pad_rows(w, rows):
        return jnp.pad(w, ((0, rows - w.shape[0]), (0, 0)))

    # ---- weight layout plumbing (zero padding keeps padded h/c lanes exactly 0) ----
    wx0_p = pad_gate_cols(params["wx0"].T)                        # (E, 4Hp) f32
    b0_p = pad_gate_cols(params["b0"][None, :])                   # (1, 4Hp) f32
    wh0_p = pad_rows(pad_gate_cols(params["wh0"].T), Hp).astype(stream_dtype)
    wx1_p = pad_rows(pad_gate_cols(params["wx1"].T), Hp).astype(stream_dtype)
    wh1_p = pad_rows(pad_gate_cols(params["wh1"].T), Hp).astype(stream_dtype)
    b1_p = pad_gate_cols(params["b1"][None, :])                   # (1, 4Hp) f32
    wfc_p = jnp.pad(params["wfc"], ((0, 0), (0, Hp - H)))         # (1, Hp)  f32
    bfc_p = params["bfc"].reshape(1, 1)                           # (1, 1)   f32

    # ---- glue: time-major embedding gather + hoisted layer-0 input projection ----
    x_tm = jnp.take(emb, x_idx.T, axis=0)                         # (T, B, E) time-major
    x_tm = jnp.pad(x_tm, ((0, 0), (0, Bp - B), (0, 0)))           # (T, Bp, E)
    x_proj = jnp.einsum("tbe,eg->tbg", x_tm, wx0_p,
                        precision=HIGH) + b0_p                    # (T, Bp, 4Hp) f32
    x_proj = x_proj.astype(stream_dtype)
    x_proj = jnp.pad(x_proj, ((0, T_pad - T), (0, 0), (0, 0)))    # (T_pad, Bp, 4Hp)

    const_spec = lambda shape: pl.BlockSpec(shape, lambda t: (0,) * len(shape))

    out_padded = pl.pallas_call(
        functools.partial(lstm_kernel, t_total=T),
        out_shape=jax.ShapeDtypeStruct((Bp, OUT_LANES), jnp.float32),
        grid=(n_chunks,),
        in_specs=[
            pl.BlockSpec((Tc, Bp, 4 * Hp), lambda t: (t, 0, 0)),  # x_proj chunk stream
            const_spec((Hp, 4 * Hp)),     # wh0 (fetched once; constant block index)
            const_spec((Hp, 4 * Hp)),     # wx1
            const_spec((Hp, 4 * Hp)),     # wh1
            const_spec((1, 4 * Hp)),      # b1
            const_spec((1, Hp)),          # wfc
            const_spec((1, 1)),           # bfc
        ],
        out_specs=pl.BlockSpec((Bp, OUT_LANES), lambda t: (0, 0)),
        scratch_shapes=[pltpu.VMEM((Bp, Hp), jnp.float32)] * 4,   # h0, c0, h1, c1
        compiler_params=pltpu.CompilerParams(
            dimension_semantics=("arbitrary",)),
    )(x_proj, wh0_p, wx1_p, wh1_p, b1_p, wfc_p, bfc_p)

    return out_padded[:B, :1]


def make_params(key, vocab_size, embed_dim, hidden_dim):
    ks = jax.random.split(key, 12)
    H, E = hidden_dim, embed_dim
    s = 1.0 / jnp.sqrt(H)
    u = lambda k, shape: jax.random.uniform(k, shape, jnp.float32, -s, s)
    return {
        "embedding": jax.random.normal(ks[0], (vocab_size, E), jnp.float32),
        # layer 0: input E -> hidden H (PyTorch weight shapes [4H, in], gates i,f,g,o)
        "wx0": u(ks[1], (4 * H, E)),
        "wh0": u(ks[2], (4 * H, H)),
        "b0": u(ks[3], (4 * H,)) + u(ks[4], (4 * H,)),   # b_ih + b_hh combined
        # layer 1: input H -> hidden H
        "wx1": u(ks[5], (4 * H, H)),
        "wh1": u(ks[6], (4 * H, H)),
        "b1": u(ks[7], (4 * H,)) + u(ks[8], (4 * H,)),
        # fc: hidden H -> 1
        "wfc": u(ks[9], (1, H)),
        "bfc": u(ks[10], (1,)),
    }


def lstm_reference(x_idx, params):
    """Pure-JAX reference of the PyTorch forward (eval-mode dropout)."""
    emb = params["embedding"]
    H = params["wh0"].shape[1]
    HIGH = jax.lax.Precision.HIGHEST
    x = jnp.take(emb, x_idx, axis=0)                              # (B, T, E)
    B = x.shape[0]

    def cell(x_t, h, c, wx, wh, b):
        g = (jnp.dot(x_t, wx.T, precision=HIGH)
             + jnp.dot(h, wh.T, precision=HIGH) + b)
        i = jax.nn.sigmoid(g[:, 0 * H:1 * H])
        f = jax.nn.sigmoid(g[:, 1 * H:2 * H])
        gg = jnp.tanh(g[:, 2 * H:3 * H])
        o = jax.nn.sigmoid(g[:, 3 * H:4 * H])
        c = f * c + i * gg
        h = o * jnp.tanh(c)
        return h, c

    z = jnp.zeros((B, H), jnp.float32)

    def step(carry, x_t):
        h0, c0, h1, c1 = carry
        h0, c0 = cell(x_t, h0, c0, params["wx0"], params["wh0"], params["b0"])
        h1, c1 = cell(h0, h1, c1, params["wx1"], params["wh1"], params["b1"])
        return (h0, c0, h1, c1), None

    (_, _, h1, _), _ = lax.scan(step, (z, z, z, z), jnp.transpose(x, (1, 0, 2)))
    logit = jnp.dot(h1, params["wfc"].T, precision=HIGH) + params["bfc"]
    return jax.nn.sigmoid(logit)


if __name__ == "__main__":
    key = jax.random.PRNGKey(0)
    kp, kx = jax.random.split(key)

    vocab_size, embed_dim, hidden_dim = 50, 32, 32
    B, T = 2, 10

    params = make_params(kp, vocab_size, embed_dim, hidden_dim)
    x_idx = jax.random.randint(kx, (B, T), 0, vocab_size, dtype=jnp.int32)
    ref = lstm_reference(x_idx, params)

    # f32 stream path (tight tolerance); time_chunk=4 -> grid of 3 chunks with a
    # partial last chunk, exercising the chunked pipeline + remainder masking.
    fwd_f32 = jax.jit(functools.partial(
        bidirectional_lstm_forward, stream_dtype=jnp.float32, time_chunk=4))
    out_f32 = fwd_f32(x_idx, params)
    jax.block_until_ready(out_f32)
    assert out_f32.shape == (B, 1) and out_f32.dtype == jnp.float32
    assert jnp.allclose(out_f32, ref, atol=2e-3, rtol=2e-3), (out_f32, ref)

    # bf16 stream path (production perf path: half the HBM/VMEM traffic, bf16 MXU,
    # f32 accumulation) — looser tolerance for the bf16 operands.
    fwd_bf16 = jax.jit(functools.partial(
        bidirectional_lstm_forward, stream_dtype=jnp.bfloat16, time_chunk=4))
    out_bf16 = fwd_bf16(x_idx, params)
    jax.block_until_ready(out_bf16)
    assert out_bf16.shape == (B, 1)
    assert jnp.allclose(out_bf16, ref, atol=2e-2, rtol=2e-2), (out_bf16, ref)

    print("KERNEL_OK")
</pallas_src>

<mosaic_0001>
module attributes {stable_mosaic.version = 11 : i64} {
  func.func @lstm_kernel(%arg0: i32, %arg1: memref<4x8x512xf32, #tpu.memory_space<vmem>>, %arg2: memref<128x512xf32, #tpu.memory_space<vmem>>, %arg3: memref<128x512xf32, #tpu.memory_space<vmem>>, %arg4: memref<128x512xf32, #tpu.memory_space<vmem>>, %arg5: memref<1x512xf32, #tpu.memory_space<vmem>>, %arg6: memref<1x128xf32, #tpu.memory_space<vmem>>, %arg7: memref<1x1xf32, #tpu.memory_space<vmem>>, %arg8: memref<8x128xf32, #tpu.memory_space<vmem>>, %arg9: memref<8x128xf32, #tpu.memory_space<vmem>>, %arg10: memref<8x128xf32, #tpu.memory_space<vmem>>, %arg11: memref<8x128xf32, #tpu.memory_space<vmem>>, %arg12: memref<8x128xf32, #tpu.memory_space<vmem>>) attributes {dimension_semantics = [#tpu.dimension_semantics<arbitrary>], iteration_bounds = array<i64: 3>, scalar_prefetch = 0 : i64, scratch_operands = 4 : i64, tpu.core_type = #tpu.core_type<tc>, window_params = [{transform_indices = @transform_0, window_bounds = array<i64: 4, 8, 512>}, {pipeline_mode = #tpu.pipeline_mode<synchronous>, transform_indices = @transform_1, window_bounds = array<i64: 128, 512>}, {pipeline_mode = #tpu.pipeline_mode<synchronous>, transform_indices = @transform_2, window_bounds = array<i64: 128, 512>}, {pipeline_mode = #tpu.pipeline_mode<synchronous>, transform_indices = @transform_3, window_bounds = array<i64: 128, 512>}, {pipeline_mode = #tpu.pipeline_mode<synchronous>, transform_indices = @transform_4, window_bounds = array<i64: 1, 512>}, {pipeline_mode = #tpu.pipeline_mode<synchronous>, transform_indices = @transform_5, window_bounds = array<i64: 1, 128>}, {pipeline_mode = #tpu.pipeline_mode<synchronous>, transform_indices = @transform_6, window_bounds = array<i64: 1, 1>}, {pipeline_mode = #tpu.pipeline_mode<synchronous>, transform_indices = @transform_7, window_bounds = array<i64: 8, 128>}]} {
    %c0_i32 = arith.constant 0 : i32
    %0 = arith.cmpi eq, %arg0, %c0_i32 : i32
    %1 = arith.extui %0 : i1 to i32
    %c0_i32_0 = arith.constant 0 : i32
    %2 = arith.cmpi ne, %1, %c0_i32_0 : i32
    scf.if %2 {
      %cst_92 = arith.constant 0.000000e+00 : f32
      %290 = vector.broadcast %cst_92 : f32 to vector<8x128xf32>
      %c0_93 = arith.constant 0 : index
      %c0_94 = arith.constant 0 : index
      %291 = vector.load %arg9[%c0_93, %c0_94] : memref<8x128xf32, #tpu.memory_space<vmem>>, vector<8x128xf32>
      tpu.vector_store %arg9[%c0_93, %c0_94], %290 {strides = array<i32>} : memref<8x128xf32, #tpu.memory_space<vmem>>, vector<8x128xf32>,
      %c0_95 = arith.constant 0 : index
      %c0_96 = arith.constant 0 : index
      %292 = vector.load %arg10[%c0_95, %c0_96] : memref<8x128xf32, #tpu.memory_space<vmem>>, vector<8x128xf32>
      tpu.vector_store %arg10[%c0_95, %c0_96], %290 {strides = array<i32>} : memref<8x128xf32, #tpu.memory_space<vmem>>, vector<8x128xf32>,
      %c0_97 = arith.constant 0 : index
      %c0_98 = arith.constant 0 : index
      %293 = vector.load %arg11[%c0_97, %c0_98] : memref<8x128xf32, #tpu.memory_space<vmem>>, vector<8x128xf32>
      tpu.vector_store %arg11[%c0_97, %c0_98], %290 {strides = array<i32>} : memref<8x128xf32, #tpu.memory_space<vmem>>, vector<8x128xf32>,
      %c0_99 = arith.constant 0 : index
      %c0_100 = arith.constant 0 : index
      %294 = vector.load %arg12[%c0_99, %c0_100] : memref<8x128xf32, #tpu.memory_space<vmem>>, vector<8x128xf32>
      tpu.vector_store %arg12[%c0_99, %c0_100], %290 {strides = array<i32>} : memref<8x128xf32, #tpu.memory_space<vmem>>, vector<8x128xf32>,
    } else {
    }
    %c0 = arith.constant 0 : index
    %c0_1 = arith.constant 0 : index
    %3 = vector.load %arg5[%c0, %c0_1] : memref<1x512xf32, #tpu.memory_space<vmem>>, vector<1x512xf32>
    %4 = vector.shape_cast %3 : vector<1x512xf32> to vector<1x512xf32>
    %5 = vector.broadcast %4 : vector<1x512xf32> to vector<8x512xf32>
    %c4_i32 = arith.constant 4 : i32
    %6 = arith.muli %arg0, %c4_i32 : i32
    %c0_2 = arith.constant 0 : index
    %c0_3 = arith.constant 0 : index
    %7 = vector.load %arg9[%c0_2, %c0_3] : memref<8x128xf32, #tpu.memory_space<vmem>>, vector<8x128xf32>
    %c0_4 = arith.constant 0 : index
    %c0_5 = arith.constant 0 : index
    %8 = vector.load %arg10[%c0_4, %c0_5] : memref<8x128xf32, #tpu.memory_space<vmem>>, vector<8x128xf32>
    %c0_6 = arith.constant 0 : index
    %c0_7 = arith.constant 0 : index
    %9 = vector.load %arg11[%c0_6, %c0_7] : memref<8x128xf32, #tpu.memory_space<vmem>>, vector<8x128xf32>
    %c0_8 = arith.constant 0 : index
    %c0_9 = arith.constant 0 : index
    %10 = vector.load %arg12[%c0_8, %c0_9] : memref<8x128xf32, #tpu.memory_space<vmem>>, vector<8x128xf32>
    %c0_i32_10 = arith.constant 0 : i32
    %11 = arith.index_cast %c0_i32_10 : i32 to index
    %c0_11 = arith.constant 0 : index
    %c0_12 = arith.constant 0 : index
    %12 = vector.load %arg1[%11, %c0_11, %c0_12] : memref<4x8x512xf32, #tpu.memory_space<vmem>>, vector<1x8x512xf32>
    %13 = vector.shape_cast %12 : vector<1x8x512xf32> to vector<8x512xf32>
    %c0_13 = arith.constant 0 : index
    %c0_14 = arith.constant 0 : index
    %14 = vector.load %arg2[%c0_13, %c0_14] : memref<128x512xf32, #tpu.memory_space<vmem>>, vector<128x512xf32>
    %cst = arith.constant dense<0.000000e+00> : vector<8x512xf32>
    %15 = tpu.matmul %7, %14, %cst {dimension_numbers = #tpu.dot_dimension_numbers<[1], [0], [0], [1], [0, 0, 1, 1], [], []>} : vector<8x128xf32>, vector<128x512xf32>, vector<8x512xf32> -> vector<8x512xf32>
    %16 = arith.addf %13, %15 : vector<8x512xf32>
    %17 = vector.extract_strided_slice %16 {offsets = [0, 0], sizes = [8, 128], strides = [1, 1]} : vector<8x512xf32> to vector<8x128xf32>
    %18 = arith.negf %17 : vector<8x128xf32>
    %19 = math.exp %18 : vector<8x128xf32>
    %cst_15 = arith.constant 1.000000e+00 : f32
    %20 = vector.broadcast %cst_15 : f32 to vector<8x128xf32>
    %21 = arith.addf %20, %19 : vector<8x128xf32>
    %22 = arith.divf %20, %21 : vector<8x128xf32>
    %23 = vector.extract_strided_slice %16 {offsets = [0, 128], sizes = [8, 128], strides = [1, 1]} : vector<8x512xf32> to vector<8x128xf32>
    %24 = arith.negf %23 : vector<8x128xf32>
    %25 = math.exp %24 : vector<8x128xf32>
    %cst_16 = arith.constant 1.000000e+00 : f32
    %26 = vector.broadcast %cst_16 : f32 to vector<8x128xf32>
    %27 = arith.addf %26, %25 : vector<8x128xf32>
    %28 = arith.divf %26, %27 : vector<8x128xf32>
    %29 = vector.extract_strided_slice %16 {offsets = [0, 256], sizes = [8, 128], strides = [1, 1]} : vector<8x512xf32> to vector<8x128xf32>
    %30 = math.tanh %29 : vector<8x128xf32>
    %31 = vector.extract_strided_slice %16 {offsets = [0, 384], sizes = [8, 128], strides = [1, 1]} : vector<8x512xf32> to vector<8x128xf32>
    %32 = arith.negf %31 : vector<8x128xf32>
    %33 = math.exp %32 : vector<8x128xf32>
    %cst_17 = arith.constant 1.000000e+00 : f32
    %34 = vector.broadcast %cst_17 : f32 to vector<8x128xf32>
    %35 = arith.addf %34, %33 : vector<8x128xf32>
    %36 = arith.divf %34, %35 : vector<8x128xf32>
    %37 = arith.mulf %28, %8 : vector<8x128xf32>
    %38 = arith.mulf %22, %30 : vector<8x128xf32>
    %39 = arith.addf %37, %38 : vector<8x128xf32>
    %40 = math.tanh %39 : vector<8x128xf32>
    %41 = arith.mulf %36, %40 : vector<8x128xf32>
    %c0_18 = arith.constant 0 : index
    %c0_19 = arith.constant 0 : index
    %42 = vector.load %arg3[%c0_18, %c0_19] : memref<128x512xf32, #tpu.memory_space<vmem>>, vector<128x512xf32>
    %cst_20 = arith.constant dense<0.000000e+00> : vector<8x512xf32>
    %43 = tpu.matmul %41, %42, %cst_20 {dimension_numbers = #tpu.dot_dimension_numbers<[1], [0], [0], [1], [0, 0, 1, 1], [], []>} : vector<8x128xf32>, vector<128x512xf32>, vector<8x512xf32> -> vector<8x512xf32>
    %c0_21 = arith.constant 0 : index
    %c0_22 = arith.constant 0 : index
    %44 = vector.load %arg4[%c0_21, %c0_22] : memref<128x512xf32, #tpu.memory_space<vmem>>, vector<128x512xf32>
    %cst_23 = arith.constant dense<0.000000e+00> : vector<8x512xf32>
    %45 = tpu.matmul %9, %44, %cst_23 {dimension_numbers = #tpu.dot_dimension_numbers<[1], [0], [0], [1], [0, 0, 1, 1], [], []>} : vector<8x128xf32>, vector<128x512xf32>, vector<8x512xf32> -> vector<8x512xf32>
    %46 = arith.addf %43, %45 : vector<8x512xf32>
    %47 = arith.addf %46, %5 : vector<8x512xf32>
    %48 = vector.extract_strided_slice %47 {offsets = [0, 0], sizes = [8, 128], strides = [1, 1]} : vector<8x512xf32> to vector<8x128xf32>
    %49 = arith.negf %48 : vector<8x128xf32>
    %50 = math.exp %49 : vector<8x128xf32>
    %cst_24 = arith.constant 1.000000e+00 : f32
    %51 = vector.broadcast %cst_24 : f32 to vector<8x128xf32>
    %52 = arith.addf %51, %50 : vector<8x128xf32>
    %53 = arith.divf %51, %52 : vector<8x128xf32>
    %54 = vector.extract_strided_slice %47 {offsets = [0, 128], sizes = [8, 128], strides = [1, 1]} : vector<8x512xf32> to vector<8x128xf32>
    %55 = arith.negf %54 : vector<8x128xf32>
    %56 = math.exp %55 : vector<8x128xf32>
    %cst_25 = arith.constant 1.000000e+00 : f32
    %57 = vector.broadcast %cst_25 : f32 to vector<8x128xf32>
    %58 = arith.addf %57, %56 : vector<8x128xf32>
    %59 = arith.divf %57, %58 : vector<8x128xf32>
    %60 = vector.extract_strided_slice %47 {offsets = [0, 256], sizes = [8, 128], strides = [1, 1]} : vector<8x512xf32> to vector<8x128xf32>
    %61 = math.tanh %60 : vector<8x128xf32>
    %62 = vector.extract_strided_slice %47 {offsets = [0, 384], sizes = [8, 128], strides = [1, 1]} : vector<8x512xf32> to vector<8x128xf32>
    %63 = arith.negf %62 : vector<8x128xf32>
    %64 = math.exp %63 : vector<8x128xf32>
    %cst_26 = arith.constant 1.000000e+00 : f32
    %65 = vector.broadcast %cst_26 : f32 to vector<8x128xf32>
    %66 = arith.addf %65, %64 : vector<8x128xf32>
    %67 = arith.divf %65, %66 : vector<8x128xf32>
    %68 = arith.mulf %59, %10 : vector<8x128xf32>
    %69 = arith.mulf %53, %61 : vector<8x128xf32>
    %70 = arith.addf %68, %69 : vector<8x128xf32>
    %71 = math.tanh %70 : vector<8x128xf32>
    %72 = arith.mulf %67, %71 : vector<8x128xf32>
    %73 = arith.addi %6, %c0_i32_10 : i32
    %c10_i32 = arith.constant 10 : i32
    %74 = arith.cmpi slt, %73, %c10_i32 : i32
    %75 = arith.select %74, %41, %7 : vector<8x128xf32>
    %76 = arith.select %74, %39, %8 : vector<8x128xf32>
    %77 = arith.select %74, %72, %9 : vector<8x128xf32>
    %78 = arith.select %74, %70, %10 : vector<8x128xf32>
    %c1_i32 = arith.constant 1 : i32
    %79 = arith.index_cast %c1_i32 : i32 to index
    %c0_27 = arith.constant 0 : index
    %c0_28 = arith.constant 0 : index
    %80 = vector.load %arg1[%79, %c0_27, %c0_28] : memref<4x8x512xf32, #tpu.memory_space<vmem>>, vector<1x8x512xf32>
    %81 = vector.shape_cast %80 : vector<1x8x512xf32> to vector<8x512xf32>
    %c0_29 = arith.constant 0 : index
    %c0_30 = arith.constant 0 : index
    %82 = vector.load %arg2[%c0_29, %c0_30] : memref<128x512xf32, #tpu.memory_space<vmem>>, vector<128x512xf32>
    %cst_31 = arith.constant dense<0.000000e+00> : vector<8x512xf32>
    %83 = tpu.matmul %75, %82, %cst_31 {dimension_numbers = #tpu.dot_dimension_numbers<[1], [0], [0], [1], [0, 0, 1, 1], [], []>} : vector<8x128xf32>, vector<128x512xf32>, vector<8x512xf32> -> vector<8x512xf32>
    %84 = arith.addf %81, %83 : vector<8x512xf32>
    %85 = vector.extract_strided_slice %84 {offsets = [0, 0], sizes = [8, 128], strides = [1, 1]} : vector<8x512xf32> to vector<8x128xf32>
    %86 = arith.negf %85 : vector<8x128xf32>
    %87 = math.exp %86 : vector<8x128xf32>
    %cst_32 = arith.constant 1.000000e+00 : f32
    %88 = vector.broadcast %cst_32 : f32 to vector<8x128xf32>
    %89 = arith.addf %88, %87 : vector<8x128xf32>
    %90 = arith.divf %88, %89 : vector<8x128xf32>
    %91 = vector.extract_strided_slice %84 {offsets = [0, 128], sizes = [8, 128], strides = [1, 1]} : vector<8x512xf32> to vector<8x128xf32>
    %92 = arith.negf %91 : vector<8x128xf32>
    %93 = math.exp %92 : vector<8x128xf32>
    %cst_33 = arith.constant 1.000000e+00 : f32
    %94 = vector.broadcast %cst_33 : f32 to vector<8x128xf32>
    %95 = arith.addf %94, %93 : vector<8x128xf32>
    %96 = arith.divf %94, %95 : vector<8x128xf32>
    %97 = vector.extract_strided_slice %84 {offsets = [0, 256], sizes = [8, 128], strides = [1, 1]} : vector<8x512xf32> to vector<8x128xf32>
    %98 = math.tanh %97 : vector<8x128xf32>
    %99 = vector.extract_strided_slice %84 {offsets = [0, 384], sizes = [8, 128], strides = [1, 1]} : vector<8x512xf32> to vector<8x128xf32>
    %100 = arith.negf %99 : vector<8x128xf32>
    %101 = math.exp %100 : vector<8x128xf32>
    %cst_34 = arith.constant 1.000000e+00 : f32
    %102 = vector.broadcast %cst_34 : f32 to vector<8x128xf32>
    %103 = arith.addf %102, %101 : vector<8x128xf32>
    %104 = arith.divf %102, %103 : vector<8x128xf32>
    %105 = arith.mulf %96, %76 : vector<8x128xf32>
    %106 = arith.mulf %90, %98 : vector<8x128xf32>
    %107 = arith.addf %105, %106 : vector<8x128xf32>
    %108 = math.tanh %107 : vector<8x128xf32>
    %109 = arith.mulf %104, %108 : vector<8x128xf32>
    %c0_35 = arith.constant 0 : index
    %c0_36 = arith.constant 0 : index
    %110 = vector.load %arg3[%c0_35, %c0_36] : memref<128x512xf32, #tpu.memory_space<vmem>>, vector<128x512xf32>
    %cst_37 = arith.constant dense<0.000000e+00> : vector<8x512xf32>
    %111 = tpu.matmul %109, %110, %cst_37 {dimension_numbers = #tpu.dot_dimension_numbers<[1], [0], [0], [1], [0, 0, 1, 1], [], []>} : vector<8x128xf32>, vector<128x512xf32>, vector<8x512xf32> -> vector<8x512xf32>
    %c0_38 = arith.constant 0 : index
    %c0_39 = arith.constant 0 : index
    %112 = vector.load %arg4[%c0_38, %c0_39] : memref<128x512xf32, #tpu.memory_space<vmem>>, vector<128x512xf32>
    %cst_40 = arith.constant dense<0.000000e+00> : vector<8x512xf32>
    %113 = tpu.matmul %77, %112, %cst_40 {dimension_numbers = #tpu.dot_dimension_numbers<[1], [0], [0], [1], [0, 0, 1, 1], [], []>} : vector<8x128xf32>, vector<128x512xf32>, vector<8x512xf32> -> vector<8x512xf32>
    %114 = arith.addf %111, %113 : vector<8x512xf32>
    %115 = arith.addf %114, %5 : vector<8x512xf32>
    %116 = vector.extract_strided_slice %115 {offsets = [0, 0], sizes = [8, 128], strides = [1, 1]} : vector<8x512xf32> to vector<8x128xf32>
    %117 = arith.negf %116 : vector<8x128xf32>
    %118 = math.exp %117 : vector<8x128xf32>
    %cst_41 = arith.constant 1.000000e+00 : f32
    %119 = vector.broadcast %cst_41 : f32 to vector<8x128xf32>
    %120 = arith.addf %119, %118 : vector<8x128xf32>
    %121 = arith.divf %119, %120 : vector<8x128xf32>
    %122 = vector.extract_strided_slice %115 {offsets = [0, 128], sizes = [8, 128], strides = [1, 1]} : vector<8x512xf32> to vector<8x128xf32>
    %123 = arith.negf %122 : vector<8x128xf32>
    %124 = math.exp %123 : vector<8x128xf32>
    %cst_42 = arith.constant 1.000000e+00 : f32
    %125 = vector.broadcast %cst_42 : f32 to vector<8x128xf32>
    %126 = arith.addf %125, %124 : vector<8x128xf32>
    %127 = arith.divf %125, %126 : vector<8x128xf32>
    %128 = vector.extract_strided_slice %115 {offsets = [0, 256], sizes = [8, 128], strides = [1, 1]} : vector<8x512xf32> to vector<8x128xf32>
    %129 = math.tanh %128 : vector<8x128xf32>
    %130 = vector.extract_strided_slice %115 {offsets = [0, 384], sizes = [8, 128], strides = [1, 1]} : vector<8x512xf32> to vector<8x128xf32>
    %131 = arith.negf %130 : vector<8x128xf32>
    %132 = math.exp %131 : vector<8x128xf32>
    %cst_43 = arith.constant 1.000000e+00 : f32
    %133 = vector.broadcast %cst_43 : f32 to vector<8x128xf32>
    %134 = arith.addf %133, %132 : vector<8x128xf32>
    %135 = arith.divf %133, %134 : vector<8x128xf32>
    %136 = arith.mulf %127, %78 : vector<8x128xf32>
    %137 = arith.mulf %121, %129 : vector<8x128xf32>
    %138 = arith.addf %136, %137 : vector<8x128xf32>
    %139 = math.tanh %138 : vector<8x128xf32>
    %140 = arith.mulf %135, %139 : vector<8x128xf32>
    %141 = arith.addi %6, %c1_i32 : i32
    %c10_i32_44 = arith.constant 10 : i32
    %142 = arith.cmpi slt, %141, %c10_i32_44 : i32
    %143 = arith.select %142, %109, %75 : vector<8x128xf32>
    %144 = arith.select %142, %107, %76 : vector<8x128xf32>
    %145 = arith.select %142, %140, %77 : vector<8x128xf32>
    %146 = arith.select %142, %138, %78 : vector<8x128xf32>
    %c2_i32 = arith.constant 2 : i32
    %147 = arith.index_cast %c2_i32 : i32 to index
    %c0_45 = arith.constant 0 : index
    %c0_46 = arith.constant 0 : index
    %148 = vector.load %arg1[%147, %c0_45, %c0_46] : memref<4x8x512xf32, #tpu.memory_space<vmem>>, vector<1x8x512xf32>
    %149 = vector.shape_cast %148 : vector<1x8x512xf32> to vector<8x512xf32>
    %c0_47 = arith.constant 0 : index
    %c0_48 = arith.constant 0 : index
    %150 = vector.load %arg2[%c0_47, %c0_48] : memref<128x512xf32, #tpu.memory_space<vmem>>, vector<128x512xf32>
    %cst_49 = arith.constant dense<0.000000e+00> : vector<8x512xf32>
    %151 = tpu.matmul %143, %150, %cst_49 {dimension_numbers = #tpu.dot_dimension_numbers<[1], [0], [0], [1], [0, 0, 1, 1], [], []>} : vector<8x128xf32>, vector<128x512xf32>, vector<8x512xf32> -> vector<8x512xf32>
    %152 = arith.addf %149, %151 : vector<8x512xf32>
    %153 = vector.extract_strided_slice %152 {offsets = [0, 0], sizes = [8, 128], strides = [1, 1]} : vector<8x512xf32> to vector<8x128xf32>
    %154 = arith.negf %153 : vector<8x128xf32>
    %155 = math.exp %154 : vector<8x128xf32>
    %cst_50 = arith.constant 1.000000e+00 : f32
    %156 = vector.broadcast %cst_50 : f32 to vector<8x128xf32>
    %157 = arith.addf %156, %155 : vector<8x128xf32>
    %158 = arith.divf %156, %157 : vector<8x128xf32>
    %159 = vector.extract_strided_slice %152 {offsets = [0, 128], sizes = [8, 128], strides = [1, 1]} : vector<8x512xf32> to vector<8x128xf32>
    %160 = arith.negf %159 : vector<8x128xf32>
    %161 = math.exp %160 : vector<8x128xf32>
    %cst_51 = arith.constant 1.000000e+00 : f32
    %162 = vector.broadcast %cst_51 : f32 to vector<8x128xf32>
    %163 = arith.addf %162, %161 : vector<8x128xf32>
    %164 = arith.divf %162, %163 : vector<8x128xf32>
    %165 = vector.extract_strided_slice %152 {offsets = [0, 256], sizes = [8, 128], strides = [1, 1]} : vector<8x512xf32> to vector<8x128xf32>
    %166 = math.tanh %165 : vector<8x128xf32>
    %167 = vector.extract_strided_slice %152 {offsets = [0, 384], sizes = [8, 128], strides = [1, 1]} : vector<8x512xf32> to vector<8x128xf32>
    %168 = arith.negf %167 : vector<8x128xf32>
    %169 = math.exp %168 : vector<8x128xf32>
    %cst_52 = arith.constant 1.000000e+00 : f32
    %170 = vector.broadcast %cst_52 : f32 to vector<8x128xf32>
    %171 = arith.addf %170, %169 : vector<8x128xf32>
    %172 = arith.divf %170, %171 : vector<8x128xf32>
    %173 = arith.mulf %164, %144 : vector<8x128xf32>
    %174 = arith.mulf %158, %166 : vector<8x128xf32>
    %175 = arith.addf %173, %174 : vector<8x128xf32>
    %176 = math.tanh %175 : vector<8x128xf32>
    %177 = arith.mulf %172, %176 : vector<8x128xf32>
    %c0_53 = arith.constant 0 : index
    %c0_54 = arith.constant 0 : index
    %178 = vector.load %arg3[%c0_53, %c0_54] : memref<128x512xf32, #tpu.memory_space<vmem>>, vector<128x512xf32>
    %cst_55 = arith.constant dense<0.000000e+00> : vector<8x512xf32>
    %179 = tpu.matmul %177, %178, %cst_55 {dimension_numbers = #tpu.dot_dimension_numbers<[1], [0], [0], [1], [0, 0, 1, 1], [], []>} : vector<8x128xf32>, vector<128x512xf32>, vector<8x512xf32> -> vector<8x512xf32>
    %c0_56 = arith.constant 0 : index
    %c0_57 = arith.constant 0 : index
    %180 = vector.load %arg4[%c0_56, %c0_57] : memref<128x512xf32, #tpu.memory_space<vmem>>, vector<128x512xf32>
    %cst_58 = arith.constant dense<0.000000e+00> : vector<8x512xf32>
    %181 = tpu.matmul %145, %180, %cst_58 {dimension_numbers = #tpu.dot_dimension_numbers<[1], [0], [0], [1], [0, 0, 1, 1], [], []>} : vector<8x128xf32>, vector<128x512xf32>, vector<8x512xf32> -> vector<8x512xf32>
    %182 = arith.addf %179, %181 : vector<8x512xf32>
    %183 = arith.addf %182, %5 : vector<8x512xf32>
    %184 = vector.extract_strided_slice %183 {offsets = [0, 0], sizes = [8, 128], strides = [1, 1]} : vector<8x512xf32> to vector<8x128xf32>
    %185 = arith.negf %184 : vector<8x128xf32>
    %186 = math.exp %185 : vector<8x128xf32>
    %cst_59 = arith.constant 1.000000e+00 : f32
    %187 = vector.broadcast %cst_59 : f32 to vector<8x128xf32>
    %188 = arith.addf %187, %186 : vector<8x128xf32>
    %189 = arith.divf %187, %188 : vector<8x128xf32>
    %190 = vector.extract_strided_slice %183 {offsets = [0, 128], sizes = [8, 128], strides = [1, 1]} : vector<8x512xf32> to vector<8x128xf32>
    %191 = arith.negf %190 : vector<8x128xf32>
    %192 = math.exp %191 : vector<8x128xf32>
    %cst_60 = arith.constant 1.000000e+00 : f32
    %193 = vector.broadcast %cst_60 : f32 to vector<8x128xf32>
    %194 = arith.addf %193, %192 : vector<8x128xf32>
    %195 = arith.divf %193, %194 : vector<8x128xf32>
    %196 = vector.extract_strided_slice %183 {offsets = [0, 256], sizes = [8, 128], strides = [1, 1]} : vector<8x512xf32> to vector<8x128xf32>
    %197 = math.tanh %196 : vector<8x128xf32>
    %198 = vector.extract_strided_slice %183 {offsets = [0, 384], sizes = [8, 128], strides = [1, 1]} : vector<8x512xf32> to vector<8x128xf32>
    %199 = arith.negf %198 : vector<8x128xf32>
    %200 = math.exp %199 : vector<8x128xf32>
    %cst_61 = arith.constant 1.000000e+00 : f32
    %201 = vector.broadcast %cst_61 : f32 to vector<8x128xf32>
    %202 = arith.addf %201, %200 : vector<8x128xf32>
    %203 = arith.divf %201, %202 : vector<8x128xf32>
    %204 = arith.mulf %195, %146 : vector<8x128xf32>
    %205 = arith.mulf %189, %197 : vector<8x128xf32>
    %206 = arith.addf %204, %205 : vector<8x128xf32>
    %207 = math.tanh %206 : vector<8x128xf32>
    %208 = arith.mulf %203, %207 : vector<8x128xf32>
    %209 = arith.addi %6, %c2_i32 : i32
    %c10_i32_62 = arith.constant 10 : i32
    %210 = arith.cmpi slt, %209, %c10_i32_62 : i32
    %211 = arith.select %210, %177, %143 : vector<8x128xf32>
    %212 = arith.select %210, %175, %144 : vector<8x128xf32>
    %213 = arith.select %210, %208, %145 : vector<8x128xf32>
    %214 = arith.select %210, %206, %146 : vector<8x128xf32>
    %c3_i32 = arith.constant 3 : i32
    %215 = arith.index_cast %c3_i32 : i32 to index
    %c0_63 = arith.constant 0 : index
    %c0_64 = arith.constant 0 : index
    %216 = vector.load %arg1[%215, %c0_63, %c0_64] : memref<4x8x512xf32, #tpu.memory_space<vmem>>, vector<1x8x512xf32>
    %217 = vector.shape_cast %216 : vector<1x8x512xf32> to vector<8x512xf32>
    %c0_65 = arith.constant 0 : index
    %c0_66 = arith.constant 0 : index
    %218 = vector.load %arg2[%c0_65, %c0_66] : memref<128x512xf32, #tpu.memory_space<vmem>>, vector<128x512xf32>
    %cst_67 = arith.constant dense<0.000000e+00> : vector<8x512xf32>
    %219 = tpu.matmul %211, %218, %cst_67 {dimension_numbers = #tpu.dot_dimension_numbers<[1], [0], [0], [1], [0, 0, 1, 1], [], []>} : vector<8x128xf32>, vector<128x512xf32>, vector<8x512xf32> -> vector<8x512xf32>
    %220 = arith.addf %217, %219 : vector<8x512xf32>
    %221 = vector.extract_strided_slice %220 {offsets = [0, 0], sizes = [8, 128], strides = [1, 1]} : vector<8x512xf32> to vector<8x128xf32>
    %222 = arith.negf %221 : vector<8x128xf32>
    %223 = math.exp %222 : vector<8x128xf32>
    %cst_68 = arith.constant 1.000000e+00 : f32
    %224 = vector.broadcast %cst_68 : f32 to vector<8x128xf32>
    %225 = arith.addf %224, %223 : vector<8x128xf32>
    %226 = arith.divf %224, %225 : vector<8x128xf32>
    %227 = vector.extract_strided_slice %220 {offsets = [0, 128], sizes = [8, 128], strides = [1, 1]} : vector<8x512xf32> to vector<8x128xf32>
    %228 = arith.negf %227 : vector<8x128xf32>
    %229 = math.exp %228 : vector<8x128xf32>
    %cst_69 = arith.constant 1.000000e+00 : f32
    %230 = vector.broadcast %cst_69 : f32 to vector<8x128xf32>
    %231 = arith.addf %230, %229 : vector<8x128xf32>
    %232 = arith.divf %230, %231 : vector<8x128xf32>
    %233 = vector.extract_strided_slice %220 {offsets = [0, 256], sizes = [8, 128], strides = [1, 1]} : vector<8x512xf32> to vector<8x128xf32>
    %234 = math.tanh %233 : vector<8x128xf32>
    %235 = vector.extract_strided_slice %220 {offsets = [0, 384], sizes = [8, 128], strides = [1, 1]} : vector<8x512xf32> to vector<8x128xf32>
    %236 = arith.negf %235 : vector<8x128xf32>
    %237 = math.exp %236 : vector<8x128xf32>
    %cst_70 = arith.constant 1.000000e+00 : f32
    %238 = vector.broadcast %cst_70 : f32 to vector<8x128xf32>
    %239 = arith.addf %238, %237 : vector<8x128xf32>
    %240 = arith.divf %238, %239 : vector<8x128xf32>
    %241 = arith.mulf %232, %212 : vector<8x128xf32>
    %242 = arith.mulf %226, %234 : vector<8x128xf32>
    %243 = arith.addf %241, %242 : vector<8x128xf32>
    %244 = math.tanh %243 : vector<8x128xf32>
    %245 = arith.mulf %240, %244 : vector<8x128xf32>
    %c0_71 = arith.constant 0 : index
    %c0_72 = arith.constant 0 : index
    %246 = vector.load %arg3[%c0_71, %c0_72] : memref<128x512xf32, #tpu.memory_space<vmem>>, vector<128x512xf32>
    %cst_73 = arith.constant dense<0.000000e+00> : vector<8x512xf32>
    %247 = tpu.matmul %245, %246, %cst_73 {dimension_numbers = #tpu.dot_dimension_numbers<[1], [0], [0], [1], [0, 0, 1, 1], [], []>} : vector<8x128xf32>, vector<128x512xf32>, vector<8x512xf32> -> vector<8x512xf32>
    %c0_74 = arith.constant 0 : index
    %c0_75 = arith.constant 0 : index
    %248 = vector.load %arg4[%c0_74, %c0_75] : memref<128x512xf32, #tpu.memory_space<vmem>>, vector<128x512xf32>
    %cst_76 = arith.constant dense<0.000000e+00> : vector<8x512xf32>
    %249 = tpu.matmul %213, %248, %cst_76 {dimension_numbers = #tpu.dot_dimension_numbers<[1], [0], [0], [1], [0, 0, 1, 1], [], []>} : vector<8x128xf32>, vector<128x512xf32>, vector<8x512xf32> -> vector<8x512xf32>
    %250 = arith.addf %247, %249 : vector<8x512xf32>
    %251 = arith.addf %250, %5 : vector<8x512xf32>
    %252 = vector.extract_strided_slice %251 {offsets = [0, 0], sizes = [8, 128], strides = [1, 1]} : vector<8x512xf32> to vector<8x128xf32>
    %253 = arith.negf %252 : vector<8x128xf32>
    %254 = math.exp %253 : vector<8x128xf32>
    %cst_77 = arith.constant 1.000000e+00 : f32
    %255 = vector.broadcast %cst_77 : f32 to vector<8x128xf32>
    %256 = arith.addf %255, %254 : vector<8x128xf32>
    %257 = arith.divf %255, %256 : vector<8x128xf32>
    %258 = vector.extract_strided_slice %251 {offsets = [0, 128], sizes = [8, 128], strides = [1, 1]} : vector<8x512xf32> to vector<8x128xf32>
    %259 = arith.negf %258 : vector<8x128xf32>
    %260 = math.exp %259 : vector<8x128xf32>
    %cst_78 = arith.constant 1.000000e+00 : f32
    %261 = vector.broadcast %cst_78 : f32 to vector<8x128xf32>
    %262 = arith.addf %261, %260 : vector<8x128xf32>
    %263 = arith.divf %261, %262 : vector<8x128xf32>
    %264 = vector.extract_strided_slice %251 {offsets = [0, 256], sizes = [8, 128], strides = [1, 1]} : vector<8x512xf32> to vector<8x128xf32>
    %265 = math.tanh %264 : vector<8x128xf32>
    %266 = vector.extract_strided_slice %251 {offsets = [0, 384], sizes = [8, 128], strides = [1, 1]} : vector<8x512xf32> to vector<8x128xf32>
    %267 = arith.negf %266 : vector<8x128xf32>
    %268 = math.exp %267 : vector<8x128xf32>
    %cst_79 = arith.constant 1.000000e+00 : f32
    %269 = vector.broadcast %cst_79 : f32 to vector<8x128xf32>
    %270 = arith.addf %269, %268 : vector<8x128xf32>
    %271 = arith.divf %269, %270 : vector<8x128xf32>
    %272 = arith.mulf %263, %214 : vector<8x128xf32>
    %273 = arith.mulf %257, %265 : vector<8x128xf32>
    %274 = arith.addf %272, %273 : vector<8x128xf32>
    %275 = math.tanh %274 : vector<8x128xf32>
    %276 = arith.mulf %271, %275 : vector<8x128xf32>
    %277 = arith.addi %6, %c3_i32 : i32
    %c10_i32_80 = arith.constant 10 : i32
    %278 = arith.cmpi slt, %277, %c10_i32_80 : i32
    %279 = arith.select %278, %245, %211 : vector<8x128xf32>
    %280 = arith.select %278, %243, %212 : vector<8x128xf32>
    %281 = arith.select %278, %276, %213 : vector<8x128xf32>
    %282 = arith.select %278, %274, %214 : vector<8x128xf32>
    %c4_i32_81 = arith.constant 4 : i32
    %c0_82 = arith.constant 0 : index
    %c0_83 = arith.constant 0 : index
    %283 = vector.load %arg9[%c0_82, %c0_83] : memref<8x128xf32, #tpu.memory_space<vmem>>, vector<8x128xf32>
    tpu.vector_store %arg9[%c0_82, %c0_83], %279 {strides = array<i32>} : memref<8x128xf32, #tpu.memory_space<vmem>>, vector<8x128xf32>,
    %c0_84 = arith.constant 0 : index
    %c0_85 = arith.constant 0 : index
    %284 = vector.load %arg10[%c0_84, %c0_85] : memref<8x128xf32, #tpu.memory_space<vmem>>, vector<8x128xf32>
    tpu.vector_store %arg10[%c0_84, %c0_85], %280 {strides = array<i32>} : memref<8x128xf32, #tpu.memory_space<vmem>>, vector<8x128xf32>,
    %c0_86 = arith.constant 0 : index
    %c0_87 = arith.constant 0 : index
    %285 = vector.load %arg11[%c0_86, %c0_87] : memref<8x128xf32, #tpu.memory_space<vmem>>, vector<8x128xf32>
    tpu.vector_store %arg11[%c0_86, %c0_87], %281 {strides = array<i32>} : memref<8x128xf32, #tpu.memory_space<vmem>>, vector<8x128xf32>,
    %c0_88 = arith.constant 0 : index
    %c0_89 = arith.constant 0 : index
    %286 = vector.load %arg12[%c0_88, %c0_89] : memref<8x128xf32, #tpu.memory_space<vmem>>, vector<8x128xf32>
    tpu.vector_store %arg12[%c0_88, %c0_89], %282 {strides = array<i32>} : memref<8x128xf32, #tpu.memory_space<vmem>>, vector<8x128xf32>,
    %c2_i32_90 = arith.constant 2 : i32
    %287 = arith.cmpi eq, %arg0, %c2_i32_90 : i32
    %288 = arith.extui %287 : i1 to i32
    %c0_i32_91 = arith.constant 0 : i32
    %289 = arith.cmpi ne, %288, %c0_i32_91 : i32
    scf.if %289 {
      %c0_92 = arith.constant 0 : index
      %c0_93 = arith.constant 0 : index
      %290 = vector.load %arg6[%c0_92, %c0_93] : memref<1x128xf32, #tpu.memory_space<vmem>>, vector<1x128xf32>
      %291 = vector.broadcast %290 : vector<1x128xf32> to vector<8x128xf32>
      %292 = arith.mulf %281, %291 : vector<8x128xf32>
      %cst_94 = arith.constant dense<0.000000e+00> : vector<8xf32>
      %293 = vector.multi_reduction <add>, %292, %cst_94 [1] : vector<8x128xf32> to vector<8xf32>
      %294 = vector.shape_cast %293 : vector<8xf32> to vector<8x1xf32>
      %c0_95 = arith.constant 0 : index
      %c0_96 = arith.constant 0 : index
      %295 = vector.load %arg7[%c0_95, %c0_96] : memref<1x1xf32, #tpu.memory_space<vmem>>, vector<1x1xf32>
      %296 = vector.broadcast %295 : vector<1x1xf32> to vector<8x1xf32>
      %297 = arith.addf %294, %296 : vector<8x1xf32>
      %298 = arith.negf %297 : vector<8x1xf32>
      %299 = math.exp %298 : vector<8x1xf32>
      %cst_97 = arith.constant 1.000000e+00 : f32
      %300 = vector.broadcast %cst_97 : f32 to vector<8x1xf32>
      %301 = arith.addf %300, %299 : vector<8x1xf32>
      %302 = arith.divf %300, %301 : vector<8x1xf32>
      %303 = vector.shape_cast %302 : vector<8x1xf32> to vector<8x1xf32>
      %304 = vector.broadcast %303 : vector<8x1xf32> to vector<8x128xf32>
      %c0_98 = arith.constant 0 : index
      %c0_99 = arith.constant 0 : index
      %305 = vector.load %arg8[%c0_98, %c0_99] : memref<8x128xf32, #tpu.memory_space<vmem>>, vector<8x128xf32>
      tpu.vector_store %arg8[%c0_98, %c0_99], %304 {strides = array<i32>} : memref<8x128xf32, #tpu.memory_space<vmem>>, vector<8x128xf32>,
    } else {
    }
    return
  }
  func.func @transform_0(%arg0: i32) -> (i32, i32, i32) {
    %c0_i32 = arith.constant 0 : i32
    %c0_i32_0 = arith.constant 0 : i32
    %c0_i32_1 = arith.constant 0 : i32
    return %arg0, %c0_i32, %c0_i32_0 : i32, i32, i32
  }
  func.func @transform_1(%arg0: i32) -> (i32, i32) {
    %c0_i32 = arith.constant 0 : i32
    %c0_i32_0 = arith.constant 0 : i32
    %c0_i32_1 = arith.constant 0 : i32
    return %c0_i32, %c0_i32_0 : i32, i32
  }
  func.func @transform_2(%arg0: i32) -> (i32, i32) {
    %c0_i32 = arith.constant 0 : i32
    %c0_i32_0 = arith.constant 0 : i32
    %c0_i32_1 = arith.constant 0 : i32
    return %c0_i32, %c0_i32_0 : i32, i32
  }
  func.func @transform_3(%arg0: i32) -> (i32, i32) {
    %c0_i32 = arith.constant 0 : i32
    %c0_i32_0 = arith.constant 0 : i32
    %c0_i32_1 = arith.constant 0 : i32
    return %c0_i32, %c0_i32_0 : i32, i32
  }
  func.func @transform_4(%arg0: i32) -> (i32, i32) {
    %c0_i32 = arith.constant 0 : i32
    %c0_i32_0 = arith.constant 0 : i32
    %c0_i32_1 = arith.constant 0 : i32
    return %c0_i32, %c0_i32_0 : i32, i32
  }
  func.func @transform_5(%arg0: i32) -> (i32, i32) {
    %c0_i32 = arith.constant 0 : i32
    %c0_i32_0 = arith.constant 0 : i32
    %c0_i32_1 = arith.constant 0 : i32
    return %c0_i32, %c0_i32_0 : i32, i32
  }
  func.func @transform_6(%arg0: i32) -> (i32, i32) {
    %c0_i32 = arith.constant 0 : i32
    %c0_i32_0 = arith.constant 0 : i32
    %c0_i32_1 = arith.constant 0 : i32
    return %c0_i32, %c0_i32_0 : i32, i32
  }
  func.func @transform_7(%arg0: i32) -> (i32, i32) {
    %c0_i32 = arith.constant 0 : i32
    %c0_i32_0 = arith.constant 0 : i32
    %c0_i32_1 = arith.constant 0 : i32
    return %c0_i32, %c0_i32_0 : i32, i32
  }
}

</mosaic_0001>

<bundles_post_ra>
// kernel: bidirectional_lstm_forward.1
= control target key start
LH: loop header
LB: loop body
LE: loop exit
PB: predicated region body
PF: predicated region fallthrough
CT: control target
= control target key end

     0   :  { %s2988_s26 = smov 0   ;;  %s5928_s0 = inlined_call_operand.vmem [shape: f32[12,8,512], index: 0, kind: input, shape index: {}]   ;;  %s5929_s1 = inlined_call_operand.vmem [shape: f32[128,512], index: 1, kind: input, shape index: {}]   ;;  %s5930_s2 = inlined_call_operand.vmem [shape: f32[128,512], index: 2, kind: input, shape index: {}]   ;;  %s5931_s3 = inlined_call_operand.vmem [shape: f32[128,512], index: 3, kind: input, shape index: {}]   ;;  %s5932_s4 = inlined_call_operand.vmem [shape: f32[1,512], index: 4, kind: input, shape index: {}]   ;;  %s5933_s5 = inlined_call_operand.vmem [shape: f32[1,128], index: 5, kind: input, shape index: {}]   ;;  %s5934_s6 = inlined_call_operand.<no memory space> [shape: f32[1,1], index: 6, kind: input, shape index: {}]   ;;  %s5935_s7 = inlined_call_operand.vmem [shape: f32[8,128], index: 7, kind: output, shape index: {}]  }
   0x1   :  { %v12_v0 = vstv %s5934_s6 }
   0x2   :  { %13 = vst [vmem:[#allocation6] sm:$0x1] %v12_v0 }
   0x3 LB: > { %s2994_s27 = sadd.s32 4294967295, %s2940_s26   ;;  %p2549_p0 = scmp.ge.s32.totalorder %s2940_s26, 1  ;;  %s2940_s26 = sphi %s2988_s26, %s19_s26  }
   0x4   : > { %p236_p1 = scmp.lt.s32.totalorder %s2940_s26, 4 }
   0x6   : > { %p237_p2 = pnand %p2549_p0, %p236_p1 }
   0x8   : > { %240 = sbr.rel (%p237_p2) target bundleno = 1713 (0x6b1), region = 48 }
   0xd   : > { %s2999_s28 = sshll.u32 %s2994_s27, 2  ;;  %p2553_p4 = scmp.ne.s32.totalorder %s2994_s27, 0 }
   0xe   : > { %p265_p3 = scmp.lt.s32.totalorder %s2999_s28, 11 }
   0xf   : > { %274 = sbr.rel (%p2553_p4) target bundleno = 23 (0x17), region = 52 }
  0x10   : > { %s266_s6 = scalar_select %p265_p3, %s2999_s28, 11 }
  0x12   : > { %s2597_s29 = sshll.u32 %s266_s6, 5 }
  0x13   : > { %s3006_s9 = scalar_lea.vmem %s5928_s0, %s2597_s29 }
  0x14   : > { %v2942_v1 = vmov 0.0  }
  0x15   : > { %275 = vst [vmem:[#allocation2] sm:$0xff] %v2942_v1  ;;  %276 = vst [vmem:[#allocation3] sm:$0xff] %v2942_v1 }
  0x16   : > { %277 = vst [vmem:[#allocation4] sm:$0xff] %v2942_v1  ;;  %278 = vst [vmem:[#allocation5] sm:$0xff] %v2942_v1 }
  0x17 PF: > { %v3012_v2 = vld [vmem:[%s5929_s1 + $0x1e8] sm:$0xff]  ;;  %v3017_v3 = vld [vmem:[%s5929_s1 + $0x1e0] sm:$0xff]  ;;  %v5936_v6 = vmov 0.0   ;;  %v3059_v11 = vld [vmem:[%s5929_s1 + $0x1f8] sm:$0xff]  ;;  %p984_p5 = scmp.lt.s32.totalorder %s2999_s28, 10  ;;  %s1479_s17 = sadd.s32 1, %s2999_s28 }
  0x18   : > { %v3022_v4 = vld [vmem:[%s5929_s1 + $0x1c8] sm:$0xff]  ;;  %374 = vmatprep.subr.mxu0 %v3012_v2  ;;  %v3028_v5 = vld [vmem:[%s5929_s1 + $0x1c0] sm:$0xff]  ;;  %438 = vmatprep.mubr.f32.mxu0 %v5936_v6  ;;  %v3071_v13 = vld [vmem:[%s5929_s1 + $0x1f0] sm:$0xff]  ;;  %p4369_p6 = scmp.lt.s32.totalorder %s1479_s17, 10  ;;  %s1975_s20 = sadd.s32 2, %s2999_s28 }
  0x19   : > { %375 = vmatpush1.msra.mxu0 %v3017_v3  ;;  %v3035_v7 = vld [vmem:[%s5929_s1 + $0x1a8] sm:$0xff]  ;;  %509 = vmatprep.mubr.f32.mxu1 %v5936_v6  ;;  %v3042_v8 = vld [vmem:[%s5929_s1 + $0x1a0] sm:$0xff]  ;;  %v3083_v15 = vld [vmem:[%s5929_s1 + $0x1d8] sm:$0xff]  ;;  %s985_s14 = scalar_select %p984_p5, 1, 0 }
  0x1a   : > { %376 = vmatprep.subr.mxu0 %v3022_v4  ;;  %v3048_v9 = vld [vmem:[%s5929_s1 + $0x188] sm:$0xff]  ;;  %v3054_v10 = vld [vmem:[%s5929_s1 + $0x180] sm:$0xff]  ;;  %445 = vmatprep.subr.mxu1 %v3059_v11  ;;  %v3088_v16 = vld [vmem:[%s5929_s1 + $0x1d0] sm:$0xff]  ;;  %s1481_s19 = scalar_select %p4369_p6, 1, 0 }
  0x1b   : > { %377 = vmatpush1.msra.mxu0 %v3028_v5  ;;  %v3065_v12 = vld [vmem:[%s5929_s1 + $0x168] sm:$0xff]  ;;  %v3077_v14 = vld [vmem:[%s5929_s1 + $0x160] sm:$0xff]  ;;  %446 = vmatpush1.msra.mxu1 %v3071_v13  ;;  %v3100_v18 = vld [vmem:[%s5929_s1 + $0x1b8] sm:$0xff]  ;;  %p5282_p7 = scmp.lt.s32.totalorder %s1975_s20, 10  ;;  %s2471_s30 = sadd.s32 3, %s2999_s28 }
  0x1c   : > { %378 = vmatprep.subr.mxu0 %v3035_v7  ;;  %v3094_v17 = vld [vmem:[%s5929_s1 + $0x148] sm:$0xff]  ;;  %447 = vmatprep.subr.mxu1 %v3083_v15  ;;  %v3106_v19 = vld [vmem:[%s5929_s1 + $0x140] sm:$0xff]  ;;  %v3112_v20 = vld [vmem:[%s5929_s1 + $0x1b0] sm:$0xff]  ;;  %p5829_p8 = scmp.lt.s32.totalorder %s2471_s30, 10  ;;  %p2591_p9 = scmp.ne.s32.totalorder %s2994_s27, 2 }
  0x1d   : > { %379 = vmatpush1.msra.mxu0 %v3042_v8  ;;  %448 = vmatpush1.msra.mxu1 %v3088_v16  ;;  %v3117_v21 = vld [vmem:[%s5929_s1 + $0x198] sm:$0xff]  ;;  %v3123_v22 = vld [vmem:[%s5929_s1 + $0x128] sm:$0xff]  ;;  %v3129_v23 = vld [vmem:[%s5929_s1 + $0x190] sm:$0xff]  ;;  %s1977_s22 = scalar_select %p5282_p7, 1, 0 }
  0x1e   : > { %380 = vmatprep.subr.mxu0 %v3048_v9  ;;  %449 = vmatprep.subr.mxu1 %v3100_v18  ;;  %v3135_v24 = vld [vmem:[%s5929_s1 + $0x120] sm:$0xff]  ;;  %v3141_v25 = vld [vmem:[%s5929_s1 + $0x178] sm:$0xff]  ;;  %v3147_v26 = vld [vmem:[%s5929_s1 + $0x108] sm:$0xff]  ;;  %s2473_s28 = scalar_select %p5829_p8, 1, 0 }
  0x1f   : > { %381 = vmatpush1.msra.mxu0 %v3054_v10  ;;  %450 = vmatpush1.msra.mxu1 %v3112_v20  ;;  %v3153_v27 = vld [vmem:[%s5929_s1 + $0x170] sm:$0xff]  ;;  %v3159_v28 = vld [vmem:[%s5929_s1 + $0x100] sm:$0xff]  ;;  %v3165_v29 = vld [vmem:[%s5929_s1 + $0x158] sm:$0xff] }
  0x20   : > { %382 = vmatprep.subr.mxu0 %v3065_v12  ;;  %451 = vmatprep.subr.mxu1 %v3117_v21  ;;  %v3171_v30 = vld [vmem:[%s5929_s1 + $0xe8] sm:$0xff]  ;;  %v3177_v31 = vld [vmem:[%s5929_s1 + $0x150] sm:$0xff]  ;;  %v3183_v32 = vld [vmem:[%s5929_s1 + $0xe0] sm:$0xff] }
  0x21   : > { %383 = vmatpush1.msra.mxu0 %v3077_v14  ;;  %452 = vmatpush1.msra.mxu1 %v3129_v23  ;;  %v3189_v33 = vld [vmem:[%s5929_s1 + $0x138] sm:$0xff]  ;;  %v3195_v34 = vld [vmem:[%s5929_s1 + $0xc8] sm:$0xff]  ;;  %v3201_v35 = vld [vmem:[%s5929_s1 + $0x130] sm:$0xff] }
  0x22   : > { %384 = vmatprep.subr.mxu0 %v3094_v17  ;;  %453 = vmatprep.subr.mxu1 %v3141_v25  ;;  %v3207_v36 = vld [vmem:[%s5929_s1 + $0xc0] sm:$0xff]  ;;  %v3213_v37 = vld [vmem:[%s5929_s1 + $0x118] sm:$0xff]  ;;  %v3219_v38 = vld [vmem:[%s5929_s1 + $0xa8] sm:$0xff] }
  0x23   : > { %385 = vmatpush1.msra.mxu0 %v3106_v19  ;;  %454 = vmatpush1.msra.mxu1 %v3153_v27  ;;  %v3225_v39 = vld [vmem:[%s5929_s1 + $0x110] sm:$0xff]  ;;  %v3231_v40 = vld [vmem:[%s5929_s1 + $0xa0] sm:$0xff]  ;;  %v3237_v41 = vld [vmem:[%s5929_s1 + $0xf8] sm:$0xff] }
  0x24   : > { %386 = vmatprep.subr.mxu0 %v3123_v22  ;;  %455 = vmatprep.subr.mxu1 %v3165_v29  ;;  %v3243_v42 = vld [vmem:[%s5929_s1 + $0x88] sm:$0xff]  ;;  %v3249_v43 = vld [vmem:[%s5929_s1 + $0xf0] sm:$0xff]  ;;  %v3255_v44 = vld [vmem:[%s5929_s1 + $0x80] sm:$0xff] }
  0x25   : > { %387 = vmatpush1.msra.mxu0 %v3135_v24  ;;  %456 = vmatpush1.msra.mxu1 %v3177_v31  ;;  %v3261_v45 = vld [vmem:[%s5929_s1 + $0xd8] sm:$0xff]  ;;  %v3267_v46 = vld [vmem:[%s5929_s1 + $0x68] sm:$0xff]  ;;  %v3273_v47 = vld [vmem:[%s5929_s1 + $0xd0] sm:$0xff] }
  0x26   : > { %388 = vmatprep.subr.mxu0 %v3147_v26  ;;  %457 = vmatprep.subr.mxu1 %v3189_v33  ;;  %6227 = vst [vmem:[#allocation7_spill] sm:$0xff] %v3267_v46  ;;  %v3279_v48 = vld [vmem:[%s5929_s1 + $0x60] sm:$0xff]  ;;  %v3285_v49 = vld [vmem:[%s5929_s1 + $0xb8] sm:$0xff]  ;;  %v3291_v50 = vld [vmem:[%s5929_s1 + $0x48] sm:$0xff] }
  0x27   : > { %389 = vmatpush1.msra.mxu0 %v3159_v28  ;;  %458 = vmatpush1.msra.mxu1 %v3201_v35  ;;  %6228 = vst [vmem:[#allocation8_spill] sm:$0xff] %v3279_v48  ;;  %6229 = vst [vmem:[#allocation9_spill] sm:$0xff] %v3291_v50  ;;  %v3297_v51 = vld [vmem:[%s5929_s1 + $0xb0] sm:$0xff]  ;;  %v3303_v52 = vld [vmem:[%s5929_s1 + $0x40] sm:$0xff] }
  0x28   : > { %390 = vmatprep.subr.mxu0 %v3171_v30  ;;  %459 = vmatprep.subr.mxu1 %v3213_v37  ;;  %6230 = vst [vmem:[#allocation10_spill] sm:$0xff] %v3303_v52  ;;  %v3309_v53 = vld [vmem:[%s5929_s1 + $0x98] sm:$0xff]  ;;  %v3315_v54 = vld [vmem:[%s5929_s1 + $0x28] sm:$0xff]  ;;  %v3321_v55 = vld [vmem:[%s5929_s1 + $0x90] sm:$0xff] }
  0x29   : > { %391 = vmatpush1.msra.mxu0 %v3183_v32  ;;  %460 = vmatpush1.msra.mxu1 %v3225_v39  ;;  %6231 = vst [vmem:[#allocation11_spill] sm:$0xff] %v3315_v54  ;;  %v3327_v56 = vld [vmem:[%s5929_s1 + $0x20] sm:$0xff]  ;;  %v3333_v57 = vld [vmem:[%s5929_s1 + $0x78] sm:$0xff]  ;;  %v3339_v58 = vld [vmem:[%s5929_s1 + $0x8] sm:$0xff] }
  0x2a   : > { %392 = vmatprep.subr.mxu0 %v3195_v34  ;;  %461 = vmatprep.subr.mxu1 %v3237_v41  ;;  %6232 = vst [vmem:[#allocation12_spill] sm:$0xff] %v3327_v56  ;;  %6233 = vst [vmem:[#allocation13_spill] sm:$0xff] %v3333_v57  ;;  %v3345_v59 = vld [vmem:[%s5929_s1 + $0x70] sm:$0xff]  ;;  %v3351_v60 = vld [vmem:[%s5929_s1] sm:$0xff] }
  0x2b   : > { %393 = vmatpush1.msra.mxu0 %v3207_v36  ;;  %462 = vmatpush1.msra.mxu1 %v3249_v43  ;;  %6234 = vst [vmem:[#allocation14_spill] sm:$0xff] %v3339_v58  ;;  %6235 = vst [vmem:[#allocation15_spill] sm:$0xff] %v3345_v59  ;;  %v3357_v61 = vld [vmem:[%s5929_s1 + $0x58] sm:$0xff]  ;;  %v3360_v62 = vld [vmem:[#allocation2] sm:$0xff] }
  0x2c   : > { %394 = vmatprep.subr.mxu0 %v3219_v38  ;;  %463 = vmatprep.subr.mxu1 %v3261_v45  ;;  %6236 = vst [vmem:[#allocation16_spill] sm:$0xff] %v3351_v60  ;;  %6237 = vst [vmem:[#allocation17_spill] sm:$0xff] %v3357_v61  ;;  %v3366_v63 = vld [vmem:[%s5929_s1 + $0x50] sm:$0xff]  ;;  %v3373_v0 = vld [vmem:[%s5929_s1 + $0x38] sm:$0xff] }
  0x2d   : > { %395 = vmatpush1.msra.mxu0 %v3231_v40  ;;  %464 = vmatpush1.msra.mxu1 %v3273_v47  ;;  %6238 = vst [vmem:[#allocation18_spill] sm:$0xff] %v3360_v62  ;;  %6239 = vst [vmem:[#allocation19_spill] sm:$0xff] %v3366_v63  ;;  %v3378_v1 = vld [vmem:[%s5931_s3 + $0x1e8] sm:$0xff]  ;;  %v3385_v6 = vld [vmem:[%s5929_s1 + $0x30] sm:$0xff] }
  0x2e   : > { %396 = vmatprep.subr.mxu0 %v3243_v42  ;;  %465 = vmatprep.subr.mxu1 %v3285_v49  ;;  %6240 = vst [vmem:[#allocation20_spill] sm:$0xff] %v3373_v0  ;;  %6241 = vst [vmem:[#allocation21_spill] sm:$0xff] %v3378_v1 }
  0x2f   : > { %397 = vmatpush1.msra.mxu0 %v3255_v44  ;;  %466 = vmatpush1.msra.mxu1 %v3297_v51  ;;  %6242 = vst [vmem:[#allocation22_spill] sm:$0xff] %v3385_v6 }
  0x30   : > { %398 = vmatprep.subr.mxu0 %v3267_v46  ;;  %467 = vmatprep.subr.mxu1 %v3309_v53 }
  0x31   : > { %399 = vmatpush1.msra.mxu0 %v3279_v48  ;;  %468 = vmatpush1.msra.mxu1 %v3321_v55 }
  0x32   : > { %400 = vmatprep.subr.mxu0 %v3291_v50  ;;  %469 = vmatprep.subr.mxu1 %v3333_v57 }
  0x33   : > { %401 = vmatpush1.msra.mxu0 %v3303_v52  ;;  %470 = vmatpush1.msra.mxu1 %v3345_v59  ;;  %v3420_v52 = vld [vmem:[%s5931_s3 + $0x1f8] sm:$0xff]  ;;  %v308_v59 = vld [vmem:[%s3006_s9 + $0x10] sm:$0xff] }
  0x34   : > { %402 = vmatprep.subr.mxu0 %v3315_v54  ;;  %471 = vmatprep.subr.mxu1 %v3357_v61  ;;  %v3408_v54 = vld [vmem:[%s5929_s1 + $0x10] sm:$0xff]  ;;  %6248 = vst [vmem:[#allocation28_spill] sm:$0xff] %v3420_v52  ;;  %v309_v61 = vld [vmem:[%s3006_s9 + $0x18] sm:$0xff] }
  0x35   : > { %403 = vmatpush1.msra.mxu0 %v3327_v56  ;;  %472 = vmatpush1.msra.mxu1 %v3366_v63  ;;  %v3402_v56 = vld [vmem:[%s5931_s3 + $0x1c8] sm:$0xff]  ;;  %6246 = vst [vmem:[#allocation26_spill] sm:$0xff] %v3408_v54  ;;  %v3414_v63 = vld [vmem:[%s5931_s3 + $0x1c0] sm:$0xff] }
  0x36   : > { %404 = vmatprep.subr.mxu0 %v3339_v58  ;;  %v3390_v58 = vld [vmem:[%s5931_s3 + $0x1e0] sm:$0xff]  ;;  %6245 = vst [vmem:[#allocation25_spill] sm:$0xff] %v3402_v56  ;;  %473 = vmatprep.subr.mxu1 %v3373_v0  ;;  %6247 = vst [vmem:[#allocation27_spill] sm:$0xff] %v3414_v63 }
  0x37   : > { %405 = vmatpush1.msra.mxu0 %v3351_v60  ;;  %6243 = vst [vmem:[#allocation23_spill] sm:$0xff] %v3390_v58  ;;  %v3397_v60 = vld [vmem:[%s5929_s1 + $0x18] sm:$0xff]  ;;  %474 = vmatpush1.msra.mxu1 %v3385_v6  ;;  %v3433_v6 = vld [vmem:[%s5931_s3 + $0x1a8] sm:$0xff] }
  0x38   : > { %439 = vmatmul.mubr.f32.vlgmr.msra.gmra.mxu0 %v3360_v62  ;;  %6244 = vst [vmem:[#allocation24_spill] sm:$0xff] %v3397_v60  ;;  %672 = vmatprep.subr.mxu0 %v3378_v1  ;;  %v3427_v1 = vld [vmem:[%s5931_s3 + $0x1f0] sm:$0xff]  ;;  %6250 = vst [vmem:[#allocation30_spill] sm:$0xff] %v3433_v6 }
  0x39   : > { %673 = vmatpush1.msra.mxu0 %v3390_v58  ;;  %475 = vmatprep.subr.mxu1 %v3397_v60  ;;  %6249 = vst [vmem:[#allocation29_spill] sm:$0xff] %v3427_v1  ;;  %v3439_v58 = vld [vmem:[%s5931_s3 + $0x1d8] sm:$0xff]  ;;  %v3445_v60 = vld [vmem:[%s5931_s3 + $0x1a0] sm:$0xff] }
  0x3a   : > { %674 = vmatprep.subr.mxu0 %v3402_v56  ;;  %476 = vmatpush1.msra.mxu1 %v3408_v54  ;;  %6251 = vst [vmem:[#allocation31_spill] sm:$0xff] %v3439_v58  ;;  %6252 = vst [vmem:[#allocation32_spill] sm:$0xff] %v3445_v60  ;;  %v3452_v56 = vld [vmem:[%s5931_s3 + $0x1d0] sm:$0xff]  ;;  %v3457_v54 = vld [vmem:[%s5931_s3 + $0x188] sm:$0xff] }
  0x3b   : > { %675 = vmatpush1.msra.mxu0 %v3414_v63  ;;  %510 = vmatmul.mubr.f32.vlgmr.msra.gmra.mxu1 %v3360_v62  ;;  %6253 = vst [vmem:[#allocation33_spill] sm:$0xff] %v3452_v56  ;;  %6254 = vst [vmem:[#allocation34_spill] sm:$0xff] %v3457_v54  ;;  %v3464_v63 = vld [vmem:[%s5931_s3 + $0x1b8] sm:$0xff]  ;;  %v4015_v62 = vld [vmem:[%s5930_s2 + $0xc0] sm:$0xff] }
  0x3c   : > { %743 = vmatprep.subr.mxu1 %v3420_v52  ;;  %676 = vmatprep.subr.mxu0 %v3433_v6  ;;  %6255 = vst [vmem:[#allocation35_spill] sm:$0xff] %v3464_v63  ;;  %v3469_v52 = vld [vmem:[%s5931_s3 + $0x180] sm:$0xff]  ;;  %v3483_v6 = vld [vmem:[%s5931_s3 + $0x198] sm:$0xff]  ;;  %6348 = vst [vmem:[#allocation127_spill] sm:$0xff] %v4015_v62 }
  0x3d   : > { %744 = vmatpush1.msra.mxu1 %v3427_v1  ;;  %6256 = vst [vmem:[#allocation36_spill] sm:$0xff] %v3469_v52  ;;  %677 = vmatpush1.msra.mxu0 %v3445_v60  ;;  %v3476_v1 = vld [vmem:[%s5931_s3 + $0x1b0] sm:$0xff]  ;;  %6258 = vst [vmem:[#allocation38_spill] sm:$0xff] %v3483_v6 }
  0x3e   : > { %745 = vmatprep.subr.mxu1 %v3439_v58  ;;  %6257 = vst [vmem:[#allocation37_spill] sm:$0xff] %v3476_v1  ;;  %678 = vmatprep.subr.mxu0 %v3457_v54  ;;  %v3490_v60 = vld [vmem:[%s5931_s3 + $0x190] sm:$0xff]  ;;  %v6260_v58 = vmov 0.0   ;;  %v3500_v54 = vld [vmem:[%s5931_s3 + $0x168] sm:$0xff] }
  0x3f   : > { %746 = vmatpush1.msra.mxu1 %v3452_v56  ;;  %679 = vmatpush1.msra.mxu0 %v3469_v52  ;;  %6259 = vst [vmem:[#allocation39_spill] sm:$0xff] %v3490_v60  ;;  %6261 = vst [vmem:[#allocation40_spill] sm:$0xff] %v3500_v54  ;;  %v3505_v52 = vld [vmem:[%s5931_s3 + $0x178] sm:$0xff] }
  0x40   : > { %747 = vmatprep.subr.mxu1 %v3464_v63  ;;  %736 = vmatprep.mubr.f32.mxu0 %v6260_v58  ;;  %6262 = vst [vmem:[#allocation41_spill] sm:$0xff] %v3505_v52  ;;  %v3784_v63 = vld [vmem:[#allocation4] sm:$0xff]  ;;  %v3818_v56 = vld [vmem:[%s5930_s2 + $0x1d8] sm:$0xff] }
  0x41   : > { %748 = vmatpush1.msra.mxu1 %v3476_v1  ;;  %807 = vmatprep.mubr.f32.mxu1 %v6260_v58  ;;  %v3739_v1 = vld [vmem:[%s5931_s3 + $0x28] sm:$0xff]  ;;  %6309 = vst [vmem:[#allocation88_spill] sm:$0xff] %v3784_v63  ;;  %6315 = vst [vmem:[#allocation94_spill] sm:$0xff] %v3818_v56 }
  0x42   : > { %749 = vmatprep.subr.mxu1 %v3483_v6  ;;  %680 = vmatprep.subr.mxu0 %v3500_v54  ;;  %v3512_v6 = vld [vmem:[%s5931_s3 + $0x160] sm:$0xff]  ;;  %v3524_v54 = vld [vmem:[%s5931_s3 + $0x148] sm:$0xff]  ;;  %6301 = vst [vmem:[#allocation80_spill] sm:$0xff] %v3739_v1 }
  0x43   : > { %750 = vmatpush1.msra.mxu1 %v3490_v60  ;;  %6263 = vst [vmem:[#allocation42_spill] sm:$0xff] %v3512_v6  ;;  %v3517_v60 = vld [vmem:[%s5931_s3 + $0x170] sm:$0xff]  ;;  %681 = vmatpush1.msra.mxu0 %v3512_v6  ;;  %6265 = vst [vmem:[#allocation44_spill] sm:$0xff] %v3524_v54  ;;  %v3536_v6 = vld [vmem:[%s5931_s3 + $0x140] sm:$0xff] }
  0x44   : > { %751 = vmatprep.subr.mxu1 %v3505_v52  ;;  %6264 = vst [vmem:[#allocation43_spill] sm:$0xff] %v3517_v60  ;;  %v3529_v52 = vld [vmem:[%s5931_s3 + $0x158] sm:$0xff]  ;;  %682 = vmatprep.subr.mxu0 %v3524_v54  ;;  %6267 = vst [vmem:[#allocation46_spill] sm:$0xff] %v3536_v6  ;;  %v3548_v54 = vld [vmem:[%s5931_s3 + $0x128] sm:$0xff] }
  0x45   : > { %752 = vmatpush1.msra.mxu1 %v3517_v60  ;;  %6266 = vst [vmem:[#allocation45_spill] sm:$0xff] %v3529_v52  ;;  %v3541_v60 = vld [vmem:[%s5931_s3 + $0x150] sm:$0xff]  ;;  %683 = vmatpush1.msra.mxu0 %v3536_v6  ;;  %6269 = vst [vmem:[#allocation48_spill] sm:$0xff] %v3548_v54  ;;  %v3560_v6 = vld [vmem:[%s5931_s3 + $0x120] sm:$0xff] }
  0x46   : > { %753 = vmatprep.subr.mxu1 %v3529_v52  ;;  %6268 = vst [vmem:[#allocation47_spill] sm:$0xff] %v3541_v60  ;;  %v3553_v52 = vld [vmem:[%s5931_s3 + $0x138] sm:$0xff]  ;;  %684 = vmatprep.subr.mxu0 %v3548_v54  ;;  %6271 = vst [vmem:[#allocation50_spill] sm:$0xff] %v3560_v6  ;;  %v3572_v54 = vld [vmem:[%s5931_s3 + $0x108] sm:$0xff] }
  0x47   : > { %754 = vmatpush1.msra.mxu1 %v3541_v60  ;;  %6270 = vst [vmem:[#allocation49_spill] sm:$0xff] %v3553_v52  ;;  %v3565_v60 = vld [vmem:[%s5931_s3 + $0x130] sm:$0xff]  ;;  %685 = vmatpush1.msra.mxu0 %v3560_v6  ;;  %6273 = vst [vmem:[#allocation52_spill] sm:$0xff] %v3572_v54  ;;  %v3584_v6 = vld [vmem:[%s5931_s3 + $0x100] sm:$0xff] }
  0x48   : > { %755 = vmatprep.subr.mxu1 %v3553_v52  ;;  %6272 = vst [vmem:[#allocation51_spill] sm:$0xff] %v3565_v60  ;;  %v3577_v52 = vld [vmem:[%s5931_s3 + $0x118] sm:$0xff]  ;;  %686 = vmatprep.subr.mxu0 %v3572_v54  ;;  %6275 = vst [vmem:[#allocation54_spill] sm:$0xff] %v3584_v6  ;;  %v3596_v54 = vld [vmem:[%s5931_s3 + $0xe8] sm:$0xff] }
  0x49   : > { %756 = vmatpush1.msra.mxu1 %v3565_v60  ;;  %6274 = vst [vmem:[#allocation53_spill] sm:$0xff] %v3577_v52  ;;  %v3589_v60 = vld [vmem:[%s5931_s3 + $0x110] sm:$0xff]  ;;  %687 = vmatpush1.msra.mxu0 %v3584_v6  ;;  %6277 = vst [vmem:[#allocation56_spill] sm:$0xff] %v3596_v54  ;;  %v3608_v6 = vld [vmem:[%s5931_s3 + $0xe0] sm:$0xff] }
  0x4a   : > { %757 = vmatprep.subr.mxu1 %v3577_v52  ;;  %6276 = vst [vmem:[#allocation55_spill] sm:$0xff] %v3589_v60  ;;  %v3601_v52 = vld [vmem:[%s5931_s3 + $0xf8] sm:$0xff]  ;;  %688 = vmatprep.subr.mxu0 %v3596_v54  ;;  %6279 = vst [vmem:[#allocation58_spill] sm:$0xff] %v3608_v6  ;;  %v3620_v54 = vld [vmem:[%s5931_s3 + $0xc8] sm:$0xff] }
  0x4b   : > { %758 = vmatpush1.msra.mxu1 %v3589_v60  ;;  %6278 = vst [vmem:[#allocation57_spill] sm:$0xff] %v3601_v52  ;;  %v3613_v60 = vld [vmem:[%s5931_s3 + $0xf0] sm:$0xff]  ;;  %689 = vmatpush1.msra.mxu0 %v3608_v6  ;;  %6281 = vst [vmem:[#allocation60_spill] sm:$0xff] %v3620_v54  ;;  %v3632_v6 = vld [vmem:[%s5931_s3 + $0xc0] sm:$0xff] }
  0x4c   : > { %759 = vmatprep.subr.mxu1 %v3601_v52  ;;  %6280 = vst [vmem:[#allocation59_spill] sm:$0xff] %v3613_v60  ;;  %v3625_v52 = vld [vmem:[%s5931_s3 + $0xd8] sm:$0xff]  ;;  %690 = vmatprep.subr.mxu0 %v3620_v54  ;;  %6283 = vst [vmem:[#allocation62_spill] sm:$0xff] %v3632_v6  ;;  %v3644_v54 = vld [vmem:[%s5931_s3 + $0xa8] sm:$0xff] }
  0x4d   : > { %760 = vmatpush1.msra.mxu1 %v3613_v60  ;;  %6282 = vst [vmem:[#allocation61_spill] sm:$0xff] %v3625_v52  ;;  %v3637_v60 = vld [vmem:[%s5931_s3 + $0xd0] sm:$0xff]  ;;  %691 = vmatpush1.msra.mxu0 %v3632_v6  ;;  %6285 = vst [vmem:[#allocation64_spill] sm:$0xff] %v3644_v54  ;;  %v3656_v6 = vld [vmem:[%s5931_s3 + $0xa0] sm:$0xff] }
  0x4e   : > { %761 = vmatprep.subr.mxu1 %v3625_v52  ;;  %6284 = vst [vmem:[#allocation63_spill] sm:$0xff] %v3637_v60  ;;  %v3649_v52 = vld [vmem:[%s5931_s3 + $0xb8] sm:$0xff]  ;;  %692 = vmatprep.subr.mxu0 %v3644_v54  ;;  %6287 = vst [vmem:[#allocation66_spill] sm:$0xff] %v3656_v6  ;;  %v3668_v54 = vld [vmem:[%s5931_s3 + $0x88] sm:$0xff] }
  0x4f   : > { %762 = vmatpush1.msra.mxu1 %v3637_v60  ;;  %6286 = vst [vmem:[#allocation65_spill] sm:$0xff] %v3649_v52  ;;  %v3661_v60 = vld [vmem:[%s5931_s3 + $0xb0] sm:$0xff]  ;;  %693 = vmatpush1.msra.mxu0 %v3656_v6  ;;  %6289 = vst [vmem:[#allocation68_spill] sm:$0xff] %v3668_v54  ;;  %v3680_v6 = vld [vmem:[%s5931_s3 + $0x80] sm:$0xff] }
  0x50   : > { %763 = vmatprep.subr.mxu1 %v3649_v52  ;;  %6288 = vst [vmem:[#allocation67_spill] sm:$0xff] %v3661_v60  ;;  %v3673_v52 = vld [vmem:[%s5931_s3 + $0x98] sm:$0xff]  ;;  %694 = vmatprep.subr.mxu0 %v3668_v54  ;;  %6291 = vst [vmem:[#allocation70_spill] sm:$0xff] %v3680_v6  ;;  %v3692_v54 = vld [vmem:[%s5931_s3 + $0x68] sm:$0xff] }
  0x51   : > { %764 = vmatpush1.msra.mxu1 %v3661_v60  ;;  %6290 = vst [vmem:[#allocation69_spill] sm:$0xff] %v3673_v52  ;;  %v3685_v60 = vld [vmem:[%s5931_s3 + $0x90] sm:$0xff]  ;;  %695 = vmatpush1.msra.mxu0 %v3680_v6  ;;  %6293 = vst [vmem:[#allocation72_spill] sm:$0xff] %v3692_v54  ;;  %v3704_v6 = vld [vmem:[%s5931_s3 + $0x60] sm:$0xff] }
  0x52   : > { %765 = vmatprep.subr.mxu1 %v3673_v52  ;;  %6292 = vst [vmem:[#allocation71_spill] sm:$0xff] %v3685_v60  ;;  %v3697_v52 = vld [vmem:[%s5931_s3 + $0x78] sm:$0xff]  ;;  %696 = vmatprep.subr.mxu0 %v3692_v54  ;;  %6295 = vst [vmem:[#allocation74_spill] sm:$0xff] %v3704_v6  ;;  %v3716_v54 = vld [vmem:[%s5931_s3 + $0x48] sm:$0xff] }
  0x53   : > { %766 = vmatpush1.msra.mxu1 %v3685_v60  ;;  %6294 = vst [vmem:[#allocation73_spill] sm:$0xff] %v3697_v52  ;;  %v3709_v60 = vld [vmem:[%s5931_s3 + $0x70] sm:$0xff]  ;;  %697 = vmatpush1.msra.mxu0 %v3704_v6  ;;  %6297 = vst [vmem:[#allocation76_spill] sm:$0xff] %v3716_v54  ;;  %v3728_v6 = vld [vmem:[%s5931_s3 + $0x40] sm:$0xff] }
  0x54   : > { %767 = vmatprep.subr.mxu1 %v3697_v52  ;;  %6296 = vst [vmem:[#allocation75_spill] sm:$0xff] %v3709_v60  ;;  %v3721_v52 = vld [vmem:[%s5931_s3 + $0x58] sm:$0xff]  ;;  %698 = vmatprep.subr.mxu0 %v3716_v54  ;;  %6299 = vst [vmem:[#allocation78_spill] sm:$0xff] %v3728_v6  ;;  %v3756_v54 = vld [vmem:[%s5931_s3 + $0x30] sm:$0xff] }
  0x55   : > { %768 = vmatpush1.msra.mxu1 %v3709_v60  ;;  %6298 = vst [vmem:[#allocation77_spill] sm:$0xff] %v3721_v52  ;;  %699 = vmatpush1.msra.mxu0 %v3728_v6  ;;  %v3734_v60 = vld [vmem:[%s5931_s3 + $0x50] sm:$0xff]  ;;  %v3751_v6 = vld [vmem:[%s5931_s3 + $0x20] sm:$0xff]  ;;  %6304 = vst [vmem:[#allocation83_spill] sm:$0xff] %v3756_v54 }
  0x56   : > { %769 = vmatprep.subr.mxu1 %v3721_v52  ;;  %6300 = vst [vmem:[#allocation79_spill] sm:$0xff] %v3734_v60  ;;  %v3744_v52 = vld [vmem:[%s5931_s3 + $0x38] sm:$0xff]  ;;  %700 = vmatprep.subr.mxu0 %v3739_v1  ;;  %6303 = vst [vmem:[#allocation82_spill] sm:$0xff] %v3751_v6 }
  0x57   : > { %6302 = vst [vmem:[#allocation81_spill] sm:$0xff] %v3744_v52  ;;  %770 = vmatpush1.msra.mxu1 %v3734_v60  ;;  %701 = vmatpush1.msra.mxu0 %v3751_v6  ;;  %v3763_v60 = vld [vmem:[%s5931_s3 + $0x8] sm:$0xff]  ;;  %v3768_v1 = vld [vmem:[%s5931_s3 + $0x18] sm:$0xff]  ;;  %v3780_v6 = vld [vmem:[%s5931_s3 + $0x10] sm:$0xff] }
  0x58   : > { %771 = vmatprep.subr.mxu1 %v3744_v52  ;;  %6305 = vst [vmem:[#allocation84_spill] sm:$0xff] %v3763_v60  ;;  %6306 = vst [vmem:[#allocation85_spill] sm:$0xff] %v3768_v1  ;;  %702 = vmatprep.subr.mxu0 %v3763_v60  ;;  %v3775_v52 = vld [vmem:[%s5931_s3] sm:$0xff]  ;;  %v3789_v60 = vld [vmem:[%s5930_s2 + $0x1e8] sm:$0xff] }
  0x59   : > { %772 = vmatpush1.msra.mxu1 %v3756_v54  ;;  %6307 = vst [vmem:[#allocation86_spill] sm:$0xff] %v3775_v52  ;;  %6308 = vst [vmem:[#allocation87_spill] sm:$0xff] %v3780_v6  ;;  %703 = vmatpush1.msra.mxu0 %v3775_v52  ;;  %v3796_v54 = vld [vmem:[%s5930_s2 + $0x1f8] sm:$0xff]  ;;  %v3801_v52 = vld [vmem:[%s5930_s2 + $0x1e0] sm:$0xff] }
  0x5a   : > { %773 = vmatprep.subr.mxu1 %v3768_v1  ;;  %6310 = vst [vmem:[#allocation89_spill] sm:$0xff] %v3789_v60  ;;  %737 = vmatmul.mubr.f32.vlgmr.msra.gmra.mxu0 %v3784_v63  ;;  %6311 = vst [vmem:[#allocation90_spill] sm:$0xff] %v3796_v54  ;;  %v3806_v1 = vld [vmem:[%s5930_s2 + $0x1f0] sm:$0xff] }
  0x5b   : > { %774 = vmatpush1.msra.mxu1 %v3780_v6  ;;  %6312 = vst [vmem:[#allocation91_spill] sm:$0xff] %v3801_v52  ;;  %6313 = vst [vmem:[#allocation92_spill] sm:$0xff] %v3806_v1  ;;  %814 = vmatprep.subr.mxu0 %v3789_v60  ;;  %v3813_v6 = vld [vmem:[%s5930_s2 + $0x1c8] sm:$0xff]  ;;  %v3825_v60 = vld [vmem:[%s5930_s2 + $0x1c0] sm:$0xff] }
  0x5c   : > { %885 = vmatprep.subr.mxu1 %v3796_v54  ;;  %6314 = vst [vmem:[#allocation93_spill] sm:$0xff] %v3813_v6  ;;  %808 = vmatmul.mubr.f32.vlgmr.msra.gmra.mxu1 %v3784_v63  ;;  %6316 = vst [vmem:[#allocation95_spill] sm:$0xff] %v3825_v60  ;;  %v3830_v54 = vld [vmem:[%s5930_s2 + $0x1d0] sm:$0xff]  ;;  %v3837_v63 = vld [vmem:[%s5930_s2 + $0x1a8] sm:$0xff] }
  0x5d   : > { %815 = vmatpush1.msra.mxu0 %v3801_v52  ;;  %6317 = vst [vmem:[#allocation96_spill] sm:$0xff] %v3830_v54  ;;  %886 = vmatpush1.msra.mxu1 %v3806_v1  ;;  %6318 = vst [vmem:[#allocation97_spill] sm:$0xff] %v3837_v63  ;;  %v3842_v52 = vld [vmem:[%s5930_s2 + $0x1b8] sm:$0xff]  ;;  %v3849_v1 = vld [vmem:[%s5930_s2 + $0x1a0] sm:$0xff] }
  0x5e   : > { %816 = vmatprep.subr.mxu0 %v3813_v6  ;;  %6319 = vst [vmem:[#allocation98_spill] sm:$0xff] %v3842_v52  ;;  %887 = vmatprep.subr.mxu1 %v3818_v56  ;;  %6320 = vst [vmem:[#allocation99_spill] sm:$0xff] %v3849_v1  ;;  %v3854_v6 = vld [vmem:[%s5930_s2 + $0x1b0] sm:$0xff]  ;;  %v3861_v56 = vld [vmem:[%s5930_s2 + $0x188] sm:$0xff] }
  0x5f   : > { %817 = vmatpush1.msra.mxu0 %v3825_v60  ;;  %6321 = vst [vmem:[#allocation100_spill] sm:$0xff] %v3854_v6  ;;  %888 = vmatpush1.msra.mxu1 %v3830_v54  ;;  %6322 = vst [vmem:[#allocation101_spill] sm:$0xff] %v3861_v56  ;;  %v3866_v60 = vld [vmem:[%s5930_s2 + $0x198] sm:$0xff]  ;;  %v3873_v54 = vld [vmem:[%s5930_s2 + $0x180] sm:$0xff] }
  0x60   : > { %818 = vmatprep.subr.mxu0 %v3837_v63  ;;  %6323 = vst [vmem:[#allocation102_spill] sm:$0xff] %v3866_v60  ;;  %889 = vmatprep.subr.mxu1 %v3842_v52  ;;  %6324 = vst [vmem:[#allocation103_spill] sm:$0xff] %v3873_v54  ;;  %v3878_v63 = vld [vmem:[%s5930_s2 + $0x190] sm:$0xff]  ;;  %v3885_v52 = vld [vmem:[%s5930_s2 + $0x168] sm:$0xff] }
  0x61   : > { %819 = vmatpush1.msra.mxu0 %v3849_v1  ;;  %6325 = vst [vmem:[#allocation104_spill] sm:$0xff] %v3878_v63  ;;  %890 = vmatpush1.msra.mxu1 %v3854_v6  ;;  %6326 = vst [vmem:[#allocation105_spill] sm:$0xff] %v3885_v52  ;;  %v3890_v1 = vld [vmem:[%s5930_s2 + $0x178] sm:$0xff]  ;;  %v3897_v6 = vld [vmem:[%s5930_s2 + $0x160] sm:$0xff] }
  0x62   : > { %820 = vmatprep.subr.mxu0 %v3861_v56  ;;  %6327 = vst [vmem:[#allocation106_spill] sm:$0xff] %v3890_v1  ;;  %891 = vmatprep.subr.mxu1 %v3866_v60  ;;  %6328 = vst [vmem:[#allocation107_spill] sm:$0xff] %v3897_v6  ;;  %v3902_v56 = vld [vmem:[%s5930_s2 + $0x170] sm:$0xff]  ;;  %v3909_v60 = vld [vmem:[%s5930_s2 + $0x148] sm:$0xff] }
  0x63   : > { %821 = vmatpush1.msra.mxu0 %v3873_v54  ;;  %6329 = vst [vmem:[#allocation108_spill] sm:$0xff] %v3902_v56  ;;  %892 = vmatpush1.msra.mxu1 %v3878_v63  ;;  %6330 = vst [vmem:[#allocation109_spill] sm:$0xff] %v3909_v60  ;;  %v3914_v54 = vld [vmem:[%s5930_s2 + $0x158] sm:$0xff]  ;;  %v3921_v63 = vld [vmem:[%s5930_s2 + $0x140] sm:$0xff] }
  0x64   : > { %822 = vmatprep.subr.mxu0 %v3885_v52  ;;  %6331 = vst [vmem:[#allocation110_spill] sm:$0xff] %v3914_v54  ;;  %893 = vmatprep.subr.mxu1 %v3890_v1  ;;  %6332 = vst [vmem:[#allocation111_spill] sm:$0xff] %v3921_v63  ;;  %v3926_v52 = vld [vmem:[%s5930_s2 + $0x150] sm:$0xff]  ;;  %v3933_v1 = vld [vmem:[%s5930_s2 + $0x128] sm:$0xff] }
  0x65   : > { %823 = vmatpush1.msra.mxu0 %v3897_v6  ;;  %6333 = vst [vmem:[#allocation112_spill] sm:$0xff] %v3926_v52  ;;  %894 = vmatpush1.msra.mxu1 %v3902_v56  ;;  %6334 = vst [vmem:[#allocation113_spill] sm:$0xff] %v3933_v1  ;;  %v3938_v6 = vld [vmem:[%s5930_s2 + $0x138] sm:$0xff]  ;;  %v3945_v56 = vld [vmem:[%s5930_s2 + $0x120] sm:$0xff] }
  0x66   : > { %824 = vmatprep.subr.mxu0 %v3909_v60  ;;  %6335 = vst [vmem:[#allocation114_spill] sm:$0xff] %v3938_v6  ;;  %895 = vmatprep.subr.mxu1 %v3914_v54  ;;  %6336 = vst [vmem:[#allocation115_spill] sm:$0xff] %v3945_v56  ;;  %v3950_v60 = vld [vmem:[%s5930_s2 + $0x130] sm:$0xff]  ;;  %v3957_v54 = vld [vmem:[%s5930_s2 + $0x108] sm:$0xff] }
  0x67   : > { %825 = vmatpush1.msra.mxu0 %v3921_v63  ;;  %6337 = vst [vmem:[#allocation116_spill] sm:$0xff] %v3950_v60  ;;  %896 = vmatpush1.msra.mxu1 %v3926_v52  ;;  %6338 = vst [vmem:[#allocation117_spill] sm:$0xff] %v3957_v54  ;;  %v3962_v63 = vld [vmem:[%s5930_s2 + $0x118] sm:$0xff]  ;;  %v3969_v52 = vld [vmem:[%s5930_s2 + $0x100] sm:$0xff] }
  0x68   : > { %826 = vmatprep.subr.mxu0 %v3933_v1  ;;  %6339 = vst [vmem:[#allocation118_spill] sm:$0xff] %v3962_v63  ;;  %897 = vmatprep.subr.mxu1 %v3938_v6  ;;  %6340 = vst [vmem:[#allocation119_spill] sm:$0xff] %v3969_v52  ;;  %v3974_v1 = vld [vmem:[%s5930_s2 + $0x110] sm:$0xff]  ;;  %v3981_v6 = vld [vmem:[%s5930_s2 + $0xe8] sm:$0xff] }
  0x69   : > { %827 = vmatpush1.msra.mxu0 %v3945_v56  ;;  %6341 = vst [vmem:[#allocation120_spill] sm:$0xff] %v3974_v1  ;;  %898 = vmatpush1.msra.mxu1 %v3950_v60  ;;  %6342 = vst [vmem:[#allocation121_spill] sm:$0xff] %v3981_v6  ;;  %v3986_v56 = vld [vmem:[%s5930_s2 + $0xf8] sm:$0xff]  ;;  %v3993_v60 = vld [vmem:[%s5930_s2 + $0xe0] sm:$0xff] }
  0x6a   : > { %828 = vmatprep.subr.mxu0 %v3957_v54  ;;  %6343 = vst [vmem:[#allocation122_spill] sm:$0xff] %v3986_v56  ;;  %899 = vmatprep.subr.mxu1 %v3962_v63  ;;  %6344 = vst [vmem:[#allocation123_spill] sm:$0xff] %v3993_v60  ;;  %v3998_v54 = vld [vmem:[%s5930_s2 + $0xf0] sm:$0xff]  ;;  %v4005_v63 = vld [vmem:[%s5930_s2 + $0xc8] sm:$0xff] }
  0x6b   : > { %829 = vmatpush1.msra.mxu0 %v3969_v52  ;;  %6345 = vst [vmem:[#allocation124_spill] sm:$0xff] %v3998_v54  ;;  %900 = vmatpush1.msra.mxu1 %v3974_v1  ;;  %6346 = vst [vmem:[#allocation125_spill] sm:$0xff] %v4005_v63  ;;  %v4010_v52 = vld [vmem:[%s5930_s2 + $0xd8] sm:$0xff]  ;;  %v4027_v1 = vld [vmem:[%s5930_s2 + $0xa8] sm:$0xff] }
  0x6c   : > { %830 = vmatprep.subr.mxu0 %v3981_v6  ;;  %6347 = vst [vmem:[#allocation126_spill] sm:$0xff] %v4010_v52  ;;  %901 = vmatprep.subr.mxu1 %v3986_v56  ;;  %v4022_v6 = vld [vmem:[%s5930_s2 + $0xd0] sm:$0xff]  ;;  %6350 = vst [vmem:[#allocation129_spill] sm:$0xff] %v4027_v1  ;;  %v4034_v56 = vld [vmem:[%s5930_s2 + $0xb8] sm:$0xff] }
  0x6d   : > { %831 = vmatpush1.msra.mxu0 %v3993_v60  ;;  %6349 = vst [vmem:[#allocation128_spill] sm:$0xff] %v4022_v6  ;;  %902 = vmatpush1.msra.mxu1 %v3998_v54  ;;  %6351 = vst [vmem:[#allocation130_spill] sm:$0xff] %v4034_v56  ;;  %v4039_v60 = vld [vmem:[%s5930_s2 + $0xa0] sm:$0xff]  ;;  %v4046_v54 = vld [vmem:[%s5930_s2 + $0xb0] sm:$0xff] }
  0x6e   : > { %832 = vmatprep.subr.mxu0 %v4005_v63  ;;  %6352 = vst [vmem:[#allocation131_spill] sm:$0xff] %v4039_v60  ;;  %903 = vmatprep.subr.mxu1 %v4010_v52  ;;  %6353 = vst [vmem:[#allocation132_spill] sm:$0xff] %v4046_v54  ;;  %v4051_v63 = vld [vmem:[%s5930_s2 + $0x88] sm:$0xff]  ;;  %v4058_v52 = vld [vmem:[%s5930_s2 + $0x98] sm:$0xff] }
  0x6f   : > { %833 = vmatpush1.msra.mxu0 %v4015_v62  ;;  %6354 = vst [vmem:[#allocation133_spill] sm:$0xff] %v4051_v63  ;;  %904 = vmatpush1.msra.mxu1 %v4022_v6  ;;  %6355 = vst [vmem:[#allocation134_spill] sm:$0xff] %v4058_v52  ;;  %v4063_v62 = vld [vmem:[%s5930_s2 + $0x80] sm:$0xff]  ;;  %v4070_v6 = vld [vmem:[%s5930_s2 + $0x90] sm:$0xff] }
  0x70   : > { %834 = vmatprep.subr.mxu0 %v4027_v1  ;;  %6356 = vst [vmem:[#allocation135_spill] sm:$0xff] %v4063_v62  ;;  %905 = vmatprep.subr.mxu1 %v4034_v56  ;;  %6357 = vst [vmem:[#allocation136_spill] sm:$0xff] %v4070_v6  ;;  %v4075_v1 = vld [vmem:[%s5930_s2 + $0x68] sm:$0xff]  ;;  %v4082_v56 = vld [vmem:[%s5930_s2 + $0x78] sm:$0xff] }
  0x71   : > { %835 = vmatpush1.msra.mxu0 %v4039_v60  ;;  %6358 = vst [vmem:[#allocation137_spill] sm:$0xff] %v4075_v1  ;;  %906 = vmatpush1.msra.mxu1 %v4046_v54  ;;  %6359 = vst [vmem:[#allocation138_spill] sm:$0xff] %v4082_v56  ;;  %v4087_v60 = vld [vmem:[%s5930_s2 + $0x60] sm:$0xff]  ;;  %v4094_v54 = vld [vmem:[%s5930_s2 + $0x70] sm:$0xff] }
  0x72   : > { %836 = vmatprep.subr.mxu0 %v4051_v63  ;;  %6360 = vst [vmem:[#allocation139_spill] sm:$0xff] %v4087_v60  ;;  %907 = vmatprep.subr.mxu1 %v4058_v52  ;;  %6361 = vst [vmem:[#allocation140_spill] sm:$0xff] %v4094_v54  ;;  %v4099_v63 = vld [vmem:[%s5930_s2 + $0x48] sm:$0xff]  ;;  %v4106_v52 = vld [vmem:[%s5930_s2 + $0x58] sm:$0xff] }
  0x73   : > { %837 = vmatpush1.msra.mxu0 %v4063_v62  ;;  %6362 = vst [vmem:[#allocation141_spill] sm:$0xff] %v4099_v63  ;;  %908 = vmatpush1.msra.mxu1 %v4070_v6  ;;  %6363 = vst [vmem:[#allocation142_spill] sm:$0xff] %v4106_v52  ;;  %v4111_v62 = vld [vmem:[%s5930_s2 + $0x40] sm:$0xff]  ;;  %v4118_v6 = vld [vmem:[%s5930_s2 + $0x50] sm:$0xff] }
  0x74   : > { %838 = vmatprep.subr.mxu0 %v4075_v1  ;;  %6364 = vst [vmem:[#allocation143_spill] sm:$0xff] %v4111_v62  ;;  %909 = vmatprep.subr.mxu1 %v4082_v56  ;;  %6365 = vst [vmem:[#allocation144_spill] sm:$0xff] %v4118_v6  ;;  %v4123_v1 = vld [vmem:[%s5930_s2 + $0x28] sm:$0xff]  ;;  %v4130_v56 = vld [vmem:[%s5930_s2 + $0x38] sm:$0xff] }
  0x75   : > { %839 = vmatpush1.msra.mxu0 %v4087_v60  ;;  %6366 = vst [vmem:[#allocation145_spill] sm:$0xff] %v4123_v1  ;;  %910 = vmatpush1.msra.mxu1 %v4094_v54  ;;  %6367 = vst [vmem:[#allocation146_spill] sm:$0xff] %v4130_v56  ;;  %v4135_v60 = vld [vmem:[%s5930_s2 + $0x20] sm:$0xff]  ;;  %v4142_v54 = vld [vmem:[%s5930_s2 + $0x30] sm:$0xff] }
  0x76   : > { %840 = vmatprep.subr.mxu0 %v4099_v63  ;;  %6368 = vst [vmem:[#allocation147_spill] sm:$0xff] %v4135_v60  ;;  %911 = vmatprep.subr.mxu1 %v4106_v52  ;;  %6369 = vst [vmem:[#allocation148_spill] sm:$0xff] %v4142_v54  ;;  %v4147_v63 = vld [vmem:[%s5930_s2 + $0x8] sm:$0xff]  ;;  %v4154_v52 = vld [vmem:[%s5930_s2 + $0x18] sm:$0xff] }
  0x77   : > { %841 = vmatpush1.msra.mxu0 %v4111_v62  ;;  %6370 = vst [vmem:[#allocation149_spill] sm:$0xff] %v4147_v63  ;;  %912 = vmatpush1.msra.mxu1 %v4118_v6  ;;  %6371 = vst [vmem:[#allocation150_spill] sm:$0xff] %v4154_v52  ;;  %v4159_v62 = vld [vmem:[%s5930_s2] sm:$0xff]  ;;  %v4166_v6 = vld [vmem:[%s5930_s2 + $0x10] sm:$0xff] }
  0x78   : > { %842 = vmatprep.subr.mxu0 %v4123_v1  ;;  %6372 = vst [vmem:[#allocation151_spill] sm:$0xff] %v4159_v62  ;;  %913 = vmatprep.subr.mxu1 %v4130_v56  ;;  %6373 = vst [vmem:[#allocation152_spill] sm:$0xff] %v4166_v6  ;;  %v307_v56 = vld [vmem:[%s3006_s9 + $0x8] sm:$0xff] }
  0x79   : > { %843 = vmatpush1.msra.mxu0 %v4135_v60  ;;  %914 = vmatpush1.msra.mxu1 %v4142_v54  ;;  %v306_v60 = vld [vmem:[%s3006_s9] sm:$0xff] }
  0x7a   : > { %844 = vmatprep.subr.mxu0 %v4147_v63  ;;  %915 = vmatprep.subr.mxu1 %v4154_v52 }
  0x7b   : > { %845 = vmatpush1.msra.mxu0 %v4159_v62  ;;  %916 = vmatpush1.msra.mxu1 %v4166_v6 }
  0x7c   : > { %878 = vmatprep.mubr.f32.mxu0 %v6260_v58  ;;  %949 = vmatprep.mubr.f32.mxu1 %v6260_v58 }
  0x7d   : > { %997 = vmatprep.subr.mxu0 %v3012_v2  ;;  %1068 = vmatprep.subr.mxu1 %v3059_v11 }
  0xf8   : > { %v440_v54 = vpop.f32.mrf.mxu0 }
  0xf9   : > { %v516_v63 = vadd.f32 %v440_v54, %v306_v60 }
  0xfa   : > { %v442_v1 = vpop.f32.mrf.mxu0 }
  0xfb   : > { %v2555_v52 = vmul.f32 -1.442695, %v516_v63  ;;  %v517_v0 = vadd.f32 %v442_v1, %v307_v56  ;;  %v511_v6 = vpop.f32.mrf.mxu1  ;;  %v4181_v63 = vld [vmem:[#allocation3] sm:$0xff] }
  0xfc   : > { %v518_v48 = vadd.f32 %v511_v6, %v308_v59  ;;  %v6420_v59 = vld [vmem:[#allocation50_spill] sm:$0xff] }
  0xfd   : > { %2609 = vpow2.f32 %v2555_v52  ;;  %v2556_v62 = vmul.f32 -1.442695, %v517_v0  ;;  %v513_v50 = vpop.f32.mrf.mxu1 }
  0xfe   : > { %v519_v58 = vadd.f32 %v513_v50, %v309_v61  ;;  %v6421_v61 = vld [vmem:[#allocation51_spill] sm:$0xff] }
  0xff   : > { %2611 = vpow2.f32 %v2556_v62 }
 0x100   : > { %v2557_v57 = vmul.f32 -1.442695, %v519_v58  ;;  %2613 = vtanh.f32 %v518_v48  ;;  %v6419_v58 = vld [vmem:[#allocation49_spill] sm:$0xff] }
 0x102   : > { %2615 = vpow2.f32 %v2557_v57 }
 0x10a   : > { %v2610_v2 = vpop.eup %2609 }
 0x10b   : > { %v523_v46 = vadd.f32 1.0, %v2610_v2  ;;  %v6422_v2 = vld [vmem:[#allocation52_spill] sm:$0xff] }
 0x10c   : > { %v2612_v11 = vpop.eup %2611 }
 0x10d   : > { %2617 = vrcp.f32 %v523_v46  ;;  %v529_v54 = vadd.f32 1.0, %v2612_v11  ;;  %v2614_v60 = vpop.eup %2613  ;;  %v6423_v11 = vld [vmem:[#allocation53_spill] sm:$0xff] }
 0x10f   : > { %2619 = vrcp.f32 %v529_v54  ;;  %v2616_v56 = vpop.eup %2615  ;;  %v6424_v54 = vld [vmem:[#allocation54_spill] sm:$0xff] }
 0x110   : > { %v536_v0 = vadd.f32 1.0, %v2616_v56  ;;  %v6426_v56 = vld [vmem:[#allocation56_spill] sm:$0xff] }
 0x112   : > { %2621 = vrcp.f32 %v536_v0  ;;  %v6429_v0 = vld [vmem:[#allocation59_spill] sm:$0xff] }
 0x11a   : > { %v2618_v52 = vpop.eup %2617 }
 0x11b   : > { %v540_v50 = vmul.f32 %v2618_v52, %v2614_v60  ;;  %v6425_v60 = vld [vmem:[#allocation55_spill] sm:$0xff]  ;;  %v6427_v52 = vld [vmem:[#allocation57_spill] sm:$0xff] }
 0x11c   : > { %v2620_v62 = vpop.eup %2619 }
 0x11d   : > { %v539_v1 = vmul.f32 %v2620_v62, %v4181_v63  ;;  %v6428_v62 = vld [vmem:[#allocation58_spill] sm:$0xff] }
 0x11f   : > { %v4184_v6 = vadd.f32 %v540_v50, %v539_v1  ;;  %v2622_v48 = vpop.eup %2621  ;;  %v6430_v1 = vld [vmem:[#allocation60_spill] sm:$0xff]  ;;  %v6431_v50 = vld [vmem:[#allocation61_spill] sm:$0xff] }
 0x121   : > { %2623 = vtanh.f32 %v4184_v6 }
 0x12e   : > { %v2624_v57 = vpop.eup %2623 }
 0x12f   : > { %v4187_v46 = vmul.f32 %v2624_v57, %v2622_v48  ;;  %v6432_v48 = vld [vmem:[#allocation62_spill] sm:$0xff]  ;;  %v6433_v57 = vld [vmem:[#allocation63_spill] sm:$0xff] }
 0x131   : > { %879 = vmatmul.mubr.f32.vlgmr.msra.gmra.mxu0 %v4187_v46  ;;  %950 = vmatmul.mubr.f32.vlgmr.msra.gmra.mxu1 %v4187_v46 }
 0x132   : > { %998 = vmatpush1.msra.mxu0 %v3017_v3  ;;  %1069 = vmatpush1.msra.mxu1 %v3071_v13  ;;  %v6374_v3 = vld [vmem:[#allocation7_spill] sm:$0xff] }
 0x133   : > { %999 = vmatprep.subr.mxu0 %v3022_v4  ;;  %1070 = vmatprep.subr.mxu1 %v3083_v15  ;;  %v6375_v4 = vld [vmem:[#allocation13_spill] sm:$0xff]  ;;  %v6382_v13 = vld [vmem:[#allocation11_spill] sm:$0xff]  ;;  %v986_v15 = vstv %s985_s14 }
 0x134   : > { %1000 = vmatpush1.msra.mxu0 %v3028_v5  ;;  %1071 = vmatpush1.msra.mxu1 %v3088_v16  ;;  %v6376_v5 = vld [vmem:[#allocation8_spill] sm:$0xff]  ;;  %vm4254_vm0 = vcmp.eq.s32.totalorder %v986_v15, 1  ;;  %v6445_v15 = vld [vmem:[#allocation75_spill] sm:$0xff] }
 0x135   : > { %1001 = vmatprep.subr.mxu0 %v3035_v7  ;;  %1072 = vmatprep.subr.mxu1 %v3100_v18  ;;  %v6377_v7 = vld [vmem:[#allocation15_spill] sm:$0xff]  ;;  %v6384_v16 = vld [vmem:[#allocation12_spill] sm:$0xff]  ;;  %v6386_v18 = vld [vmem:[#allocation14_spill] sm:$0xff] }
 0x136   : > { %1002 = vmatpush1.msra.mxu0 %v3042_v8  ;;  %1073 = vmatpush1.msra.mxu1 %v3112_v20  ;;  %v6378_v8 = vld [vmem:[#allocation9_spill] sm:$0xff]  ;;  %v6388_v20 = vld [vmem:[#allocation16_spill] sm:$0xff] }
 0x137   : > { %1003 = vmatprep.subr.mxu0 %v3048_v9  ;;  %1074 = vmatprep.subr.mxu1 %v3117_v21  ;;  %v6379_v9 = vld [vmem:[#allocation17_spill] sm:$0xff]  ;;  %v6389_v21 = vmov 0.0  }
 0x138   : > { %1004 = vmatpush1.msra.mxu0 %v3054_v10  ;;  %1075 = vmatpush1.msra.mxu1 %v3129_v23  ;;  %v6380_v10 = vld [vmem:[#allocation10_spill] sm:$0xff] }
 0x139   : > { %1005 = vmatprep.subr.mxu0 %v3065_v12  ;;  %1076 = vmatprep.subr.mxu1 %v3141_v25  ;;  %v6381_v12 = vld [vmem:[#allocation19_spill] sm:$0xff]  ;;  %v6392_v23 = vld [vmem:[#allocation26_spill] sm:$0xff] }
 0x13a   : > { %1006 = vmatpush1.msra.mxu0 %v3077_v14  ;;  %1077 = vmatpush1.msra.mxu1 %v3153_v27  ;;  %v6383_v14 = vld [vmem:[#allocation20_spill] sm:$0xff] }
 0x13b   : > { %1007 = vmatprep.subr.mxu0 %v3094_v17  ;;  %1078 = vmatprep.subr.mxu1 %v3165_v29  ;;  %v6385_v17 = vld [vmem:[#allocation22_spill] sm:$0xff]  ;;  %v6395_v27 = vld [vmem:[#allocation28_spill] sm:$0xff]  ;;  %v6397_v29 = vld [vmem:[#allocation29_spill] sm:$0xff] }
 0x13c   : > { %1008 = vmatpush1.msra.mxu0 %v3106_v19  ;;  %1079 = vmatpush1.msra.mxu1 %v3177_v31  ;;  %v6387_v19 = vld [vmem:[#allocation24_spill] sm:$0xff]  ;;  %v6399_v31 = vld [vmem:[#allocation31_spill] sm:$0xff] }
 0x13d   : > { %1009 = vmatprep.subr.mxu0 %v3123_v22  ;;  %1080 = vmatprep.subr.mxu1 %v3189_v33  ;;  %v6401_v33 = vld [vmem:[#allocation33_spill] sm:$0xff] }
 0x13e   : > { %1010 = vmatpush1.msra.mxu0 %v3135_v24  ;;  %1081 = vmatpush1.msra.mxu1 %v3201_v35  ;;  %v6393_v24 = vld [vmem:[#allocation18_spill] sm:$0xff]  ;;  %v6403_v35 = vld [vmem:[#allocation35_spill] sm:$0xff] }
 0x13f   : > { %1011 = vmatprep.subr.mxu0 %v3147_v26  ;;  %1082 = vmatprep.subr.mxu1 %v3213_v37  ;;  %v4264_v25 = vsel %vm4254_vm0, %v4187_v46, %v6393_v24  ;;  %v6394_v26 = vld [vmem:[#allocation21_spill] sm:$0xff]  ;;  %v6434_v46 = vld [vmem:[#allocation64_spill] sm:$0xff]  ;;  %v6452_v24 = vld [vmem:[#allocation82_spill] sm:$0xff] }
 0x140   : > { %1012 = vmatpush1.msra.mxu0 %v3159_v28  ;;  %1083 = vmatpush1.msra.mxu1 %v3225_v39  ;;  %v6396_v28 = vld [vmem:[#allocation23_spill] sm:$0xff]  ;;  %v6405_v37 = vld [vmem:[#allocation37_spill] sm:$0xff]  ;;  %v6407_v39 = vld [vmem:[#allocation38_spill] sm:$0xff] }
 0x141   : > { %1013 = vmatprep.subr.mxu0 %v3171_v30  ;;  %1084 = vmatprep.subr.mxu1 %v3237_v41  ;;  %v6398_v30 = vld [vmem:[#allocation25_spill] sm:$0xff]  ;;  %v6409_v41 = vld [vmem:[#allocation39_spill] sm:$0xff] }
 0x142   : > { %1014 = vmatpush1.msra.mxu0 %v3183_v32  ;;  %1085 = vmatpush1.msra.mxu1 %v3249_v43  ;;  %v6400_v32 = vld [vmem:[#allocation27_spill] sm:$0xff]  ;;  %v6411_v43 = vld [vmem:[#allocation41_spill] sm:$0xff] }
 0x143   : > { %1015 = vmatprep.subr.mxu0 %v3195_v34  ;;  %1086 = vmatprep.subr.mxu1 %v3261_v45  ;;  %v6402_v34 = vld [vmem:[#allocation30_spill] sm:$0xff]  ;;  %v6413_v45 = vld [vmem:[#allocation43_spill] sm:$0xff] }
 0x144   : > { %1016 = vmatpush1.msra.mxu0 %v3207_v36  ;;  %1087 = vmatpush1.msra.mxu1 %v3273_v47  ;;  %v6404_v36 = vld [vmem:[#allocation32_spill] sm:$0xff] }
 0x145   : > { %1017 = vmatprep.subr.mxu0 %v3219_v38  ;;  %1088 = vmatprep.subr.mxu1 %v3285_v49  ;;  %v6406_v38 = vld [vmem:[#allocation34_spill] sm:$0xff]  ;;  %v6414_v47 = vld [vmem:[#allocation44_spill] sm:$0xff]  ;;  %v6415_v49 = vld [vmem:[#allocation45_spill] sm:$0xff] }
 0x146   : > { %1018 = vmatpush1.msra.mxu0 %v3231_v40  ;;  %1089 = vmatpush1.msra.mxu1 %v3297_v51  ;;  %v6408_v40 = vld [vmem:[#allocation36_spill] sm:$0xff]  ;;  %v6416_v51 = vld [vmem:[#allocation46_spill] sm:$0xff] }
 0x147   : > { %1019 = vmatprep.subr.mxu0 %v3243_v42  ;;  %1090 = vmatprep.subr.mxu1 %v3309_v53  ;;  %v6410_v42 = vld [vmem:[#allocation40_spill] sm:$0xff]  ;;  %v6417_v53 = vld [vmem:[#allocation47_spill] sm:$0xff] }
 0x148   : > { %1020 = vmatpush1.msra.mxu0 %v3255_v44  ;;  %1091 = vmatpush1.msra.mxu1 %v3321_v55  ;;  %v6412_v44 = vld [vmem:[#allocation42_spill] sm:$0xff]  ;;  %v6418_v55 = vld [vmem:[#allocation48_spill] sm:$0xff] }
 0x149   : > { %1021 = vmatprep.subr.mxu0 %v6374_v3  ;;  %1092 = vmatprep.subr.mxu1 %v6375_v4  ;;  %v6435_v3 = vld [vmem:[#allocation65_spill] sm:$0xff]  ;;  %v6436_v4 = vld [vmem:[#allocation66_spill] sm:$0xff] }
 0x14a   : > { %1022 = vmatpush1.msra.mxu0 %v6376_v5  ;;  %1093 = vmatpush1.msra.mxu1 %v6377_v7  ;;  %v6437_v5 = vld [vmem:[#allocation67_spill] sm:$0xff]  ;;  %v6438_v7 = vld [vmem:[#allocation68_spill] sm:$0xff] }
 0x14b   : > { %1023 = vmatprep.subr.mxu0 %v6378_v8  ;;  %1094 = vmatprep.subr.mxu1 %v6379_v9  ;;  %v6439_v8 = vld [vmem:[#allocation69_spill] sm:$0xff]  ;;  %v6440_v9 = vld [vmem:[#allocation70_spill] sm:$0xff] }
 0x14c   : > { %1024 = vmatpush1.msra.mxu0 %v6380_v10  ;;  %1095 = vmatpush1.msra.mxu1 %v6381_v12  ;;  %v6441_v10 = vld [vmem:[#allocation71_spill] sm:$0xff]  ;;  %v6442_v12 = vld [vmem:[#allocation72_spill] sm:$0xff] }
 0x14d   : > { %1025 = vmatprep.subr.mxu0 %v6382_v13  ;;  %1096 = vmatprep.subr.mxu1 %v6383_v14  ;;  %v6443_v13 = vld [vmem:[#allocation73_spill] sm:$0xff]  ;;  %v6444_v14 = vld [vmem:[#allocation74_spill] sm:$0xff] }
 0x14e   : > { %1026 = vmatpush1.msra.mxu0 %v6384_v16  ;;  %1097 = vmatpush1.msra.mxu1 %v6385_v17  ;;  %v6446_v16 = vld [vmem:[#allocation76_spill] sm:$0xff]  ;;  %v6447_v17 = vld [vmem:[#allocation77_spill] sm:$0xff] }
 0x14f   : > { %1027 = vmatprep.subr.mxu0 %v6386_v18  ;;  %1098 = vmatprep.subr.mxu1 %v6387_v19  ;;  %v6448_v18 = vld [vmem:[#allocation78_spill] sm:$0xff]  ;;  %v6449_v19 = vld [vmem:[#allocation79_spill] sm:$0xff] }
 0x150   : > { %1028 = vmatpush1.msra.mxu0 %v6388_v20  ;;  %1061 = vmatprep.mubr.f32.mxu0 %v6389_v21  ;;  %v6450_v20 = vld [vmem:[#allocation80_spill] sm:$0xff] }
 0x151   : > { %1099 = vmatpush1.msra.mxu1 %v6392_v23  ;;  %1132 = vmatprep.mubr.f32.mxu1 %v6389_v21  ;;  %v6451_v23 = vld [vmem:[#allocation81_spill] sm:$0xff] }
 0x152   : > { %1062 = vmatmul.mubr.f32.vlgmr.msra.gmra.mxu0 %v4264_v25  ;;  %1133 = vmatmul.mubr.f32.vlgmr.msra.gmra.mxu1 %v4264_v25 }
 0x153   : > { %1167 = vmatprep.subr.mxu0 %v6394_v26  ;;  %1238 = vmatprep.subr.mxu1 %v6395_v27  ;;  %v6453_v26 = vld [vmem:[#allocation83_spill] sm:$0xff]  ;;  %v6454_v27 = vld [vmem:[#allocation84_spill] sm:$0xff] }
 0x154   : > { %1168 = vmatpush1.msra.mxu0 %v6396_v28  ;;  %1239 = vmatpush1.msra.mxu1 %v6397_v29  ;;  %v6455_v28 = vld [vmem:[#allocation85_spill] sm:$0xff]  ;;  %v6456_v29 = vld [vmem:[#allocation86_spill] sm:$0xff] }
 0x155   : > { %1169 = vmatprep.subr.mxu0 %v6398_v30  ;;  %1240 = vmatprep.subr.mxu1 %v6399_v31  ;;  %v6457_v30 = vld [vmem:[#allocation87_spill] sm:$0xff]  ;;  %v6458_v31 = vld [vmem:[#allocation89_spill] sm:$0xff] }
 0x156   : > { %1170 = vmatpush1.msra.mxu0 %v6400_v32  ;;  %1241 = vmatpush1.msra.mxu1 %v6401_v33  ;;  %v6459_v32 = vld [vmem:[#allocation90_spill] sm:$0xff]  ;;  %v281_v33 = vlaneseq }
 0x157   : > { %1171 = vmatprep.subr.mxu0 %v6402_v34  ;;  %1242 = vmatprep.subr.mxu1 %v6403_v35  ;;  %v738_v35 = vpop.f32.mrf.mxu0 }
 0x158   : > { %1172 = vmatpush1.msra.mxu0 %v6404_v36  ;;  %1243 = vmatpush1.msra.mxu1 %v6405_v37  ;;  %v282_v34 = vshrl.u32 %v281_v33, 7  ;;  %v279_v37 = vld [vmem:[%s5932_s4] sm:$0xf] }
 0x159   : > { %1173 = vmatprep.subr.mxu0 %v6406_v38  ;;  %1244 = vmatprep.subr.mxu1 %v6407_v39  ;;  %v809_v38 = vpop.f32.mrf.mxu1 }
 0x15a   : > { %1174 = vmatpush1.msra.mxu0 %v6408_v40  ;;  %1245 = vmatpush1.msra.mxu1 %v6409_v41  ;;  %v283_v36 = vsub.s32 0, %v282_v34  ;;  %v287_v39 = vsub.s32 1, %v282_v34  ;;  %v740_v40 = vpop.f32.mrf.mxu0 }
 0x15b   : > { %1175 = vmatprep.subr.mxu0 %v6410_v42  ;;  %1246 = vmatprep.subr.mxu1 %v6411_v43  ;;  %v811_v43 = vpop.f32.mrf.mxu1 }
 0x15c   : > { %1176 = vmatpush1.msra.mxu0 %v6412_v44  ;;  %1247 = vmatpush1.msra.mxu1 %v6413_v45  ;;  %v4339_v41 = vrot.slane %v279_v37, %v283_v36  ;;  %v4341_v45 = vrot.slane %v279_v37, %v287_v39  ;;  %v6461_v39 = vld [vmem:[#allocation88_spill] sm:$0xff] }
 0x15d   : > { %1177 = vmatprep.subr.mxu0 %v6414_v47  ;;  %1248 = vmatprep.subr.mxu1 %v6415_v49 }
 0x15e   : > { %1178 = vmatpush1.msra.mxu0 %v6416_v51  ;;  %1249 = vmatpush1.msra.mxu1 %v6417_v53  ;;  %6460 = vst [vmem:[#allocation7_spill] sm:$0xff] %v4339_v41 }
 0x15f   : > { %1179 = vmatprep.subr.mxu0 %v6418_v55  ;;  %1250 = vmatprep.subr.mxu1 %v6419_v58 }
 0x160   : > { %1180 = vmatpush1.msra.mxu0 %v6420_v59  ;;  %1251 = vmatpush1.msra.mxu1 %v6421_v61  ;;  %v295_v59 = vsub.s32 3, %v282_v34 }
 0x161   : > { %1181 = vmatprep.subr.mxu0 %v6422_v2  ;;  %1252 = vmatprep.subr.mxu1 %v6423_v11 }
 0x162   : > { %1182 = vmatpush1.msra.mxu0 %v6424_v54  ;;  %1253 = vmatpush1.msra.mxu1 %v6425_v60  ;;  %v4345_v11 = vrot.slane %v279_v37, %v295_v59  ;;  %v291_v60 = vsub.s32 2, %v282_v34  ;;  %v6472_v59 = vld [vmem:[#allocation100_spill] sm:$0xff] }
 0x163   : > { %1183 = vmatprep.subr.mxu0 %v6426_v56  ;;  %1254 = vmatprep.subr.mxu1 %v6427_v52 }
 0x164   : > { %1184 = vmatpush1.msra.mxu0 %v6428_v62  ;;  %1255 = vmatpush1.msra.mxu1 %v6429_v0  ;;  %v4348_v52 = vrot.slane %v279_v37, %v291_v60  ;;  %v6475_v60 = vld [vmem:[#allocation103_spill] sm:$0xff] }
 0x165   : > { %1185 = vmatprep.subr.mxu0 %v6430_v1  ;;  %1256 = vmatprep.subr.mxu1 %v6431_v50 }
 0x166   : > { %1186 = vmatpush1.msra.mxu0 %v6432_v48  ;;  %1257 = vmatpush1.msra.mxu1 %v6433_v57 }
 0x167   : > { %1187 = vmatprep.subr.mxu0 %v6434_v46  ;;  %1258 = vmatprep.subr.mxu1 %v6435_v3  ;;  %v2561_v3 = vld [vmem:[%s3006_s9 + $0x20] sm:$0xff] }
 0x168   : > { %1188 = vmatpush1.msra.mxu0 %v6436_v4  ;;  %1259 = vmatpush1.msra.mxu1 %v6437_v5  ;;  %v2562_v5 = vld [vmem:[%s3006_s9 + $0x28] sm:$0xff] }
 0x169   : > { %1189 = vmatprep.subr.mxu0 %v6438_v7  ;;  %1260 = vmatprep.subr.mxu1 %v6439_v8 }
 0x16a   : > { %1190 = vmatpush1.msra.mxu0 %v6440_v9  ;;  %1261 = vmatpush1.msra.mxu1 %v6441_v10 }
 0x16b   : > { %1191 = vmatprep.subr.mxu0 %v6442_v12  ;;  %1262 = vmatprep.subr.mxu1 %v6443_v13  ;;  %v4353_v12 = vld [vmem:[#allocation5] sm:$0xff] }
 0x16c   : > { %1192 = vmatpush1.msra.mxu0 %v6444_v14  ;;  %1263 = vmatpush1.msra.mxu1 %v6445_v15 }
 0x16d   : > { %1193 = vmatprep.subr.mxu0 %v6446_v16  ;;  %1264 = vmatprep.subr.mxu1 %v6447_v17 }
 0x16e   : > { %1194 = vmatpush1.msra.mxu0 %v6448_v18  ;;  %1265 = vmatpush1.msra.mxu1 %v6449_v19 }
 0x16f   : > { %1195 = vmatprep.subr.mxu0 %v6450_v20  ;;  %1266 = vmatprep.subr.mxu1 %v6451_v23 }
 0x170   : > { %1196 = vmatpush1.msra.mxu0 %v6452_v24  ;;  %1267 = vmatpush1.msra.mxu1 %v6453_v26  ;;  %v2564_v26 = vld [vmem:[%s3006_s9 + $0x38] sm:$0xff] }
 0x171   : > { %1197 = vmatprep.subr.mxu0 %v6454_v27  ;;  %1268 = vmatprep.subr.mxu1 %v6455_v28  ;;  %v2563_v28 = vld [vmem:[%s3006_s9 + $0x30] sm:$0xff] }
 0x172   : > { %1198 = vmatpush1.msra.mxu0 %v6456_v29  ;;  %1269 = vmatpush1.msra.mxu1 %v6457_v30 }
 0x173   : > { %1231 = vmatprep.mubr.f32.mxu0 %v6389_v21  ;;  %1302 = vmatprep.mubr.f32.mxu1 %v6389_v21 }
 0x174   : > { %1309 = vmatprep.subr.mxu0 %v6458_v31  ;;  %1380 = vmatprep.subr.mxu1 %v6459_v32 }
 0x1f1   : > { %v880_v42 = vpop.f32.mrf.mxu0  ;;  %v951_v51 = vpop.f32.mrf.mxu1 }
 0x1f2   : > { %v881_v44 = vadd.f32 %v880_v42, %v738_v35  ;;  %v952_v62 = vadd.f32 %v951_v51, %v809_v38  ;;  %v6463_v42 = vld [vmem:[#allocation91_spill] sm:$0xff]  ;;  %v6468_v51 = vld [vmem:[#allocation96_spill] sm:$0xff] }
 0x1f3   : > { %v882_v47 = vpop.f32.mrf.mxu0  ;;  %v953_v2 = vpop.f32.mrf.mxu1 }
 0x1f4   : > { %v956_v49 = vadd.f32 %v881_v44, %v4339_v41  ;;  %v883_v53 = vadd.f32 %v882_v47, %v740_v40  ;;  %v954_v54 = vadd.f32 %v953_v2, %v811_v43  ;;  %v958_v50 = vadd.f32 %v952_v62, %v4348_v52  ;;  %v6464_v43 = vld [vmem:[#allocation92_spill] sm:$0xff]  ;;  %v6465_v44 = vld [vmem:[#allocation93_spill] sm:$0xff]  ;;  %v6466_v47 = vld [vmem:[#allocation94_spill] sm:$0xff] }
 0x1f5   : > { %v6474_v2 = vld [vmem:[#allocation102_spill] sm:$0xff] }
 0x1f6   : > { %v2558_v55 = vmul.f32 -1.442695, %v956_v49  ;;  %v957_v58 = vadd.f32 %v883_v53, %v4341_v45  ;;  %v959_v56 = vadd.f32 %v954_v54, %v4345_v11  ;;  %v6467_v49 = vld [vmem:[#allocation95_spill] sm:$0xff]  ;;  %v6469_v53 = vld [vmem:[#allocation97_spill] sm:$0xff] }
 0x1f8   : > { %2625 = vpow2.f32 %v2558_v55  ;;  %v2559_v61 = vmul.f32 -1.442695, %v957_v58  ;;  %v2560_v0 = vmul.f32 -1.442695, %v959_v56  ;;  %v6470_v55 = vld [vmem:[#allocation98_spill] sm:$0xff]  ;;  %v6471_v58 = vld [vmem:[#allocation99_spill] sm:$0xff] }
 0x1f9   : > { %v6476_v56 = vld [vmem:[#allocation104_spill] sm:$0xff] }
 0x1fa   : > { %2627 = vpow2.f32 %v2559_v61  ;;  %v6473_v61 = vld [vmem:[#allocation101_spill] sm:$0xff] }
 0x1fb   : > { %2629 = vpow2.f32 %v2560_v0  ;;  %v6477_v0 = vld [vmem:[#allocation105_spill] sm:$0xff] }
 0x205   : > { %v2626_v1 = vpop.eup %2625 }
 0x206   : > { %v963_v48 = vadd.f32 1.0, %v2626_v1  ;;  %v6478_v1 = vld [vmem:[#allocation106_spill] sm:$0xff] }
 0x207   : > { %v2628_v57 = vpop.eup %2627 }
 0x208   : > { %2631 = vrcp.f32 %v963_v48  ;;  %v969_v46 = vadd.f32 1.0, %v2628_v57  ;;  %v2630_v8 = vpop.eup %2629  ;;  %v989_v57 = vsel %vm4254_vm0, %v4184_v6, %v4181_v63  ;;  %v6486_v63 = vld [vmem:[#allocation114_spill] sm:$0xff] }
 0x209   : > { %2633 = vtanh.f32 %v958_v50  ;;  %v976_v17 = vadd.f32 1.0, %v2630_v8  ;;  %v4391_v50 = vstv %s1481_s19  ;;  %v6481_v8 = vld [vmem:[#allocation109_spill] sm:$0xff] }
 0x20a   : > { %2635 = vrcp.f32 %v969_v46  ;;  %v6479_v46 = vld [vmem:[#allocation107_spill] sm:$0xff]  ;;  %vm1483_vm1 = vcmp.eq.s32.totalorder %v4391_v50, 1  ;;  %v5295_v50 = vld [vmem:[%s5930_s2 + $0x1d8] sm:$0xff] }
 0x212   : > { %v1063_v4 = vpop.f32.mrf.mxu0  ;;  %v1134_v24 = vpop.f32.mrf.mxu1 }
 0x213   : > { %v1139_v7 = vadd.f32 %v2561_v3, %v1063_v4  ;;  %v1141_v31 = vadd.f32 %v2563_v28, %v1134_v24  ;;  %v6480_v3 = vld [vmem:[#allocation108_spill] sm:$0xff]  ;;  %v6491_v24 = vld [vmem:[#allocation119_spill] sm:$0xff]  ;;  %v6494_v28 = vld [vmem:[#allocation122_spill] sm:$0xff] }
 0x214   : > { %v1065_v9 = vpop.f32.mrf.mxu0  ;;  %v1136_v27 = vpop.f32.mrf.mxu1 }
 0x215   : > { %v2632_v10 = vpop.eup %2631  ;;  %v2565_v13 = vmul.f32 -1.442695, %v1139_v7  ;;  %v1140_v14 = vadd.f32 %v2562_v5, %v1065_v9  ;;  %v1142_v29 = vadd.f32 %v2564_v26, %v1136_v27  ;;  %v6482_v9 = vld [vmem:[#allocation110_spill] sm:$0xff]  ;;  %v6492_v26 = vld [vmem:[#allocation120_spill] sm:$0xff]  ;;  %v6493_v27 = vld [vmem:[#allocation121_spill] sm:$0xff] }
 0x216   : > { %v2634_v15 = vpop.eup %2633 }
 0x217   : > { %v2636_v16 = vpop.eup %2635  ;;  %2637 = vpow2.f32 %v2565_v13  ;;  %v2566_v18 = vmul.f32 -1.442695, %v1140_v14  ;;  %v980_v19 = vmul.f32 %v2634_v15, %v2632_v10  ;;  %v2567_v34 = vmul.f32 -1.442695, %v1142_v29  ;;  %v6483_v10 = vld [vmem:[#allocation111_spill] sm:$0xff]  ;;  %v6484_v13 = vld [vmem:[#allocation112_spill] sm:$0xff] }
 0x218   : > { %v979_v20 = vmul.f32 %v2636_v16, %v4353_v12  ;;  %v6485_v15 = vld [vmem:[#allocation113_spill] sm:$0xff]  ;;  %v6487_v16 = vld [vmem:[#allocation115_spill] sm:$0xff] }
 0x219   : > { %2639 = vpow2.f32 %v2566_v18  ;;  %v6489_v18 = vld [vmem:[#allocation117_spill] sm:$0xff]  ;;  %v6495_v29 = vld [vmem:[#allocation123_spill] sm:$0xff] }
 0x21a   : > { %v4356_v23 = vadd.f32 %v980_v19, %v979_v20  ;;  %2641 = vrcp.f32 %v976_v17  ;;  %v6488_v17 = vld [vmem:[#allocation116_spill] sm:$0xff]  ;;  %v6490_v19 = vld [vmem:[#allocation118_spill] sm:$0xff] }
 0x21c   : > { %2643 = vtanh.f32 %v4356_v23 }
 0x224   : > { %v2638_v30 = vpop.eup %2637 }
 0x225   : > { %v1146_v32 = vadd.f32 1.0, %v2638_v30  ;;  %v6496_v30 = vld [vmem:[#allocation124_spill] sm:$0xff] }
 0x226   : > { %v2640_v33 = vpop.eup %2639 }
 0x227   : > { %2645 = vrcp.f32 %v1146_v32  ;;  %v1152_v35 = vadd.f32 1.0, %v2640_v33  ;;  %v2642_v36 = vpop.eup %2641  ;;  %v6498_v32 = vld [vmem:[#allocation126_spill] sm:$0xff]  ;;  %v6499_v33 = vld [vmem:[#allocation127_spill] sm:$0xff] }
 0x228   : > { %2647 = vtanh.f32 %v1141_v31  ;;  %v6497_v31 = vld [vmem:[#allocation125_spill] sm:$0xff] }
 0x229   : > { %v2644_v37 = vpop.eup %2643  ;;  %2649 = vrcp.f32 %v1152_v35  ;;  %v6501_v35 = vld [vmem:[#allocation129_spill] sm:$0xff] }
 0x22a   : > { %2651 = vpow2.f32 %v2567_v34  ;;  %v983_v38 = vmul.f32 %v2644_v37, %v2642_v36  ;;  %v6500_v34 = vld [vmem:[#allocation128_spill] sm:$0xff]  ;;  %v6502_v36 = vld [vmem:[#allocation130_spill] sm:$0xff]  ;;  %v6503_v37 = vld [vmem:[#allocation131_spill] sm:$0xff] }
 0x22c   : > { %v4365_v40 = vsel %vm4254_vm0, %v983_v38, %v6461_v39  ;;  %v6504_v38 = vld [vmem:[#allocation132_spill] sm:$0xff]  ;;  %v6505_v39 = vld [vmem:[#allocation133_spill] sm:$0xff] }
 0x22d   : > { %1232 = vmatmul.mubr.f32.vlgmr.msra.gmra.mxu0 %v4365_v40  ;;  %1303 = vmatmul.mubr.f32.vlgmr.msra.gmra.mxu1 %v4365_v40 }
 0x22e   : > { %1310 = vmatpush1.msra.mxu0 %v6463_v42  ;;  %1381 = vmatpush1.msra.mxu1 %v6464_v43  ;;  %v6506_v42 = vld [vmem:[#allocation134_spill] sm:$0xff]  ;;  %v6507_v43 = vld [vmem:[#allocation135_spill] sm:$0xff] }
 0x22f   : > { %1311 = vmatprep.subr.mxu0 %v6465_v44  ;;  %1382 = vmatprep.subr.mxu1 %v6466_v47  ;;  %v6508_v44 = vld [vmem:[#allocation136_spill] sm:$0xff]  ;;  %v6509_v47 = vld [vmem:[#allocation137_spill] sm:$0xff] }
 0x230   : > { %1312 = vmatpush1.msra.mxu0 %v6467_v49  ;;  %1383 = vmatpush1.msra.mxu1 %v6468_v51  ;;  %v6510_v49 = vld [vmem:[#allocation138_spill] sm:$0xff]  ;;  %v6511_v51 = vld [vmem:[#allocation139_spill] sm:$0xff] }
 0x231   : > { %1313 = vmatprep.subr.mxu0 %v6469_v53  ;;  %1384 = vmatprep.subr.mxu1 %v6470_v55  ;;  %v6512_v53 = vld [vmem:[#allocation140_spill] sm:$0xff]  ;;  %v6513_v55 = vld [vmem:[#allocation141_spill] sm:$0xff] }
 0x232   : > { %1314 = vmatpush1.msra.mxu0 %v6471_v58  ;;  %1385 = vmatpush1.msra.mxu1 %v6472_v59  ;;  %v6514_v58 = vld [vmem:[#allocation142_spill] sm:$0xff]  ;;  %v6515_v59 = vld [vmem:[#allocation143_spill] sm:$0xff] }
 0x233   : > { %1315 = vmatprep.subr.mxu0 %v6473_v61  ;;  %1386 = vmatprep.subr.mxu1 %v6474_v2  ;;  %v6516_v61 = vld [vmem:[#allocation144_spill] sm:$0xff] }
 0x234   : > { %v2646_v54 = vpop.eup %2645  ;;  %1316 = vmatpush1.msra.mxu0 %v6475_v60  ;;  %1387 = vmatpush1.msra.mxu1 %v6476_v56  ;;  %v6518_v60 = vld [vmem:[#allocation146_spill] sm:$0xff]  ;;  %v6519_v56 = vld [vmem:[#allocation147_spill] sm:$0xff] }
 0x235   : > { %v2648_v62 = vpop.eup %2647  ;;  %1317 = vmatprep.subr.mxu0 %v6477_v0  ;;  %1388 = vmatprep.subr.mxu1 %v6478_v1  ;;  %v6521_v1 = vld [vmem:[#allocation149_spill] sm:$0xff] }
 0x236   : > { %v2650_v48 = vpop.eup %2649  ;;  %1318 = vmatpush1.msra.mxu0 %v6479_v46  ;;  %1389 = vmatpush1.msra.mxu1 %v6480_v3  ;;  %v1163_v5 = vmul.f32 %v2648_v62, %v2646_v54  ;;  %v6517_v54 = vld [vmem:[#allocation145_spill] sm:$0xff]  ;;  %v6520_v62 = vld [vmem:[#allocation148_spill] sm:$0xff] }
 0x237   : > { %v2652_v4 = vpop.eup %2651  ;;  %v1162_v7 = vmul.f32 %v2650_v48, %v989_v57  ;;  %1319 = vmatprep.subr.mxu0 %v6481_v8  ;;  %1390 = vmatprep.subr.mxu1 %v6482_v9  ;;  %v6522_v48 = vld [vmem:[#allocation150_spill] sm:$0xff]  ;;  %v6524_v3 = vld [vmem:[#allocation152_spill] sm:$0xff] }
 0x238   : > { %1320 = vmatpush1.msra.mxu0 %v6483_v10  ;;  %1391 = vmatpush1.msra.mxu1 %v6484_v13  ;;  %v1159_v6 = vadd.f32 1.0, %v2652_v4  ;;  %v4457_v4 = vld [vmem:[%s5929_s1 + $0x1e8] sm:$0xff]  ;;  %v4475_v8 = vld [vmem:[%s5929_s1 + $0x1f0] sm:$0xff]  ;;  %v4487_v10 = vld [vmem:[%s5929_s1 + $0x1d8] sm:$0xff] }
 0x239   : > { %v1164_v14 = vadd.f32 %v1163_v5, %v1162_v7  ;;  %1321 = vmatprep.subr.mxu0 %v6485_v15  ;;  %1392 = vmatprep.subr.mxu1 %v6486_v63  ;;  %v4463_v5 = vld [vmem:[%s5929_s1 + $0x1f8] sm:$0xff]  ;;  %v4469_v7 = vld [vmem:[%s5929_s1 + $0x1e0] sm:$0xff]  ;;  %v4481_v9 = vld [vmem:[%s5929_s1 + $0x1c8] sm:$0xff] }
 0x23a   : > { %1322 = vmatpush1.msra.mxu0 %v6487_v16  ;;  %1393 = vmatpush1.msra.mxu1 %v6488_v17  ;;  %v4493_v13 = vld [vmem:[%s5929_s1 + $0x1c0] sm:$0xff]  ;;  %v4505_v15 = vld [vmem:[%s5929_s1 + $0x1a8] sm:$0xff]  ;;  %v4511_v63 = vld [vmem:[%s5929_s1 + $0x1b8] sm:$0xff] }
 0x23b   : > { %1323 = vmatprep.subr.mxu0 %v6489_v18  ;;  %1394 = vmatprep.subr.mxu1 %v6490_v19  ;;  %v4412_v20 = vsel %vm1483_vm1, %v1164_v14, %v989_v57  ;;  %2653 = vtanh.f32 %v1164_v14  ;;  %v6523_v57 = vld [vmem:[#allocation151_spill] sm:$0xff]  ;;  %v4499_v14 = vld [vmem:[%s5929_s1 + $0x1d0] sm:$0xff]  ;;  %v4535_v18 = vld [vmem:[%s5929_s1 + $0x198] sm:$0xff] }
 0x23c   : > { %1324 = vmatpush1.msra.mxu0 %v6491_v24  ;;  %1395 = vmatpush1.msra.mxu1 %v6492_v26  ;;  %2655 = vrcp.f32 %v1159_v6  ;;  %v4517_v6 = vld [vmem:[%s5929_s1 + $0x1a0] sm:$0xff]  ;;  %v4523_v16 = vld [vmem:[%s5929_s1 + $0x1b0] sm:$0xff]  ;;  %v4529_v17 = vld [vmem:[%s5929_s1 + $0x188] sm:$0xff] }
 0x23d   : > { %1325 = vmatprep.subr.mxu0 %v6493_v27  ;;  %1396 = vmatprep.subr.mxu1 %v6494_v28  ;;  %v4541_v19 = vld [vmem:[%s5929_s1 + $0x180] sm:$0xff]  ;;  %v4547_v24 = vld [vmem:[%s5929_s1 + $0x190] sm:$0xff]  ;;  %v4553_v26 = vld [vmem:[%s5929_s1 + $0x168] sm:$0xff] }
 0x23e   : > { %1326 = vmatpush1.msra.mxu0 %v6495_v29  ;;  %1397 = vmatpush1.msra.mxu1 %v6496_v30  ;;  %v4559_v27 = vld [vmem:[%s5929_s1 + $0x178] sm:$0xff]  ;;  %v4565_v28 = vld [vmem:[%s5929_s1 + $0x160] sm:$0xff]  ;;  %v4571_v29 = vld [vmem:[%s5929_s1 + $0x170] sm:$0xff] }
 0x23f   : > { %1327 = vmatprep.subr.mxu0 %v6497_v31  ;;  %1398 = vmatprep.subr.mxu1 %v6498_v32  ;;  %v4577_v30 = vld [vmem:[%s5929_s1 + $0x148] sm:$0xff]  ;;  %v4583_v31 = vld [vmem:[%s5929_s1 + $0x158] sm:$0xff]  ;;  %v4589_v32 = vld [vmem:[%s5929_s1 + $0x140] sm:$0xff] }
 0x240   : > { %1328 = vmatpush1.msra.mxu0 %v6499_v33  ;;  %1399 = vmatpush1.msra.mxu1 %v6500_v34  ;;  %v4595_v33 = vld [vmem:[%s5929_s1 + $0x150] sm:$0xff]  ;;  %v4601_v34 = vld [vmem:[%s5929_s1 + $0x128] sm:$0xff] }
 0x241   : > { %1329 = vmatprep.subr.mxu0 %v6501_v35  ;;  %1400 = vmatprep.subr.mxu1 %v6502_v36  ;;  %v4607_v35 = vld [vmem:[%s5929_s1 + $0x138] sm:$0xff]  ;;  %v4613_v36 = vld [vmem:[%s5929_s1 + $0x120] sm:$0xff] }
 0x242   : > { %1330 = vmatpush1.msra.mxu0 %v6503_v37  ;;  %1401 = vmatpush1.msra.mxu1 %v6504_v38  ;;  %v4619_v37 = vld [vmem:[%s5929_s1 + $0x130] sm:$0xff]  ;;  %v4625_v38 = vld [vmem:[%s5929_s1 + $0x108] sm:$0xff] }
 0x243   : > { %1331 = vmatprep.subr.mxu0 %v6505_v39  ;;  %1402 = vmatprep.subr.mxu1 %v6506_v42  ;;  %v4631_v39 = vld [vmem:[%s5929_s1 + $0x118] sm:$0xff]  ;;  %v4637_v42 = vld [vmem:[%s5929_s1 + $0x100] sm:$0xff] }
 0x244   : > { %1332 = vmatpush1.msra.mxu0 %v6507_v43  ;;  %1403 = vmatpush1.msra.mxu1 %v6508_v44  ;;  %v4643_v43 = vld [vmem:[%s5929_s1 + $0x110] sm:$0xff]  ;;  %v4649_v44 = vld [vmem:[%s5929_s1 + $0xe8] sm:$0xff] }
 0x245   : > { %1333 = vmatprep.subr.mxu0 %v6509_v47  ;;  %1404 = vmatprep.subr.mxu1 %v6510_v49  ;;  %v4655_v47 = vld [vmem:[%s5929_s1 + $0xf8] sm:$0xff]  ;;  %v4661_v49 = vld [vmem:[%s5929_s1 + $0xe0] sm:$0xff] }
 0x246   : > { %1334 = vmatpush1.msra.mxu0 %v6511_v51  ;;  %1405 = vmatpush1.msra.mxu1 %v6512_v53  ;;  %v4667_v51 = vld [vmem:[%s5929_s1 + $0xf0] sm:$0xff]  ;;  %v4673_v53 = vld [vmem:[%s5929_s1 + $0xc8] sm:$0xff] }
 0x247   : > { %1335 = vmatprep.subr.mxu0 %v6513_v55  ;;  %1406 = vmatprep.subr.mxu1 %v6514_v58  ;;  %6525 = vst [vmem:[#allocation13_spill] sm:$0xff] %v4667_v51  ;;  %6526 = vst [vmem:[#allocation8_spill] sm:$0xff] %v4673_v53  ;;  %v4679_v55 = vld [vmem:[%s5929_s1 + $0xd8] sm:$0xff]  ;;  %v4685_v58 = vld [vmem:[%s5929_s1 + $0xc0] sm:$0xff] }
 0x248   : > { %1336 = vmatpush1.msra.mxu0 %v6515_v59  ;;  %1407 = vmatpush1.msra.mxu1 %v6516_v61  ;;  %v2654_v2 = vpop.eup %2653  ;;  %6527 = vst [vmem:[#allocation15_spill] sm:$0xff] %v4679_v55  ;;  %6528 = vst [vmem:[#allocation9_spill] sm:$0xff] %v4685_v58  ;;  %v4691_v59 = vld [vmem:[%s5929_s1 + $0xd0] sm:$0xff]  ;;  %v4697_v61 = vld [vmem:[%s5929_s1 + $0xa8] sm:$0xff] }
 0x249   : > { %1337 = vmatprep.subr.mxu0 %v6517_v54  ;;  %1408 = vmatprep.subr.mxu1 %v6518_v60  ;;  %v2656_v0 = vpop.eup %2655  ;;  %6529 = vst [vmem:[#allocation17_spill] sm:$0xff] %v4691_v59  ;;  %6530 = vst [vmem:[#allocation10_spill] sm:$0xff] %v4697_v61  ;;  %v4709_v54 = vld [vmem:[%s5929_s1 + $0xa0] sm:$0xff]  ;;  %v4715_v60 = vld [vmem:[%s5929_s1 + $0xb0] sm:$0xff] }
 0x24a   : > { %1338 = vmatpush1.msra.mxu0 %v6519_v56  ;;  %1409 = vmatpush1.msra.mxu1 %v6520_v62  ;;  %v4448_v46 = vmul.f32 %v2656_v0, %v2654_v2  ;;  %v4703_v2 = vld [vmem:[%s5929_s1 + $0xb8] sm:$0xff]  ;;  %6532 = vst [vmem:[#allocation11_spill] sm:$0xff] %v4709_v54  ;;  %6533 = vst [vmem:[#allocation20_spill] sm:$0xff] %v4715_v60  ;;  %v4721_v56 = vld [vmem:[%s5929_s1 + $0x88] sm:$0xff] }
 0x24b   : > { %1339 = vmatprep.subr.mxu0 %v6521_v1  ;;  %1410 = vmatprep.subr.mxu1 %v6522_v48  ;;  %6531 = vst [vmem:[#allocation19_spill] sm:$0xff] %v4703_v2  ;;  %6534 = vst [vmem:[#allocation12_spill] sm:$0xff] %v4721_v56  ;;  %v4727_v62 = vld [vmem:[%s5929_s1 + $0x98] sm:$0xff]  ;;  %v4733_v0 = vld [vmem:[%s5929_s1 + $0x80] sm:$0xff] }
 0x24c   : > { %1340 = vmatpush1.msra.mxu0 %v6523_v57  ;;  %1373 = vmatprep.mubr.f32.mxu0 %v6389_v21  ;;  %6535 = vst [vmem:[#allocation22_spill] sm:$0xff] %v4727_v62  ;;  %6536 = vst [vmem:[#allocation14_spill] sm:$0xff] %v4733_v0  ;;  %v4739_v1 = vld [vmem:[%s5929_s1 + $0x90] sm:$0xff]  ;;  %v4745_v48 = vld [vmem:[%s5929_s1 + $0x68] sm:$0xff] }
 0x24d   : > { %1411 = vmatpush1.msra.mxu1 %v6524_v3  ;;  %1444 = vmatprep.mubr.f32.mxu1 %v6389_v21  ;;  %6537 = vst [vmem:[#allocation24_spill] sm:$0xff] %v4739_v1  ;;  %6538 = vst [vmem:[#allocation16_spill] sm:$0xff] %v4745_v48  ;;  %v4751_v57 = vld [vmem:[%s5929_s1 + $0x78] sm:$0xff]  ;;  %v4757_v3 = vld [vmem:[%s5929_s1 + $0x60] sm:$0xff] }
 0x24e   : > { %1374 = vmatmul.mubr.f32.vlgmr.msra.gmra.mxu0 %v4448_v46  ;;  %1445 = vmatmul.mubr.f32.vlgmr.msra.gmra.mxu1 %v4448_v46  ;;  %6539 = vst [vmem:[#allocation26_spill] sm:$0xff] %v4751_v57  ;;  %6540 = vst [vmem:[#allocation18_spill] sm:$0xff] %v4757_v3 }
 0x24f   : > { %1493 = vmatprep.subr.mxu0 %v4457_v4  ;;  %1564 = vmatprep.subr.mxu1 %v4463_v5 }
 0x250   : > { %1494 = vmatpush1.msra.mxu0 %v4469_v7  ;;  %1565 = vmatpush1.msra.mxu1 %v4475_v8 }
 0x251   : > { %1495 = vmatprep.subr.mxu0 %v4481_v9  ;;  %1566 = vmatprep.subr.mxu1 %v4487_v10 }
 0x252   : > { %1496 = vmatpush1.msra.mxu0 %v4493_v13  ;;  %1567 = vmatpush1.msra.mxu1 %v4499_v14 }
 0x253   : > { %1497 = vmatprep.subr.mxu0 %v4505_v15  ;;  %1568 = vmatprep.subr.mxu1 %v4511_v63 }
 0x254   : > { %1498 = vmatpush1.msra.mxu0 %v4517_v6  ;;  %1569 = vmatpush1.msra.mxu1 %v4523_v16 }
 0x255   : > { %1499 = vmatprep.subr.mxu0 %v4529_v17  ;;  %1570 = vmatprep.subr.mxu1 %v4535_v18 }
 0x256   : > { %1500 = vmatpush1.msra.mxu0 %v4541_v19  ;;  %1571 = vmatpush1.msra.mxu1 %v4547_v24 }
 0x257   : > { %1501 = vmatprep.subr.mxu0 %v4553_v26  ;;  %1572 = vmatprep.subr.mxu1 %v4559_v27 }
 0x258   : > { %1502 = vmatpush1.msra.mxu0 %v4565_v28  ;;  %1573 = vmatpush1.msra.mxu1 %v4571_v29 }
 0x259   : > { %1503 = vmatprep.subr.mxu0 %v4577_v30  ;;  %1574 = vmatprep.subr.mxu1 %v4583_v31 }
 0x25a   : > { %1504 = vmatpush1.msra.mxu0 %v4589_v32  ;;  %1575 = vmatpush1.msra.mxu1 %v4595_v33 }
 0x25b   : > { %1505 = vmatprep.subr.mxu0 %v4601_v34  ;;  %1576 = vmatprep.subr.mxu1 %v4607_v35 }
 0x25c   : > { %1506 = vmatpush1.msra.mxu0 %v4613_v36  ;;  %1577 = vmatpush1.msra.mxu1 %v4619_v37 }
 0x25d   : > { %1507 = vmatprep.subr.mxu0 %v4625_v38  ;;  %1578 = vmatprep.subr.mxu1 %v4631_v39 }
 0x25e   : > { %1508 = vmatpush1.msra.mxu0 %v4637_v42  ;;  %1579 = vmatpush1.msra.mxu1 %v4643_v43 }
 0x25f   : > { %1509 = vmatprep.subr.mxu0 %v4649_v44  ;;  %1580 = vmatprep.subr.mxu1 %v4655_v47 }
 0x260   : > { %1510 = vmatpush1.msra.mxu0 %v4661_v49  ;;  %1581 = vmatpush1.msra.mxu1 %v4667_v51 }
 0x261   : > { %1511 = vmatprep.subr.mxu0 %v4673_v53  ;;  %1582 = vmatprep.subr.mxu1 %v4679_v55 }
 0x262   : > { %1512 = vmatpush1.msra.mxu0 %v4685_v58  ;;  %1583 = vmatpush1.msra.mxu1 %v4691_v59 }
 0x263   : > { %1513 = vmatprep.subr.mxu0 %v4697_v61  ;;  %1584 = vmatprep.subr.mxu1 %v4703_v2 }
 0x264   : > { %1514 = vmatpush1.msra.mxu0 %v4709_v54  ;;  %1585 = vmatpush1.msra.mxu1 %v4715_v60 }
 0x265   : > { %1515 = vmatprep.subr.mxu0 %v4721_v56  ;;  %1586 = vmatprep.subr.mxu1 %v4727_v62 }
 0x266   : > { %1516 = vmatpush1.msra.mxu0 %v4733_v0  ;;  %1587 = vmatpush1.msra.mxu1 %v4739_v1  ;;  %v4763_v1 = vld [vmem:[%s5929_s1 + $0x70] sm:$0xff] }
 0x267   : > { %1517 = vmatprep.subr.mxu0 %v4745_v48  ;;  %1588 = vmatprep.subr.mxu1 %v4751_v57  ;;  %6541 = vst [vmem:[#allocation21_spill] sm:$0xff] %v4763_v1  ;;  %v4769_v48 = vld [vmem:[%s5929_s1 + $0x48] sm:$0xff]  ;;  %v4775_v57 = vld [vmem:[%s5929_s1 + $0x58] sm:$0xff] }
 0x268   : > { %1518 = vmatpush1.msra.mxu0 %v4757_v3  ;;  %1589 = vmatpush1.msra.mxu1 %v4763_v1  ;;  %6542 = vst [vmem:[#allocation28_spill] sm:$0xff] %v4769_v48  ;;  %6543 = vst [vmem:[#allocation23_spill] sm:$0xff] %v4775_v57  ;;  %v4781_v3 = vld [vmem:[%s5929_s1 + $0x40] sm:$0xff]  ;;  %v4787_v1 = vld [vmem:[%s5929_s1 + $0x50] sm:$0xff] }
 0x269   : > { %1519 = vmatprep.subr.mxu0 %v4769_v48  ;;  %1590 = vmatprep.subr.mxu1 %v4775_v57  ;;  %6544 = vst [vmem:[#allocation29_spill] sm:$0xff] %v4781_v3  ;;  %6545 = vst [vmem:[#allocation25_spill] sm:$0xff] %v4787_v1  ;;  %v4793_v48 = vld [vmem:[%s5929_s1 + $0x28] sm:$0xff]  ;;  %v4799_v57 = vld [vmem:[%s5929_s1 + $0x38] sm:$0xff] }
 0x26a   : > { %1520 = vmatpush1.msra.mxu0 %v4781_v3  ;;  %1591 = vmatpush1.msra.mxu1 %v4787_v1  ;;  %6546 = vst [vmem:[#allocation31_spill] sm:$0xff] %v4793_v48  ;;  %6547 = vst [vmem:[#allocation27_spill] sm:$0xff] %v4799_v57  ;;  %v4805_v3 = vld [vmem:[%s5929_s1 + $0x20] sm:$0xff]  ;;  %v4811_v1 = vld [vmem:[%s5929_s1 + $0x30] sm:$0xff] }
 0x26b   : > { %1521 = vmatprep.subr.mxu0 %v4793_v48  ;;  %1592 = vmatprep.subr.mxu1 %v4799_v57  ;;  %6548 = vst [vmem:[#allocation33_spill] sm:$0xff] %v4805_v3  ;;  %6549 = vst [vmem:[#allocation30_spill] sm:$0xff] %v4811_v1  ;;  %v4817_v48 = vld [vmem:[%s5929_s1 + $0x8] sm:$0xff]  ;;  %v4823_v57 = vld [vmem:[%s5929_s1 + $0x18] sm:$0xff] }
 0x26c   : > { %1522 = vmatpush1.msra.mxu0 %v4805_v3  ;;  %1593 = vmatpush1.msra.mxu1 %v4811_v1  ;;  %6550 = vst [vmem:[#allocation35_spill] sm:$0xff] %v4817_v48  ;;  %6551 = vst [vmem:[#allocation32_spill] sm:$0xff] %v4823_v57  ;;  %v4829_v3 = vld [vmem:[%s5929_s1] sm:$0xff] }
 0x26d   : > { %1523 = vmatprep.subr.mxu0 %v4817_v48  ;;  %1594 = vmatprep.subr.mxu1 %v4823_v57  ;;  %6552 = vst [vmem:[#allocation37_spill] sm:$0xff] %v4829_v3  ;;  %v4836_v48 = vld [vmem:[%s5929_s1 + $0x10] sm:$0xff]  ;;  %v4844_v57 = vsel %vm1483_vm1, %v4448_v46, %v4264_v25  ;;  %v4863_v25 = vld [vmem:[%s5931_s3 + $0x1e0] sm:$0xff] }
 0x26e   : > { %1524 = vmatpush1.msra.mxu0 %v4829_v3  ;;  %1557 = vmatprep.mubr.f32.mxu0 %v6389_v21  ;;  %6553 = vst [vmem:[#allocation34_spill] sm:$0xff] %v4836_v48  ;;  %6554 = vst [vmem:[#allocation38_spill] sm:$0xff] %v4844_v57  ;;  %v4851_v3 = vld [vmem:[%s5931_s3 + $0x1e8] sm:$0xff]  ;;  %v4869_v46 = vld [vmem:[%s5931_s3 + $0x1f0] sm:$0xff] }
 0x26f   : > { %1595 = vmatpush1.msra.mxu1 %v4836_v48  ;;  %1628 = vmatprep.mubr.f32.mxu1 %v6389_v21  ;;  %6555 = vst [vmem:[#allocation36_spill] sm:$0xff] %v4851_v3  ;;  %v4857_v48 = vld [vmem:[%s5931_s3 + $0x1f8] sm:$0xff]  ;;  %6557 = vst [vmem:[#allocation40_spill] sm:$0xff] %v4863_v25 }
 0x270   : > { %1558 = vmatmul.mubr.f32.vlgmr.msra.gmra.mxu0 %v4844_v57  ;;  %1629 = vmatmul.mubr.f32.vlgmr.msra.gmra.mxu1 %v4844_v57  ;;  %6556 = vst [vmem:[#allocation39_spill] sm:$0xff] %v4857_v48  ;;  %6558 = vst [vmem:[#allocation41_spill] sm:$0xff] %v4869_v46 }
 0x271   : > { %1663 = vmatprep.subr.mxu0 %v4851_v3  ;;  %1734 = vmatprep.subr.mxu1 %v4857_v48  ;;  %v4875_v3 = vld [vmem:[%s5931_s3 + $0x1c8] sm:$0xff]  ;;  %v4881_v48 = vld [vmem:[%s5931_s3 + $0x1d8] sm:$0xff] }
 0x272   : > { %1664 = vmatpush1.msra.mxu0 %v4863_v25  ;;  %1735 = vmatpush1.msra.mxu1 %v4869_v46  ;;  %6559 = vst [vmem:[#allocation42_spill] sm:$0xff] %v4875_v3  ;;  %6560 = vst [vmem:[#allocation43_spill] sm:$0xff] %v4881_v48  ;;  %v4887_v25 = vld [vmem:[%s5931_s3 + $0x1c0] sm:$0xff]  ;;  %v4893_v46 = vld [vmem:[%s5931_s3 + $0x1d0] sm:$0xff] }
 0x273   : > { %1665 = vmatprep.subr.mxu0 %v4875_v3  ;;  %1736 = vmatprep.subr.mxu1 %v4881_v48  ;;  %6561 = vst [vmem:[#allocation44_spill] sm:$0xff] %v4887_v25  ;;  %6562 = vst [vmem:[#allocation45_spill] sm:$0xff] %v4893_v46  ;;  %v4899_v3 = vld [vmem:[%s5931_s3 + $0x1a8] sm:$0xff]  ;;  %v4905_v48 = vld [vmem:[%s5931_s3 + $0x1b8] sm:$0xff] }
 0x274   : > { %1666 = vmatpush1.msra.mxu0 %v4887_v25  ;;  %1737 = vmatpush1.msra.mxu1 %v4893_v46  ;;  %6563 = vst [vmem:[#allocation46_spill] sm:$0xff] %v4899_v3  ;;  %6564 = vst [vmem:[#allocation47_spill] sm:$0xff] %v4905_v48  ;;  %v4911_v25 = vld [vmem:[%s5931_s3 + $0x1a0] sm:$0xff]  ;;  %v4917_v46 = vld [vmem:[%s5931_s3 + $0x1b0] sm:$0xff] }
 0x275   : > { %1667 = vmatprep.subr.mxu0 %v4899_v3  ;;  %1738 = vmatprep.subr.mxu1 %v4905_v48  ;;  %6565 = vst [vmem:[#allocation48_spill] sm:$0xff] %v4911_v25  ;;  %6566 = vst [vmem:[#allocation49_spill] sm:$0xff] %v4917_v46  ;;  %v4923_v3 = vld [vmem:[%s5931_s3 + $0x188] sm:$0xff]  ;;  %v4929_v48 = vld [vmem:[%s5931_s3 + $0x198] sm:$0xff] }
 0x276   : > { %1668 = vmatpush1.msra.mxu0 %v4911_v25  ;;  %1739 = vmatpush1.msra.mxu1 %v4917_v46  ;;  %6567 = vst [vmem:[#allocation50_spill] sm:$0xff] %v4923_v3  ;;  %6568 = vst [vmem:[#allocation51_spill] sm:$0xff] %v4929_v48  ;;  %v4935_v25 = vld [vmem:[%s5931_s3 + $0x180] sm:$0xff]  ;;  %v4941_v46 = vld [vmem:[%s5931_s3 + $0x190] sm:$0xff] }
 0x277   : > { %1669 = vmatprep.subr.mxu0 %v4923_v3  ;;  %1740 = vmatprep.subr.mxu1 %v4929_v48  ;;  %6569 = vst [vmem:[#allocation52_spill] sm:$0xff] %v4935_v25  ;;  %6570 = vst [vmem:[#allocation53_spill] sm:$0xff] %v4941_v46  ;;  %v4947_v3 = vld [vmem:[%s5931_s3 + $0x168] sm:$0xff]  ;;  %v4953_v48 = vld [vmem:[%s5931_s3 + $0x178] sm:$0xff] }
 0x278   : > { %1670 = vmatpush1.msra.mxu0 %v4935_v25  ;;  %1741 = vmatpush1.msra.mxu1 %v4941_v46  ;;  %6571 = vst [vmem:[#allocation54_spill] sm:$0xff] %v4947_v3  ;;  %6572 = vst [vmem:[#allocation55_spill] sm:$0xff] %v4953_v48  ;;  %v4959_v25 = vld [vmem:[%s5931_s3 + $0x160] sm:$0xff]  ;;  %v4965_v46 = vld [vmem:[%s5931_s3 + $0x170] sm:$0xff] }
 0x279   : > { %1671 = vmatprep.subr.mxu0 %v4947_v3  ;;  %1742 = vmatprep.subr.mxu1 %v4953_v48  ;;  %6573 = vst [vmem:[#allocation56_spill] sm:$0xff] %v4959_v25  ;;  %6574 = vst [vmem:[#allocation57_spill] sm:$0xff] %v4965_v46  ;;  %v4971_v3 = vld [vmem:[%s5931_s3 + $0x148] sm:$0xff]  ;;  %v4977_v48 = vld [vmem:[%s5931_s3 + $0x158] sm:$0xff] }
 0x27a   : > { %1672 = vmatpush1.msra.mxu0 %v4959_v25  ;;  %1743 = vmatpush1.msra.mxu1 %v4965_v46  ;;  %6575 = vst [vmem:[#allocation58_spill] sm:$0xff] %v4971_v3  ;;  %6576 = vst [vmem:[#allocation59_spill] sm:$0xff] %v4977_v48  ;;  %v4983_v25 = vld [vmem:[%s5931_s3 + $0x140] sm:$0xff]  ;;  %v4989_v46 = vld [vmem:[%s5931_s3 + $0x150] sm:$0xff] }
 0x27b   : > { %1673 = vmatprep.subr.mxu0 %v4971_v3  ;;  %1744 = vmatprep.subr.mxu1 %v4977_v48  ;;  %6577 = vst [vmem:[#allocation60_spill] sm:$0xff] %v4983_v25  ;;  %6578 = vst [vmem:[#allocation61_spill] sm:$0xff] %v4989_v46  ;;  %v4995_v3 = vld [vmem:[%s5931_s3 + $0x128] sm:$0xff]  ;;  %v5001_v48 = vld [vmem:[%s5931_s3 + $0x138] sm:$0xff] }
 0x27c   : > { %1674 = vmatpush1.msra.mxu0 %v4983_v25  ;;  %1745 = vmatpush1.msra.mxu1 %v4989_v46  ;;  %6579 = vst [vmem:[#allocation62_spill] sm:$0xff] %v4995_v3  ;;  %6580 = vst [vmem:[#allocation63_spill] sm:$0xff] %v5001_v48  ;;  %v5007_v25 = vld [vmem:[%s5931_s3 + $0x120] sm:$0xff]  ;;  %v5013_v46 = vld [vmem:[%s5931_s3 + $0x130] sm:$0xff] }
 0x27d   : > { %1675 = vmatprep.subr.mxu0 %v4995_v3  ;;  %1746 = vmatprep.subr.mxu1 %v5001_v48  ;;  %6581 = vst [vmem:[#allocation64_spill] sm:$0xff] %v5007_v25  ;;  %6582 = vst [vmem:[#allocation65_spill] sm:$0xff] %v5013_v46  ;;  %v5019_v3 = vld [vmem:[%s5931_s3 + $0x108] sm:$0xff]  ;;  %v5025_v48 = vld [vmem:[%s5931_s3 + $0x118] sm:$0xff] }
 0x27e   : > { %1676 = vmatpush1.msra.mxu0 %v5007_v25  ;;  %1747 = vmatpush1.msra.mxu1 %v5013_v46  ;;  %6583 = vst [vmem:[#allocation66_spill] sm:$0xff] %v5019_v3  ;;  %6584 = vst [vmem:[#allocation67_spill] sm:$0xff] %v5025_v48  ;;  %v5031_v25 = vld [vmem:[%s5931_s3 + $0x100] sm:$0xff]  ;;  %v5037_v46 = vld [vmem:[%s5931_s3 + $0x110] sm:$0xff] }
 0x27f   : > { %1677 = vmatprep.subr.mxu0 %v5019_v3  ;;  %1748 = vmatprep.subr.mxu1 %v5025_v48  ;;  %6585 = vst [vmem:[#allocation68_spill] sm:$0xff] %v5031_v25  ;;  %6586 = vst [vmem:[#allocation69_spill] sm:$0xff] %v5037_v46  ;;  %v5043_v3 = vld [vmem:[%s5931_s3 + $0xe8] sm:$0xff]  ;;  %v5049_v48 = vld [vmem:[%s5931_s3 + $0xf8] sm:$0xff] }
 0x280   : > { %1678 = vmatpush1.msra.mxu0 %v5031_v25  ;;  %1749 = vmatpush1.msra.mxu1 %v5037_v46  ;;  %6587 = vst [vmem:[#allocation70_spill] sm:$0xff] %v5043_v3  ;;  %6588 = vst [vmem:[#allocation71_spill] sm:$0xff] %v5049_v48  ;;  %v5055_v25 = vld [vmem:[%s5931_s3 + $0xe0] sm:$0xff]  ;;  %v5061_v46 = vld [vmem:[%s5931_s3 + $0xf0] sm:$0xff] }
 0x281   : > { %1679 = vmatprep.subr.mxu0 %v5043_v3  ;;  %1750 = vmatprep.subr.mxu1 %v5049_v48  ;;  %6589 = vst [vmem:[#allocation72_spill] sm:$0xff] %v5055_v25  ;;  %6590 = vst [vmem:[#allocation73_spill] sm:$0xff] %v5061_v46  ;;  %v5067_v3 = vld [vmem:[%s5931_s3 + $0xc8] sm:$0xff]  ;;  %v5073_v48 = vld [vmem:[%s5931_s3 + $0xd8] sm:$0xff] }
 0x282   : > { %1680 = vmatpush1.msra.mxu0 %v5055_v25  ;;  %1751 = vmatpush1.msra.mxu1 %v5061_v46  ;;  %6591 = vst [vmem:[#allocation74_spill] sm:$0xff] %v5067_v3  ;;  %6592 = vst [vmem:[#allocation75_spill] sm:$0xff] %v5073_v48  ;;  %v5079_v25 = vld [vmem:[%s5931_s3 + $0xc0] sm:$0xff]  ;;  %v5085_v46 = vld [vmem:[%s5931_s3 + $0xd0] sm:$0xff] }
 0x283   : > { %1681 = vmatprep.subr.mxu0 %v5067_v3  ;;  %1752 = vmatprep.subr.mxu1 %v5073_v48  ;;  %6593 = vst [vmem:[#allocation76_spill] sm:$0xff] %v5079_v25  ;;  %6594 = vst [vmem:[#allocation77_spill] sm:$0xff] %v5085_v46  ;;  %v5091_v3 = vld [vmem:[%s5931_s3 + $0xa8] sm:$0xff]  ;;  %v5097_v48 = vld [vmem:[%s5931_s3 + $0xb8] sm:$0xff] }
 0x284   : > { %1682 = vmatpush1.msra.mxu0 %v5079_v25  ;;  %1753 = vmatpush1.msra.mxu1 %v5085_v46  ;;  %6595 = vst [vmem:[#allocation78_spill] sm:$0xff] %v5091_v3  ;;  %6596 = vst [vmem:[#allocation79_spill] sm:$0xff] %v5097_v48  ;;  %v5103_v25 = vld [vmem:[%s5931_s3 + $0xa0] sm:$0xff]  ;;  %v5109_v46 = vld [vmem:[%s5931_s3 + $0xb0] sm:$0xff] }
 0x285   : > { %1683 = vmatprep.subr.mxu0 %v5091_v3  ;;  %1754 = vmatprep.subr.mxu1 %v5097_v48  ;;  %6597 = vst [vmem:[#allocation80_spill] sm:$0xff] %v5103_v25  ;;  %6598 = vst [vmem:[#allocation81_spill] sm:$0xff] %v5109_v46  ;;  %v5115_v3 = vld [vmem:[%s5931_s3 + $0x88] sm:$0xff]  ;;  %v5121_v48 = vld [vmem:[%s5931_s3 + $0x98] sm:$0xff] }
 0x286   : > { %1684 = vmatpush1.msra.mxu0 %v5103_v25  ;;  %1755 = vmatpush1.msra.mxu1 %v5109_v46  ;;  %6599 = vst [vmem:[#allocation82_spill] sm:$0xff] %v5115_v3  ;;  %6600 = vst [vmem:[#allocation83_spill] sm:$0xff] %v5121_v48  ;;  %v5127_v25 = vld [vmem:[%s5931_s3 + $0x80] sm:$0xff]  ;;  %v5133_v46 = vld [vmem:[%s5931_s3 + $0x90] sm:$0xff] }
 0x287   : > { %1685 = vmatprep.subr.mxu0 %v5115_v3  ;;  %1756 = vmatprep.subr.mxu1 %v5121_v48  ;;  %6601 = vst [vmem:[#allocation84_spill] sm:$0xff] %v5127_v25  ;;  %6602 = vst [vmem:[#allocation85_spill] sm:$0xff] %v5133_v46  ;;  %v5139_v3 = vld [vmem:[%s5931_s3 + $0x68] sm:$0xff]  ;;  %v5145_v48 = vld [vmem:[%s5931_s3 + $0x78] sm:$0xff] }
 0x288   : > { %1686 = vmatpush1.msra.mxu0 %v5127_v25  ;;  %1757 = vmatpush1.msra.mxu1 %v5133_v46  ;;  %6603 = vst [vmem:[#allocation86_spill] sm:$0xff] %v5139_v3  ;;  %6604 = vst [vmem:[#allocation87_spill] sm:$0xff] %v5145_v48  ;;  %v5151_v25 = vld [vmem:[%s5931_s3 + $0x60] sm:$0xff]  ;;  %v5157_v46 = vld [vmem:[%s5931_s3 + $0x70] sm:$0xff] }
 0x289   : > { %1687 = vmatprep.subr.mxu0 %v5139_v3  ;;  %1758 = vmatprep.subr.mxu1 %v5145_v48  ;;  %6605 = vst [vmem:[#allocation89_spill] sm:$0xff] %v5151_v25  ;;  %6606 = vst [vmem:[#allocation90_spill] sm:$0xff] %v5157_v46  ;;  %v5163_v3 = vld [vmem:[%s5931_s3 + $0x48] sm:$0xff]  ;;  %v5169_v48 = vld [vmem:[%s5931_s3 + $0x58] sm:$0xff] }
 0x28a   : > { %1688 = vmatpush1.msra.mxu0 %v5151_v25  ;;  %1759 = vmatpush1.msra.mxu1 %v5157_v46  ;;  %6607 = vst [vmem:[#allocation88_spill] sm:$0xff] %v5163_v3  ;;  %6608 = vst [vmem:[#allocation91_spill] sm:$0xff] %v5169_v48  ;;  %v5175_v25 = vld [vmem:[%s5931_s3 + $0x40] sm:$0xff]  ;;  %v5181_v46 = vld [vmem:[%s5931_s3 + $0x50] sm:$0xff] }
 0x28b   : > { %1689 = vmatprep.subr.mxu0 %v5163_v3  ;;  %1760 = vmatprep.subr.mxu1 %v5169_v48  ;;  %6609 = vst [vmem:[#allocation92_spill] sm:$0xff] %v5175_v25  ;;  %6610 = vst [vmem:[#allocation93_spill] sm:$0xff] %v5181_v46  ;;  %v5187_v3 = vld [vmem:[%s5931_s3 + $0x28] sm:$0xff]  ;;  %v5193_v48 = vld [vmem:[%s5931_s3 + $0x38] sm:$0xff] }
 0x28c   : > { %1690 = vmatpush1.msra.mxu0 %v5175_v25  ;;  %1761 = vmatpush1.msra.mxu1 %v5181_v46  ;;  %6611 = vst [vmem:[#allocation94_spill] sm:$0xff] %v5187_v3  ;;  %6612 = vst [vmem:[#allocation95_spill] sm:$0xff] %v5193_v48  ;;  %v5199_v25 = vld [vmem:[%s5931_s3 + $0x20] sm:$0xff]  ;;  %v5205_v46 = vld [vmem:[%s5931_s3 + $0x30] sm:$0xff] }
 0x28d   : > { %1691 = vmatprep.subr.mxu0 %v5187_v3  ;;  %1762 = vmatprep.subr.mxu1 %v5193_v48  ;;  %6613 = vst [vmem:[#allocation96_spill] sm:$0xff] %v5199_v25  ;;  %6614 = vst [vmem:[#allocation97_spill] sm:$0xff] %v5205_v46  ;;  %v5211_v3 = vld [vmem:[%s5931_s3 + $0x8] sm:$0xff]  ;;  %v5217_v48 = vld [vmem:[%s5931_s3 + $0x18] sm:$0xff] }
 0x28e   : > { %1692 = vmatpush1.msra.mxu0 %v5199_v25  ;;  %1763 = vmatpush1.msra.mxu1 %v5205_v46  ;;  %6615 = vst [vmem:[#allocation98_spill] sm:$0xff] %v5211_v3  ;;  %6616 = vst [vmem:[#allocation99_spill] sm:$0xff] %v5217_v48  ;;  %v5223_v25 = vld [vmem:[%s5931_s3] sm:$0xff]  ;;  %v5229_v46 = vld [vmem:[%s5931_s3 + $0x10] sm:$0xff] }
 0x28f   : > { %1693 = vmatprep.subr.mxu0 %v5211_v3  ;;  %1764 = vmatprep.subr.mxu1 %v5217_v48  ;;  %6617 = vst [vmem:[#allocation100_spill] sm:$0xff] %v5223_v25  ;;  %6618 = vst [vmem:[#allocation101_spill] sm:$0xff] %v5229_v46  ;;  %v5237_v48 = vld [vmem:[%s5930_s2 + $0x1e8] sm:$0xff] }
 0x290   : > { %1694 = vmatpush1.msra.mxu0 %v5223_v25  ;;  %1765 = vmatpush1.msra.mxu1 %v5229_v46  ;;  %6619 = vst [vmem:[#allocation102_spill] sm:$0xff] %v5237_v48  ;;  %v5243_v25 = vld [vmem:[%s5930_s2 + $0x1f8] sm:$0xff] }
 0x291   : > { %1727 = vmatprep.mubr.f32.mxu0 %v6389_v21  ;;  %1798 = vmatprep.mubr.f32.mxu1 %v6389_v21  ;;  %6620 = vst [vmem:[#allocation103_spill] sm:$0xff] %v5243_v25 }
 0x292   : > { %1805 = vmatprep.subr.mxu0 %v5237_v48  ;;  %1876 = vmatprep.subr.mxu1 %v5243_v25 }
 0x2ed   : > { %v1233_v3 = vpop.f32.mrf.mxu0  ;;  %v1304_v46 = vpop.f32.mrf.mxu1 }
 0x2ef   : > { %v1235_v57 = vpop.f32.mrf.mxu0  ;;  %v1306_v0 = vpop.f32.mrf.mxu1 }
 0x30e   : > { %v1375_v1 = vpop.f32.mrf.mxu0  ;;  %v1446_v54 = vpop.f32.mrf.mxu1 }
 0x30f   : > { %v1376_v62 = vadd.f32 %v1375_v1, %v1233_v3  ;;  %v1447_v53 = vadd.f32 %v1446_v54, %v1304_v46 }
 0x310   : > { %v1377_v56 = vpop.f32.mrf.mxu0  ;;  %v1448_v58 = vpop.f32.mrf.mxu1 }
 0x311   : > { %v1451_v60 = vadd.f32 %v1376_v62, %v4339_v41  ;;  %v1378_v2 = vadd.f32 %v1377_v56, %v1235_v57  ;;  %v1449_v25 = vadd.f32 %v1448_v58, %v1306_v0  ;;  %v1453_v3 = vadd.f32 %v1447_v53, %v4348_v52  ;;  %v2572_v56 = vld [vmem:[%s3006_s9 + $0x48] sm:$0xff] }
 0x313   : > { %v2568_v61 = vmul.f32 -1.442695, %v1451_v60  ;;  %v1452_v48 = vadd.f32 %v1378_v2, %v4341_v45  ;;  %v1454_v55 = vadd.f32 %v1449_v25, %v4345_v11 }
 0x315   : > { %2657 = vpow2.f32 %v2568_v61  ;;  %v2569_v59 = vmul.f32 -1.442695, %v1452_v48  ;;  %v2570_v51 = vmul.f32 -1.442695, %v1454_v55  ;;  %v2571_v61 = vld [vmem:[%s3006_s9 + $0x40] sm:$0xff] }
 0x317   : > { %2659 = vpow2.f32 %v2569_v59 }
 0x318   : > { %2661 = vpow2.f32 %v2570_v51 }
 0x322   : > { %v2658_v1 = vpop.eup %2657 }
 0x323   : > { %v1458_v62 = vadd.f32 1.0, %v2658_v1 }
 0x324   : > { %v2660_v41 = vpop.eup %2659 }
 0x325   : > { %2663 = vrcp.f32 %v1458_v62  ;;  %v1464_v60 = vadd.f32 1.0, %v2660_v41  ;;  %v2662_v59 = vpop.eup %2661  ;;  %v991_v41 = vsel %vm4254_vm0, %v4356_v23, %v4353_v12 }
 0x326   : > { %2665 = vtanh.f32 %v1453_v3  ;;  %v1471_v51 = vadd.f32 1.0, %v2662_v59 }
 0x327   : > { %2667 = vrcp.f32 %v1464_v60 }
 0x330   : > { %v1559_v2 = vpop.f32.mrf.mxu0  ;;  %v1630_v62 = vpop.f32.mrf.mxu1 }
 0x331   : > { %v1635_v48 = vadd.f32 %v2571_v61, %v1559_v2  ;;  %v2574_v61 = vld [vmem:[%s3006_s9 + $0x58] sm:$0xff] }
 0x332   : > { %v2664_v58 = vpop.eup %2663  ;;  %v1561_v0 = vpop.f32.mrf.mxu0 }
 0x333   : > { %v2666_v57 = vpop.eup %2665  ;;  %v2575_v55 = vmul.f32 -1.442695, %v1635_v48  ;;  %v1636_v54 = vadd.f32 %v2572_v56, %v1561_v0  ;;  %v1632_v2 = vpop.f32.mrf.mxu1  ;;  %v2573_v56 = vld [vmem:[%s3006_s9 + $0x50] sm:$0xff] }
 0x334   : > { %v2668_v53 = vpop.eup %2667  ;;  %v1475_v25 = vmul.f32 %v2666_v57, %v2664_v58  ;;  %v1638_v22 = vadd.f32 %v2574_v61, %v1632_v2  ;;  %v1637_v12 = vadd.f32 %v2573_v56, %v1630_v62  ;;  %v5325_v62 = vld [vmem:[%s5930_s2 + $0x1a0] sm:$0xff]  ;;  %v5331_v61 = vld [vmem:[%s5930_s2 + $0x1b0] sm:$0xff]  ;;  %v5339_v2 = vld [vmem:[%s5930_s2 + $0x188] sm:$0xff] }
 0x335   : > { %v1474_v46 = vmul.f32 %v2668_v53, %v991_v41  ;;  %2669 = vpow2.f32 %v2575_v55  ;;  %v2576_v1 = vmul.f32 -1.442695, %v1636_v54  ;;  %v5345_v56 = vld [vmem:[%s5930_s2 + $0x198] sm:$0xff] }
 0x336   : > { %v2577_v59 = vmul.f32 -1.442695, %v1638_v22 }
 0x337   : > { %v1476_v3 = vadd.f32 %v1475_v25, %v1474_v46  ;;  %2671 = vpow2.f32 %v2576_v1  ;;  %v5301_v25 = vld [vmem:[%s5930_s2 + $0x1c0] sm:$0xff]  ;;  %v5307_v46 = vld [vmem:[%s5930_s2 + $0x1d0] sm:$0xff]  ;;  %v5313_v1 = vld [vmem:[%s5930_s2 + $0x1a8] sm:$0xff] }
 0x338   : > { %2673 = vrcp.f32 %v1471_v51  ;;  %v5279_v51 = vld [vmem:[%s5930_s2 + $0x1f0] sm:$0xff] }
 0x339   : > { %2675 = vtanh.f32 %v1476_v3  ;;  %v5258_v60 = vsel %vm1483_vm1, %v1476_v3, %v991_v41  ;;  %v5273_v41 = vld [vmem:[%s5930_s2 + $0x1e0] sm:$0xff]  ;;  %v5319_v3 = vld [vmem:[%s5930_s2 + $0x1b8] sm:$0xff] }
 0x33a   : > { %2677 = vtanh.f32 %v1637_v12  ;;  %v5351_v12 = vld [vmem:[%s5930_s2 + $0x180] sm:$0xff] }
 0x33b   : > { %6622 = vst [vmem:[#allocation104_spill] sm:$0xff] %v5351_v12 }
 0x342   : > { %v2670_v23 = vpop.eup %2669 }
 0x343   : > { %v1642_v48 = vadd.f32 1.0, %v2670_v23  ;;  %v5357_v23 = vld [vmem:[%s5930_s2 + $0x190] sm:$0xff] }
 0x344   : > { %v2672_v58 = vpop.eup %2671  ;;  %6623 = vst [vmem:[#allocation105_spill] sm:$0xff] %v5357_v23 }
 0x345   : > { %v2674_v0 = vpop.eup %2673  ;;  %2679 = vrcp.f32 %v1642_v48  ;;  %v1648_v57 = vadd.f32 1.0, %v2672_v58  ;;  %v5363_v48 = vld [vmem:[%s5930_s2 + $0x168] sm:$0xff]  ;;  %v5369_v58 = vld [vmem:[%s5930_s2 + $0x178] sm:$0xff] }
 0x346   : > { %v2676_v55 = vpop.eup %2675  ;;  %2681 = vpow2.f32 %v2577_v59  ;;  %6624 = vst [vmem:[#allocation106_spill] sm:$0xff] %v5363_v48  ;;  %6625 = vst [vmem:[#allocation107_spill] sm:$0xff] %v5369_v58 }
 0x347   : > { %2683 = vrcp.f32 %v1648_v57  ;;  %v1478_v54 = vmul.f32 %v2676_v55, %v2674_v0  ;;  %v2678_v22 = vpop.eup %2677  ;;  %v5375_v57 = vld [vmem:[%s5930_s2 + $0x160] sm:$0xff]  ;;  %v5381_v55 = vld [vmem:[%s5930_s2 + $0x170] sm:$0xff] }
 0x348   : > { %6626 = vst [vmem:[#allocation108_spill] sm:$0xff] %v5375_v57  ;;  %6627 = vst [vmem:[#allocation109_spill] sm:$0xff] %v5381_v55 }
 0x349   : > { %v5266_v53 = vsel %vm1483_vm1, %v1478_v54, %v4365_v40  ;;  %v5289_v40 = vld [vmem:[%s5930_s2 + $0x1c8] sm:$0xff]  ;;  %v5384_v54 = vstv %s1977_s22 }
 0x34a   : > { %1728 = vmatmul.mubr.f32.vlgmr.msra.gmra.mxu0 %v5266_v53  ;;  %1799 = vmatmul.mubr.f32.vlgmr.msra.gmra.mxu1 %v5266_v53  ;;  %vm1979_vm2 = vcmp.eq.s32.totalorder %v5384_v54, 1 }
 0x34b   : > { %1806 = vmatpush1.msra.mxu0 %v5273_v41  ;;  %1877 = vmatpush1.msra.mxu1 %v5279_v51 }
 0x34c   : > { %1807 = vmatprep.subr.mxu0 %v5289_v40  ;;  %1878 = vmatprep.subr.mxu1 %v5295_v50 }
 0x34d   : > { %1808 = vmatpush1.msra.mxu0 %v5301_v25  ;;  %1879 = vmatpush1.msra.mxu1 %v5307_v46 }
 0x34e   : > { %1809 = vmatprep.subr.mxu0 %v5313_v1  ;;  %1880 = vmatprep.subr.mxu1 %v5319_v3 }
 0x34f   : > { %1810 = vmatpush1.msra.mxu0 %v5325_v62  ;;  %1881 = vmatpush1.msra.mxu1 %v5331_v61 }
 0x350   : > { %1811 = vmatprep.subr.mxu0 %v5339_v2  ;;  %1882 = vmatprep.subr.mxu1 %v5345_v56 }
 0x351   : > { %1812 = vmatpush1.msra.mxu0 %v5351_v12  ;;  %1883 = vmatpush1.msra.mxu1 %v5357_v23  ;;  %v5402_v12 = vld [vmem:[%s5930_s2 + $0x140] sm:$0xff] }
 0x352   : > { %v2680_v59 = vpop.eup %2679  ;;  %1813 = vmatprep.subr.mxu0 %v5363_v48  ;;  %1884 = vmatprep.subr.mxu1 %v5369_v58  ;;  %v5389_v58 = vld [vmem:[%s5930_s2 + $0x148] sm:$0xff]  ;;  %6629 = vst [vmem:[#allocation111_spill] sm:$0xff] %v5402_v12 }
 0x353   : > { %v2682_v0 = vpop.eup %2681  ;;  %1814 = vmatpush1.msra.mxu0 %v5375_v57  ;;  %1885 = vmatpush1.msra.mxu1 %v5381_v55  ;;  %6628 = vst [vmem:[#allocation110_spill] sm:$0xff] %v5389_v58  ;;  %v5395_v57 = vld [vmem:[%s5930_s2 + $0x158] sm:$0xff]  ;;  %v1659_v23 = vmul.f32 %v2680_v59, %v2678_v22  ;;  %v5414_v22 = vld [vmem:[%s5930_s2 + $0x128] sm:$0xff] }
 0x354   : > { %v2684_v48 = vpop.eup %2683  ;;  %1815 = vmatprep.subr.mxu0 %v5389_v58  ;;  %1886 = vmatprep.subr.mxu1 %v5395_v57  ;;  %v5408_v58 = vld [vmem:[%s5930_s2 + $0x150] sm:$0xff]  ;;  %6631 = vst [vmem:[#allocation113_spill] sm:$0xff] %v5414_v22  ;;  %v5420_v59 = vld [vmem:[%s5930_s2 + $0x138] sm:$0xff] }
 0x355   : > { %v1658_v55 = vmul.f32 %v2684_v48, %v4412_v20  ;;  %1816 = vmatpush1.msra.mxu0 %v5402_v12  ;;  %6630 = vst [vmem:[#allocation112_spill] sm:$0xff] %v5408_v58  ;;  %1887 = vmatpush1.msra.mxu1 %v5408_v58  ;;  %6632 = vst [vmem:[#allocation114_spill] sm:$0xff] %v5420_v59  ;;  %v1655_v12 = vadd.f32 1.0, %v2682_v0  ;;  %v5427_v58 = vld [vmem:[%s5930_s2 + $0x120] sm:$0xff] }
 0x356   : > { %1817 = vmatprep.subr.mxu0 %v5414_v22  ;;  %1888 = vmatprep.subr.mxu1 %v5420_v59  ;;  %v5433_v22 = vld [vmem:[%s5930_s2 + $0x130] sm:$0xff]  ;;  %v5439_v59 = vld [vmem:[%s5930_s2 + $0x108] sm:$0xff]  ;;  %v5451_v0 = vld [vmem:[%s5930_s2 + $0x100] sm:$0xff] }
 0x357   : > { %v1660_v48 = vadd.f32 %v1659_v23, %v1658_v55  ;;  %1818 = vmatpush1.msra.mxu0 %v5427_v58  ;;  %1889 = vmatpush1.msra.mxu1 %v5433_v22  ;;  %6633 = vst [vmem:[#allocation115_spill] sm:$0xff] %v5439_v59  ;;  %v5445_v23 = vld [vmem:[%s5930_s2 + $0x118] sm:$0xff]  ;;  %6635 = vst [vmem:[#allocation117_spill] sm:$0xff] %v5451_v0  ;;  %v5457_v55 = vld [vmem:[%s5930_s2 + $0x110] sm:$0xff] }
 0x358   : > { %1819 = vmatprep.subr.mxu0 %v5439_v59  ;;  %6634 = vst [vmem:[#allocation116_spill] sm:$0xff] %v5445_v23  ;;  %1890 = vmatprep.subr.mxu1 %v5445_v23  ;;  %6636 = vst [vmem:[#allocation118_spill] sm:$0xff] %v5457_v55  ;;  %v5468_v23 = vld [vmem:[%s5930_s2 + $0xe8] sm:$0xff] }
 0x359   : > { %1820 = vmatpush1.msra.mxu0 %v5451_v0  ;;  %1891 = vmatpush1.msra.mxu1 %v5457_v55  ;;  %2685 = vtanh.f32 %v1660_v48  ;;  %v5463_v59 = vsel %vm1979_vm2, %v1660_v48, %v4412_v20  ;;  %6637 = vst [vmem:[#allocation119_spill] sm:$0xff] %v5468_v23  ;;  %v5474_v0 = vld [vmem:[%s5930_s2 + $0xf8] sm:$0xff]  ;;  %v5480_v20 = vld [vmem:[%s5930_s2 + $0xe0] sm:$0xff]  ;;  %v5486_v48 = vld [vmem:[%s5930_s2 + $0xf0] sm:$0xff] }
 0x35a   : > { %1821 = vmatprep.subr.mxu0 %v5468_v23  ;;  %6638 = vst [vmem:[#allocation120_spill] sm:$0xff] %v5474_v0  ;;  %1892 = vmatprep.subr.mxu1 %v5474_v0  ;;  %2687 = vrcp.f32 %v1655_v12  ;;  %6639 = vst [vmem:[#allocation121_spill] sm:$0xff] %v5480_v20  ;;  %v5492_v23 = vld [vmem:[%s5930_s2 + $0xc8] sm:$0xff]  ;;  %v5498_v12 = vld [vmem:[%s5930_s2 + $0xd8] sm:$0xff] }
 0x35b   : > { %1822 = vmatpush1.msra.mxu0 %v5480_v20  ;;  %6640 = vst [vmem:[#allocation122_spill] sm:$0xff] %v5486_v48  ;;  %1893 = vmatpush1.msra.mxu1 %v5486_v48  ;;  %6641 = vst [vmem:[#allocation123_spill] sm:$0xff] %v5492_v23  ;;  %v5504_v20 = vld [vmem:[%s5930_s2 + $0xc0] sm:$0xff]  ;;  %v5510_v48 = vld [vmem:[%s5930_s2 + $0xd0] sm:$0xff] }
 0x35c   : > { %1823 = vmatprep.subr.mxu0 %v5492_v23  ;;  %6642 = vst [vmem:[#allocation124_spill] sm:$0xff] %v5498_v12  ;;  %1894 = vmatprep.subr.mxu1 %v5498_v12  ;;  %6643 = vst [vmem:[#allocation125_spill] sm:$0xff] %v5504_v20  ;;  %v5516_v23 = vld [vmem:[%s5930_s2 + $0xa8] sm:$0xff]  ;;  %v5522_v12 = vld [vmem:[%s5930_s2 + $0xb8] sm:$0xff] }
 0x35d   : > { %1824 = vmatpush1.msra.mxu0 %v5504_v20  ;;  %6644 = vst [vmem:[#allocation126_spill] sm:$0xff] %v5510_v48  ;;  %1895 = vmatpush1.msra.mxu1 %v5510_v48  ;;  %6645 = vst [vmem:[#allocation127_spill] sm:$0xff] %v5516_v23  ;;  %v5528_v20 = vld [vmem:[%s5930_s2 + $0xa0] sm:$0xff]  ;;  %v5534_v48 = vld [vmem:[%s5930_s2 + $0xb0] sm:$0xff] }
 0x35e   : > { %1825 = vmatprep.subr.mxu0 %v5516_v23  ;;  %6646 = vst [vmem:[#allocation128_spill] sm:$0xff] %v5522_v12  ;;  %1896 = vmatprep.subr.mxu1 %v5522_v12  ;;  %6647 = vst [vmem:[#allocation129_spill] sm:$0xff] %v5528_v20  ;;  %v5540_v23 = vld [vmem:[%s5930_s2 + $0x88] sm:$0xff]  ;;  %v5546_v12 = vld [vmem:[%s5930_s2 + $0x98] sm:$0xff] }
 0x35f   : > { %1826 = vmatpush1.msra.mxu0 %v5528_v20  ;;  %6648 = vst [vmem:[#allocation130_spill] sm:$0xff] %v5534_v48  ;;  %1897 = vmatpush1.msra.mxu1 %v5534_v48  ;;  %6649 = vst [vmem:[#allocation131_spill] sm:$0xff] %v5540_v23  ;;  %v5552_v20 = vld [vmem:[%s5930_s2 + $0x80] sm:$0xff]  ;;  %v5558_v48 = vld [vmem:[%s5930_s2 + $0x90] sm:$0xff] }
 0x360   : > { %1827 = vmatprep.subr.mxu0 %v5540_v23  ;;  %6650 = vst [vmem:[#allocation132_spill] sm:$0xff] %v5546_v12  ;;  %1898 = vmatprep.subr.mxu1 %v5546_v12  ;;  %6651 = vst [vmem:[#allocation133_spill] sm:$0xff] %v5552_v20  ;;  %v5564_v23 = vld [vmem:[%s5930_s2 + $0x68] sm:$0xff]  ;;  %v5570_v12 = vld [vmem:[%s5930_s2 + $0x78] sm:$0xff] }
 0x361   : > { %1828 = vmatpush1.msra.mxu0 %v5552_v20  ;;  %6652 = vst [vmem:[#allocation134_spill] sm:$0xff] %v5558_v48  ;;  %1899 = vmatpush1.msra.mxu1 %v5558_v48  ;;  %6653 = vst [vmem:[#allocation135_spill] sm:$0xff] %v5564_v23  ;;  %v5576_v20 = vld [vmem:[%s5930_s2 + $0x60] sm:$0xff]  ;;  %v5582_v48 = vld [vmem:[%s5930_s2 + $0x70] sm:$0xff] }
 0x362   : > { %1829 = vmatprep.subr.mxu0 %v5564_v23  ;;  %6654 = vst [vmem:[#allocation136_spill] sm:$0xff] %v5570_v12  ;;  %1900 = vmatprep.subr.mxu1 %v5570_v12  ;;  %6655 = vst [vmem:[#allocation137_spill] sm:$0xff] %v5576_v20  ;;  %v5588_v23 = vld [vmem:[%s5930_s2 + $0x48] sm:$0xff]  ;;  %v5594_v12 = vld [vmem:[%s5930_s2 + $0x58] sm:$0xff] }
 0x363   : > { %1830 = vmatpush1.msra.mxu0 %v5576_v20  ;;  %6656 = vst [vmem:[#allocation138_spill] sm:$0xff] %v5582_v48  ;;  %1901 = vmatpush1.msra.mxu1 %v5582_v48  ;;  %6657 = vst [vmem:[#allocation139_spill] sm:$0xff] %v5588_v23  ;;  %v5600_v20 = vld [vmem:[%s5930_s2 + $0x40] sm:$0xff]  ;;  %v5606_v48 = vld [vmem:[%s5930_s2 + $0x50] sm:$0xff] }
 0x364   : > { %1831 = vmatprep.subr.mxu0 %v5588_v23  ;;  %6658 = vst [vmem:[#allocation140_spill] sm:$0xff] %v5594_v12  ;;  %1902 = vmatprep.subr.mxu1 %v5594_v12  ;;  %6659 = vst [vmem:[#allocation141_spill] sm:$0xff] %v5600_v20  ;;  %v5612_v0 = vld [vmem:[%s5930_s2 + $0x28] sm:$0xff]  ;;  %v5618_v12 = vld [vmem:[%s5930_s2 + $0x38] sm:$0xff] }
 0x365   : > { %1832 = vmatpush1.msra.mxu0 %v5600_v20  ;;  %6660 = vst [vmem:[#allocation142_spill] sm:$0xff] %v5606_v48  ;;  %1903 = vmatpush1.msra.mxu1 %v5606_v48  ;;  %6661 = vst [vmem:[#allocation143_spill] sm:$0xff] %v5612_v0  ;;  %v5624_v20 = vld [vmem:[%s5930_s2 + $0x20] sm:$0xff]  ;;  %v5630_v48 = vld [vmem:[%s5930_s2 + $0x30] sm:$0xff] }
 0x366   : > { %v2686_v23 = vpop.eup %2685  ;;  %1833 = vmatprep.subr.mxu0 %v5612_v0  ;;  %6662 = vst [vmem:[#allocation144_spill] sm:$0xff] %v5618_v12  ;;  %1904 = vmatprep.subr.mxu1 %v5618_v12  ;;  %6663 = vst [vmem:[#allocation145_spill] sm:$0xff] %v5624_v20  ;;  %v5636_v55 = vld [vmem:[%s5930_s2 + $0x8] sm:$0xff]  ;;  %v5642_v12 = vld [vmem:[%s5930_s2 + $0x18] sm:$0xff] }
 0x367   : > { %1834 = vmatpush1.msra.mxu0 %v5624_v20  ;;  %6664 = vst [vmem:[#allocation146_spill] sm:$0xff] %v5630_v48  ;;  %1905 = vmatpush1.msra.mxu1 %v5630_v48  ;;  %v2688_v0 = vpop.eup %2687  ;;  %6665 = vst [vmem:[#allocation147_spill] sm:$0xff] %v5636_v55  ;;  %v5648_v20 = vld [vmem:[%s5930_s2] sm:$0xff] }
 0x368   : > { %1835 = vmatprep.subr.mxu0 %v5636_v55  ;;  %1906 = vmatprep.subr.mxu1 %v5642_v12  ;;  %v5652_v48 = vmul.f32 %v2688_v0, %v2686_v23  ;;  %v5657_v55 = vld [vmem:[%s5930_s2 + $0x10] sm:$0xff]  ;;  %v6700_v23 = vld [vmem:[#allocation42_spill] sm:$0xff]  ;;  %v6701_v0 = vld [vmem:[#allocation43_spill] sm:$0xff] }
 0x369   : > { %1836 = vmatpush1.msra.mxu0 %v5648_v20  ;;  %1869 = vmatprep.mubr.f32.mxu0 %v6389_v21 }
 0x36a   : > { %1907 = vmatpush1.msra.mxu1 %v5657_v55  ;;  %1940 = vmatprep.mubr.f32.mxu1 %v6389_v21 }
 0x36b   : > { %1870 = vmatmul.mubr.f32.vlgmr.msra.gmra.mxu0 %v5652_v48  ;;  %1941 = vmatmul.mubr.f32.vlgmr.msra.gmra.mxu1 %v5652_v48 }
 0x36c   : > { %1989 = vmatprep.subr.mxu0 %v4457_v4  ;;  %2060 = vmatprep.subr.mxu1 %v4463_v5  ;;  %v6666_v4 = vld [vmem:[#allocation13_spill] sm:$0xff]  ;;  %v6667_v5 = vld [vmem:[#allocation8_spill] sm:$0xff] }
 0x36d   : > { %1990 = vmatpush1.msra.mxu0 %v4469_v7  ;;  %2061 = vmatpush1.msra.mxu1 %v4475_v8  ;;  %v6668_v7 = vld [vmem:[#allocation15_spill] sm:$0xff]  ;;  %v6669_v8 = vld [vmem:[#allocation9_spill] sm:$0xff] }
 0x36e   : > { %1991 = vmatprep.subr.mxu0 %v4481_v9  ;;  %2062 = vmatprep.subr.mxu1 %v4487_v10  ;;  %v6670_v9 = vld [vmem:[#allocation17_spill] sm:$0xff]  ;;  %v6671_v10 = vld [vmem:[#allocation10_spill] sm:$0xff] }
 0x36f   : > { %1992 = vmatpush1.msra.mxu0 %v4493_v13  ;;  %2063 = vmatpush1.msra.mxu1 %v4499_v14  ;;  %v6672_v13 = vld [vmem:[#allocation19_spill] sm:$0xff] }
 0x370   : > { %1993 = vmatprep.subr.mxu0 %v4505_v15  ;;  %2064 = vmatprep.subr.mxu1 %v4511_v63  ;;  %v6673_v14 = vld [vmem:[#allocation11_spill] sm:$0xff]  ;;  %v6674_v15 = vld [vmem:[#allocation20_spill] sm:$0xff] }
 0x371   : > { %1994 = vmatpush1.msra.mxu0 %v4517_v6  ;;  %2065 = vmatpush1.msra.mxu1 %v4523_v16  ;;  %v6675_v63 = vld [vmem:[#allocation12_spill] sm:$0xff]  ;;  %v6676_v6 = vld [vmem:[#allocation22_spill] sm:$0xff] }
 0x372   : > { %1995 = vmatprep.subr.mxu0 %v4529_v17  ;;  %2066 = vmatprep.subr.mxu1 %v4535_v18  ;;  %v6677_v16 = vld [vmem:[#allocation14_spill] sm:$0xff]  ;;  %v6678_v17 = vld [vmem:[#allocation24_spill] sm:$0xff] }
 0x373   : > { %1996 = vmatpush1.msra.mxu0 %v4541_v19  ;;  %2067 = vmatpush1.msra.mxu1 %v4547_v24  ;;  %v6679_v18 = vld [vmem:[#allocation16_spill] sm:$0xff]  ;;  %v6680_v19 = vld [vmem:[#allocation26_spill] sm:$0xff] }
 0x374   : > { %1997 = vmatprep.subr.mxu0 %v4553_v26  ;;  %2068 = vmatprep.subr.mxu1 %v4559_v27  ;;  %v6681_v24 = vld [vmem:[#allocation18_spill] sm:$0xff]  ;;  %v6682_v26 = vld [vmem:[#allocation21_spill] sm:$0xff]  ;;  %v6683_v27 = vld [vmem:[#allocation28_spill] sm:$0xff] }
 0x375   : > { %1998 = vmatpush1.msra.mxu0 %v4565_v28  ;;  %2069 = vmatpush1.msra.mxu1 %v4571_v29  ;;  %v6684_v28 = vld [vmem:[#allocation23_spill] sm:$0xff]  ;;  %v6685_v29 = vld [vmem:[#allocation29_spill] sm:$0xff] }
 0x376   : > { %1999 = vmatprep.subr.mxu0 %v4577_v30  ;;  %2070 = vmatprep.subr.mxu1 %v4583_v31  ;;  %v6686_v30 = vld [vmem:[#allocation25_spill] sm:$0xff]  ;;  %v6687_v31 = vld [vmem:[#allocation31_spill] sm:$0xff] }
 0x377   : > { %2000 = vmatpush1.msra.mxu0 %v4589_v32  ;;  %2071 = vmatpush1.msra.mxu1 %v4595_v33  ;;  %v6688_v32 = vld [vmem:[#allocation27_spill] sm:$0xff]  ;;  %v6689_v33 = vld [vmem:[#allocation33_spill] sm:$0xff] }
 0x378   : > { %2001 = vmatprep.subr.mxu0 %v4601_v34  ;;  %2072 = vmatprep.subr.mxu1 %v4607_v35  ;;  %v6690_v34 = vld [vmem:[#allocation30_spill] sm:$0xff]  ;;  %v6691_v35 = vld [vmem:[#allocation35_spill] sm:$0xff] }
 0x379   : > { %2002 = vmatpush1.msra.mxu0 %v4613_v36  ;;  %2073 = vmatpush1.msra.mxu1 %v4619_v37  ;;  %v6692_v36 = vld [vmem:[#allocation32_spill] sm:$0xff]  ;;  %v6693_v37 = vld [vmem:[#allocation37_spill] sm:$0xff] }
 0x37a   : > { %2003 = vmatprep.subr.mxu0 %v4625_v38  ;;  %2074 = vmatprep.subr.mxu1 %v4631_v39  ;;  %v6694_v38 = vld [vmem:[#allocation34_spill] sm:$0xff] }
 0x37b   : > { %2004 = vmatpush1.msra.mxu0 %v4637_v42  ;;  %2075 = vmatpush1.msra.mxu1 %v4643_v43  ;;  %v6695_v39 = vld [vmem:[#allocation38_spill] sm:$0xff]  ;;  %v6696_v43 = vld [vmem:[#allocation36_spill] sm:$0xff] }
 0x37c   : > { %2005 = vmatprep.subr.mxu0 %v4649_v44  ;;  %2076 = vmatprep.subr.mxu1 %v4655_v47  ;;  %v5733_v42 = vsel %vm1979_vm2, %v5652_v48, %v6695_v39  ;;  %v6697_v44 = vld [vmem:[#allocation39_spill] sm:$0xff]  ;;  %v6698_v47 = vld [vmem:[#allocation40_spill] sm:$0xff]  ;;  %v6703_v48 = vld [vmem:[#allocation45_spill] sm:$0xff] }
 0x37d   : > { %2006 = vmatpush1.msra.mxu0 %v4661_v49  ;;  %2077 = vmatpush1.msra.mxu1 %v6666_v4  ;;  %v6699_v49 = vld [vmem:[#allocation41_spill] sm:$0xff]  ;;  %v6702_v4 = vld [vmem:[#allocation44_spill] sm:$0xff]  ;;  %v6732_v39 = vld [vmem:[#allocation74_spill] sm:$0xff] }
 0x37e   : > { %2007 = vmatprep.subr.mxu0 %v6667_v5  ;;  %2078 = vmatprep.subr.mxu1 %v6668_v7  ;;  %v6704_v5 = vld [vmem:[#allocation46_spill] sm:$0xff]  ;;  %v6705_v7 = vld [vmem:[#allocation47_spill] sm:$0xff] }
 0x37f   : > { %2008 = vmatpush1.msra.mxu0 %v6669_v8  ;;  %2079 = vmatpush1.msra.mxu1 %v6670_v9  ;;  %v6706_v8 = vld [vmem:[#allocation48_spill] sm:$0xff]  ;;  %v6707_v9 = vld [vmem:[#allocation49_spill] sm:$0xff] }
 0x380   : > { %2009 = vmatprep.subr.mxu0 %v6671_v10  ;;  %2080 = vmatprep.subr.mxu1 %v6672_v13  ;;  %v6708_v10 = vld [vmem:[#allocation50_spill] sm:$0xff]  ;;  %v6709_v13 = vld [vmem:[#allocation51_spill] sm:$0xff] }
 0x381   : > { %2010 = vmatpush1.msra.mxu0 %v6673_v14  ;;  %2081 = vmatpush1.msra.mxu1 %v6674_v15  ;;  %v6710_v14 = vld [vmem:[#allocation52_spill] sm:$0xff]  ;;  %v6711_v15 = vld [vmem:[#allocation53_spill] sm:$0xff] }
 0x382   : > { %2011 = vmatprep.subr.mxu0 %v6675_v63  ;;  %2082 = vmatprep.subr.mxu1 %v6676_v6  ;;  %v6712_v63 = vld [vmem:[#allocation54_spill] sm:$0xff]  ;;  %v6713_v6 = vld [vmem:[#allocation55_spill] sm:$0xff] }
 0x383   : > { %2012 = vmatpush1.msra.mxu0 %v6677_v16  ;;  %2083 = vmatpush1.msra.mxu1 %v6678_v17  ;;  %v6714_v16 = vld [vmem:[#allocation56_spill] sm:$0xff]  ;;  %v6715_v17 = vld [vmem:[#allocation57_spill] sm:$0xff] }
 0x384   : > { %2013 = vmatprep.subr.mxu0 %v6679_v18  ;;  %2084 = vmatprep.subr.mxu1 %v6680_v19  ;;  %v6716_v18 = vld [vmem:[#allocation58_spill] sm:$0xff]  ;;  %v6717_v19 = vld [vmem:[#allocation59_spill] sm:$0xff] }
 0x385   : > { %2014 = vmatpush1.msra.mxu0 %v6681_v24  ;;  %2085 = vmatpush1.msra.mxu1 %v6682_v26  ;;  %v6718_v24 = vld [vmem:[#allocation60_spill] sm:$0xff]  ;;  %v6719_v26 = vld [vmem:[#allocation61_spill] sm:$0xff] }
 0x386   : > { %2015 = vmatprep.subr.mxu0 %v6683_v27  ;;  %2086 = vmatprep.subr.mxu1 %v6684_v28  ;;  %v6720_v27 = vld [vmem:[#allocation62_spill] sm:$0xff]  ;;  %v6721_v28 = vld [vmem:[#allocation63_spill] sm:$0xff] }
 0x387   : > { %2016 = vmatpush1.msra.mxu0 %v6685_v29  ;;  %2087 = vmatpush1.msra.mxu1 %v6686_v30  ;;  %v6722_v29 = vld [vmem:[#allocation64_spill] sm:$0xff]  ;;  %v6723_v30 = vld [vmem:[#allocation65_spill] sm:$0xff] }
 0x388   : > { %2017 = vmatprep.subr.mxu0 %v6687_v31  ;;  %2088 = vmatprep.subr.mxu1 %v6688_v32  ;;  %v6724_v31 = vld [vmem:[#allocation66_spill] sm:$0xff]  ;;  %v6725_v32 = vld [vmem:[#allocation67_spill] sm:$0xff] }
 0x389   : > { %2018 = vmatpush1.msra.mxu0 %v6689_v33  ;;  %2089 = vmatpush1.msra.mxu1 %v6690_v34  ;;  %v6726_v33 = vld [vmem:[#allocation68_spill] sm:$0xff]  ;;  %v6727_v34 = vld [vmem:[#allocation69_spill] sm:$0xff] }
 0x38a   : > { %2019 = vmatprep.subr.mxu0 %v6691_v35  ;;  %2090 = vmatprep.subr.mxu1 %v6692_v36  ;;  %v6728_v35 = vld [vmem:[#allocation70_spill] sm:$0xff]  ;;  %v6729_v36 = vld [vmem:[#allocation71_spill] sm:$0xff] }
 0x38b   : > { %2020 = vmatpush1.msra.mxu0 %v6693_v37  ;;  %2053 = vmatprep.mubr.f32.mxu0 %v6389_v21  ;;  %v6730_v37 = vld [vmem:[#allocation72_spill] sm:$0xff] }
 0x38c   : > { %2091 = vmatpush1.msra.mxu1 %v6694_v38  ;;  %2124 = vmatprep.mubr.f32.mxu1 %v6389_v21  ;;  %v6731_v38 = vld [vmem:[#allocation73_spill] sm:$0xff] }
 0x38d   : > { %2054 = vmatmul.mubr.f32.vlgmr.msra.gmra.mxu0 %v5733_v42  ;;  %2125 = vmatmul.mubr.f32.vlgmr.msra.gmra.mxu1 %v5733_v42 }
 0x38e   : > { %2159 = vmatprep.subr.mxu0 %v6696_v43  ;;  %2230 = vmatprep.subr.mxu1 %v6697_v44  ;;  %v6733_v43 = vld [vmem:[#allocation75_spill] sm:$0xff]  ;;  %v6734_v44 = vld [vmem:[#allocation76_spill] sm:$0xff] }
 0x38f   : > { %2160 = vmatpush1.msra.mxu0 %v6698_v47  ;;  %2231 = vmatpush1.msra.mxu1 %v6699_v49  ;;  %v6735_v47 = vld [vmem:[#allocation77_spill] sm:$0xff]  ;;  %v6736_v49 = vld [vmem:[#allocation78_spill] sm:$0xff] }
 0x390   : > { %2161 = vmatprep.subr.mxu0 %v6700_v23  ;;  %2232 = vmatprep.subr.mxu1 %v6701_v0  ;;  %v6737_v23 = vld [vmem:[#allocation79_spill] sm:$0xff]  ;;  %v6738_v0 = vld [vmem:[#allocation80_spill] sm:$0xff] }
 0x391   : > { %2162 = vmatpush1.msra.mxu0 %v6702_v4  ;;  %2233 = vmatpush1.msra.mxu1 %v6703_v48  ;;  %v6739_v4 = vld [vmem:[#allocation81_spill] sm:$0xff]  ;;  %v6740_v48 = vld [vmem:[#allocation82_spill] sm:$0xff] }
 0x392   : > { %2163 = vmatprep.subr.mxu0 %v6704_v5  ;;  %2234 = vmatprep.subr.mxu1 %v6705_v7  ;;  %v6741_v5 = vld [vmem:[#allocation83_spill] sm:$0xff]  ;;  %v6742_v7 = vld [vmem:[#allocation84_spill] sm:$0xff] }
 0x393   : > { %2164 = vmatpush1.msra.mxu0 %v6706_v8  ;;  %2235 = vmatpush1.msra.mxu1 %v6707_v9  ;;  %v6743_v8 = vld [vmem:[#allocation85_spill] sm:$0xff]  ;;  %v6744_v9 = vld [vmem:[#allocation86_spill] sm:$0xff] }
 0x394   : > { %2165 = vmatprep.subr.mxu0 %v6708_v10  ;;  %2236 = vmatprep.subr.mxu1 %v6709_v13  ;;  %v6745_v10 = vld [vmem:[#allocation87_spill] sm:$0xff]  ;;  %v6746_v13 = vld [vmem:[#allocation89_spill] sm:$0xff] }
 0x395   : > { %2166 = vmatpush1.msra.mxu0 %v6710_v14  ;;  %2237 = vmatpush1.msra.mxu1 %v6711_v15  ;;  %v6747_v14 = vld [vmem:[#allocation90_spill] sm:$0xff]  ;;  %v6748_v15 = vld [vmem:[#allocation88_spill] sm:$0xff] }
 0x396   : > { %2167 = vmatprep.subr.mxu0 %v6712_v63  ;;  %2238 = vmatprep.subr.mxu1 %v6713_v6  ;;  %v6749_v63 = vld [vmem:[#allocation91_spill] sm:$0xff]  ;;  %v6750_v6 = vld [vmem:[#allocation92_spill] sm:$0xff] }
 0x397   : > { %2168 = vmatpush1.msra.mxu0 %v6714_v16  ;;  %2239 = vmatpush1.msra.mxu1 %v6715_v17  ;;  %v6751_v16 = vld [vmem:[#allocation93_spill] sm:$0xff]  ;;  %v6752_v17 = vld [vmem:[#allocation94_spill] sm:$0xff] }
 0x398   : > { %2169 = vmatprep.subr.mxu0 %v6716_v18  ;;  %2240 = vmatprep.subr.mxu1 %v6717_v19  ;;  %v6753_v18 = vld [vmem:[#allocation95_spill] sm:$0xff]  ;;  %v6754_v19 = vld [vmem:[#allocation96_spill] sm:$0xff] }
 0x399   : > { %2170 = vmatpush1.msra.mxu0 %v6718_v24  ;;  %2241 = vmatpush1.msra.mxu1 %v6719_v26  ;;  %v6755_v24 = vld [vmem:[#allocation97_spill] sm:$0xff]  ;;  %v6756_v26 = vld [vmem:[#allocation98_spill] sm:$0xff] }
 0x39a   : > { %2171 = vmatprep.subr.mxu0 %v6720_v27  ;;  %2242 = vmatprep.subr.mxu1 %v6721_v28  ;;  %v6757_v27 = vld [vmem:[#allocation99_spill] sm:$0xff]  ;;  %v6758_v28 = vld [vmem:[#allocation100_spill] sm:$0xff] }
 0x39b   : > { %2172 = vmatpush1.msra.mxu0 %v6722_v29  ;;  %2243 = vmatpush1.msra.mxu1 %v6723_v30  ;;  %v6759_v29 = vld [vmem:[#allocation101_spill] sm:$0xff]  ;;  %v6760_v30 = vld [vmem:[#allocation102_spill] sm:$0xff] }
 0x39c   : > { %2173 = vmatprep.subr.mxu0 %v6724_v31  ;;  %2244 = vmatprep.subr.mxu1 %v6725_v32  ;;  %v6761_v31 = vld [vmem:[#allocation103_spill] sm:$0xff] }
 0x39d   : > { %2174 = vmatpush1.msra.mxu0 %v6726_v33  ;;  %2245 = vmatpush1.msra.mxu1 %v6727_v34 }
 0x39e   : > { %2175 = vmatprep.subr.mxu0 %v6728_v35  ;;  %2246 = vmatprep.subr.mxu1 %v6729_v36 }
 0x39f   : > { %2176 = vmatpush1.msra.mxu0 %v6730_v37  ;;  %2247 = vmatpush1.msra.mxu1 %v6731_v38 }
 0x3a0   : > { %2177 = vmatprep.subr.mxu0 %v6732_v39  ;;  %2248 = vmatprep.subr.mxu1 %v6733_v43  ;;  %v6762_v39 = vld [vmem:[#allocation7_spill] sm:$0xff] }
 0x3a1   : > { %2178 = vmatpush1.msra.mxu0 %v6734_v44  ;;  %2249 = vmatpush1.msra.mxu1 %v6735_v47 }
 0x3a2   : > { %2179 = vmatprep.subr.mxu0 %v6736_v49  ;;  %2250 = vmatprep.subr.mxu1 %v6737_v23 }
 0x3a3   : > { %2180 = vmatpush1.msra.mxu0 %v6738_v0  ;;  %2251 = vmatpush1.msra.mxu1 %v6739_v4 }
 0x3a4   : > { %2181 = vmatprep.subr.mxu0 %v6740_v48  ;;  %2252 = vmatprep.subr.mxu1 %v6741_v5 }
 0x3a5   : > { %2182 = vmatpush1.msra.mxu0 %v6742_v7  ;;  %2253 = vmatpush1.msra.mxu1 %v6743_v8 }
 0x3a6   : > { %2183 = vmatprep.subr.mxu0 %v6744_v9  ;;  %2254 = vmatprep.subr.mxu1 %v6745_v10 }
 0x3a7   : > { %2184 = vmatpush1.msra.mxu0 %v6746_v13  ;;  %2255 = vmatpush1.msra.mxu1 %v6747_v14 }
 0x3a8   : > { %2185 = vmatprep.subr.mxu0 %v6748_v15  ;;  %2256 = vmatprep.subr.mxu1 %v6749_v63  ;;  %v2581_v63 = vld [vmem:[%s3006_s9 + $0x60] sm:$0xff] }
 0x3a9   : > { %2186 = vmatpush1.msra.mxu0 %v6750_v6  ;;  %2257 = vmatpush1.msra.mxu1 %v6751_v16  ;;  %v2582_v16 = vld [vmem:[%s3006_s9 + $0x68] sm:$0xff] }
 0x3aa   : > { %2187 = vmatprep.subr.mxu0 %v6752_v17  ;;  %2258 = vmatprep.subr.mxu1 %v6753_v18 }
 0x3ab   : > { %2188 = vmatpush1.msra.mxu0 %v6754_v19  ;;  %2259 = vmatpush1.msra.mxu1 %v6755_v24 }
 0x3ac   : > { %2189 = vmatprep.subr.mxu0 %v6756_v26  ;;  %2260 = vmatprep.subr.mxu1 %v6757_v27 }
 0x3ad   : > { %2190 = vmatpush1.msra.mxu0 %v6758_v28  ;;  %2261 = vmatpush1.msra.mxu1 %v6759_v29 }
 0x3ae   : > { %2223 = vmatprep.mubr.f32.mxu0 %v6389_v21  ;;  %2294 = vmatprep.mubr.f32.mxu1 %v6389_v21 }
 0x3af   : > { %2301 = vmatprep.subr.mxu0 %v6760_v30  ;;  %2372 = vmatprep.subr.mxu1 %v6761_v31 }
 0x40a   : > { %v1729_v32 = vpop.f32.mrf.mxu0  ;;  %v1800_v33 = vpop.f32.mrf.mxu1 }
 0x40c   : > { %v1731_v34 = vpop.f32.mrf.mxu0  ;;  %v1802_v36 = vpop.f32.mrf.mxu1 }
 0x42b   : > { %v1871_v35 = vpop.f32.mrf.mxu0  ;;  %v1942_v44 = vpop.f32.mrf.mxu1 }
 0x42c   : > { %v1872_v37 = vadd.f32 %v1871_v35, %v1729_v32  ;;  %v1943_v7 = vadd.f32 %v1942_v44, %v1800_v33  ;;  %v2583_v44 = vld [vmem:[%s3006_s9 + $0x70] sm:$0xff] }
 0x42d   : > { %v1873_v38 = vpop.f32.mrf.mxu0  ;;  %v1944_v4 = vpop.f32.mrf.mxu1 }
 0x42e   : > { %v1947_v43 = vadd.f32 %v1872_v37, %v6762_v39  ;;  %v1874_v47 = vadd.f32 %v1873_v38, %v1731_v34  ;;  %v1945_v48 = vadd.f32 %v1944_v4, %v1802_v36  ;;  %v1949_v10 = vadd.f32 %v1943_v7, %v4348_v52  ;;  %v2584_v36 = vld [vmem:[%s3006_s9 + $0x78] sm:$0xff] }
 0x430   : > { %v2578_v49 = vmul.f32 -1.442695, %v1947_v43  ;;  %v1948_v23 = vadd.f32 %v1874_v47, %v4341_v45  ;;  %v1950_v5 = vadd.f32 %v1945_v48, %v4345_v11 }
 0x432   : > { %2689 = vpow2.f32 %v2578_v49  ;;  %v2579_v0 = vmul.f32 -1.442695, %v1948_v23  ;;  %v2580_v8 = vmul.f32 -1.442695, %v1950_v5 }
 0x434   : > { %2691 = vpow2.f32 %v2579_v0 }
 0x435   : > { %2693 = vpow2.f32 %v2580_v8 }
 0x43f   : > { %v2690_v9 = vpop.eup %2689 }
 0x440   : > { %v1954_v13 = vadd.f32 1.0, %v2690_v9 }
 0x441   : > { %v2692_v14 = vpop.eup %2691 }
 0x442   : > { %2695 = vrcp.f32 %v1954_v13  ;;  %v1960_v15 = vadd.f32 1.0, %v2692_v14  ;;  %v2694_v17 = vpop.eup %2693  ;;  %v6772_v13 = vld [vmem:[#allocation112_spill] sm:$0xff]  ;;  %v6773_v14 = vld [vmem:[#allocation113_spill] sm:$0xff] }
 0x443   : > { %2697 = vtanh.f32 %v1949_v10  ;;  %v1967_v30 = vadd.f32 1.0, %v2694_v17  ;;  %v6771_v10 = vld [vmem:[#allocation111_spill] sm:$0xff]  ;;  %v6778_v17 = vld [vmem:[#allocation118_spill] sm:$0xff] }
 0x444   : > { %2699 = vrcp.f32 %v1960_v15  ;;  %v6774_v15 = vld [vmem:[#allocation114_spill] sm:$0xff] }
 0x44d   : > { %v2055_v6 = vpop.f32.mrf.mxu0  ;;  %v2126_v33 = vpop.f32.mrf.mxu1 }
 0x44e   : > { %v2131_v18 = vadd.f32 %v2581_v63, %v2055_v6  ;;  %v2133_v23 = vadd.f32 %v2583_v44, %v2126_v33  ;;  %v6776_v6 = vld [vmem:[#allocation116_spill] sm:$0xff]  ;;  %v6791_v33 = vld [vmem:[#allocation131_spill] sm:$0xff]  ;;  %v6797_v44 = vld [vmem:[#allocation137_spill] sm:$0xff] }
 0x44f   : > { %v2696_v19 = vpop.eup %2695  ;;  %v2057_v24 = vpop.f32.mrf.mxu0 }
 0x450   : > { %v2698_v26 = vpop.eup %2697  ;;  %v2585_v27 = vmul.f32 -1.442695, %v2131_v18  ;;  %v2132_v28 = vadd.f32 %v2582_v16, %v2057_v24  ;;  %v2128_v37 = vpop.f32.mrf.mxu1  ;;  %v6777_v16 = vld [vmem:[#allocation117_spill] sm:$0xff]  ;;  %v6780_v24 = vld [vmem:[#allocation120_spill] sm:$0xff] }
 0x451   : > { %v2700_v29 = vpop.eup %2699  ;;  %v1971_v31 = vmul.f32 %v2698_v26, %v2696_v19  ;;  %v2134_v43 = vadd.f32 %v2584_v36, %v2128_v37  ;;  %v6779_v19 = vld [vmem:[#allocation119_spill] sm:$0xff]  ;;  %v6794_v36 = vld [vmem:[#allocation134_spill] sm:$0xff] }
 0x452   : > { %v1970_v32 = vmul.f32 %v2700_v29, %v5258_v60  ;;  %2701 = vpow2.f32 %v2585_v27  ;;  %v2586_v34 = vmul.f32 -1.442695, %v2132_v28  ;;  %v6783_v26 = vld [vmem:[#allocation123_spill] sm:$0xff]  ;;  %v6784_v27 = vld [vmem:[#allocation124_spill] sm:$0xff]  ;;  %v6785_v28 = vld [vmem:[#allocation125_spill] sm:$0xff] }
 0x453   : > { %v2587_v47 = vmul.f32 -1.442695, %v2134_v43  ;;  %v6786_v29 = vld [vmem:[#allocation126_spill] sm:$0xff]  ;;  %v6795_v37 = vld [vmem:[#allocation135_spill] sm:$0xff]  ;;  %v6796_v43 = vld [vmem:[#allocation136_spill] sm:$0xff] }
 0x454   : > { %v1972_v35 = vadd.f32 %v1971_v31, %v1970_v32  ;;  %2703 = vpow2.f32 %v2586_v34  ;;  %v6789_v31 = vld [vmem:[#allocation129_spill] sm:$0xff]  ;;  %v6790_v32 = vld [vmem:[#allocation130_spill] sm:$0xff]  ;;  %v6792_v34 = vld [vmem:[#allocation132_spill] sm:$0xff] }
 0x455   : > { %2705 = vrcp.f32 %v1967_v30  ;;  %v6787_v30 = vld [vmem:[#allocation127_spill] sm:$0xff] }
 0x456   : > { %2707 = vtanh.f32 %v1972_v35  ;;  %v5816_v38 = vsel %vm1979_vm2, %v1972_v35, %v5258_v60  ;;  %v6793_v35 = vld [vmem:[#allocation133_spill] sm:$0xff] }
 0x457   : > { %2709 = vpow2.f32 %v2587_v47  ;;  %v6798_v47 = vld [vmem:[#allocation138_spill] sm:$0xff] }
 0x45f   : > { %v2702_v49 = vpop.eup %2701 }
 0x460   : > { %v2138_v0 = vadd.f32 1.0, %v2702_v49  ;;  %v6799_v49 = vld [vmem:[#allocation139_spill] sm:$0xff] }
 0x461   : > { %v2704_v4 = vpop.eup %2703 }
 0x462   : > { %v2706_v48 = vpop.eup %2705  ;;  %2711 = vrcp.f32 %v2138_v0  ;;  %v2144_v5 = vadd.f32 1.0, %v2704_v4  ;;  %v6801_v4 = vld [vmem:[#allocation141_spill] sm:$0xff] }
 0x463   : > { %v2708_v7 = vpop.eup %2707  ;;  %2713 = vtanh.f32 %v2133_v23  ;;  %v6800_v23 = vld [vmem:[#allocation140_spill] sm:$0xff] }
 0x464   : > { %2715 = vrcp.f32 %v2144_v5  ;;  %v1974_v8 = vmul.f32 %v2708_v7, %v2706_v48  ;;  %v6802_v48 = vld [vmem:[#allocation142_spill] sm:$0xff]  ;;  %v6803_v7 = vld [vmem:[#allocation143_spill] sm:$0xff] }
 0x466   : > { %v5823_v60 = vsel %vm1979_vm2, %v1974_v8, %v5266_v53  ;;  %v2710_v53 = vpop.eup %2709  ;;  %v6804_v8 = vld [vmem:[#allocation144_spill] sm:$0xff] }
 0x467   : > { %2224 = vmatmul.mubr.f32.vlgmr.msra.gmra.mxu0 %v5823_v60  ;;  %2295 = vmatmul.mubr.f32.vlgmr.msra.gmra.mxu1 %v5823_v60 }
 0x468   : > { %2302 = vmatpush1.msra.mxu0 %v5273_v41  ;;  %2373 = vmatpush1.msra.mxu1 %v5279_v51  ;;  %v6764_v41 = vld [vmem:[#allocation104_spill] sm:$0xff]  ;;  %v6765_v51 = vld [vmem:[#allocation105_spill] sm:$0xff] }
 0x469   : > { %2303 = vmatprep.subr.mxu0 %v5289_v40  ;;  %2374 = vmatprep.subr.mxu1 %v5295_v50  ;;  %v6766_v50 = vld [vmem:[#allocation106_spill] sm:$0xff] }
 0x46a   : > { %2304 = vmatpush1.msra.mxu0 %v5301_v25  ;;  %2375 = vmatpush1.msra.mxu1 %v5307_v46  ;;  %v6767_v25 = vld [vmem:[#allocation107_spill] sm:$0xff] }
 0x46b   : > { %2305 = vmatprep.subr.mxu0 %v5313_v1  ;;  %2376 = vmatprep.subr.mxu1 %v5319_v3  ;;  %v6768_v1 = vld [vmem:[#allocation108_spill] sm:$0xff]  ;;  %v6769_v3 = vld [vmem:[#allocation109_spill] sm:$0xff] }
 0x46c   : > { %2306 = vmatpush1.msra.mxu0 %v5325_v62  ;;  %2377 = vmatpush1.msra.mxu1 %v5331_v61  ;;  %v5851_v62 = vstv %s2473_s28 }
 0x46d   : > { %2307 = vmatprep.subr.mxu0 %v5339_v2  ;;  %2378 = vmatprep.subr.mxu1 %v5345_v56  ;;  %v2151_v2 = vadd.f32 1.0, %v2710_v53  ;;  %v6770_v56 = vld [vmem:[#allocation110_spill] sm:$0xff]  ;;  %vm2475_vm3 = vcmp.eq.s32.totalorder %v5851_v62, 1  ;;  %v6805_v53 = vld [vmem:[#allocation145_spill] sm:$0xff] }
 0x46e   : > { %2308 = vmatpush1.msra.mxu0 %v6764_v41  ;;  %2379 = vmatpush1.msra.mxu1 %v6765_v51  ;;  %v6806_v41 = vld [vmem:[#allocation146_spill] sm:$0xff] }
 0x46f   : > { %v2712_v40 = vpop.eup %2711  ;;  %2309 = vmatprep.subr.mxu0 %v6766_v50  ;;  %2380 = vmatprep.subr.mxu1 %v6767_v25  ;;  %2717 = vrcp.f32 %v2151_v2 }
 0x470   : > { %v2714_v46 = vpop.eup %2713  ;;  %2310 = vmatpush1.msra.mxu0 %v6768_v1  ;;  %2381 = vmatpush1.msra.mxu1 %v6769_v3 }
 0x471   : > { %v2716_v61 = vpop.eup %2715  ;;  %2311 = vmatprep.subr.mxu0 %v6770_v56  ;;  %2382 = vmatprep.subr.mxu1 %v5395_v57  ;;  %v2155_v54 = vmul.f32 %v2714_v46, %v2712_v40  ;;  %v6775_v57 = vld [vmem:[#allocation115_spill] sm:$0xff] }
 0x472   : > { %v2154_v9 = vmul.f32 %v2716_v61, %v5463_v59  ;;  %2312 = vmatpush1.msra.mxu0 %v6771_v10  ;;  %2383 = vmatpush1.msra.mxu1 %v6772_v13  ;;  %v6807_v40 = vld [vmem:[#allocation147_spill] sm:$0xff] }
 0x473   : > { %2313 = vmatprep.subr.mxu0 %v6773_v14  ;;  %2384 = vmatprep.subr.mxu1 %v6774_v15 }
 0x474   : > { %v2156_v63 = vadd.f32 %v2155_v54, %v2154_v9  ;;  %2314 = vmatpush1.msra.mxu0 %v5427_v58  ;;  %2385 = vmatpush1.msra.mxu1 %v5433_v22  ;;  %v6781_v58 = vld [vmem:[#allocation121_spill] sm:$0xff]  ;;  %v6782_v22 = vld [vmem:[#allocation122_spill] sm:$0xff] }
 0x475   : > { %2315 = vmatprep.subr.mxu0 %v6775_v57  ;;  %2386 = vmatprep.subr.mxu1 %v6776_v6 }
 0x476   : > { %2316 = vmatpush1.msra.mxu0 %v6777_v16  ;;  %2387 = vmatpush1.msra.mxu1 %v6778_v17  ;;  %2719 = vtanh.f32 %v2156_v63  ;;  %v2477_v18 = vsel %vm2475_vm3, %v2156_v63, %v5463_v59  ;;  %v6788_v59 = vld [vmem:[#allocation128_spill] sm:$0xff] }
 0x477   : > { %2317 = vmatprep.subr.mxu0 %v6779_v19  ;;  %2388 = vmatprep.subr.mxu1 %v6780_v24  ;;  %2481 = vst [vmem:[#allocation3] sm:$0xff] %v2477_v18 }
 0x478   : > { %2318 = vmatpush1.msra.mxu0 %v6781_v58  ;;  %2389 = vmatpush1.msra.mxu1 %v6782_v22 }
 0x479   : > { %2319 = vmatprep.subr.mxu0 %v6783_v26  ;;  %2390 = vmatprep.subr.mxu1 %v6784_v27 }
 0x47a   : > { %2320 = vmatpush1.msra.mxu0 %v6785_v28  ;;  %2391 = vmatpush1.msra.mxu1 %v6786_v29 }
 0x47b   : > { %2321 = vmatprep.subr.mxu0 %v6787_v30  ;;  %2392 = vmatprep.subr.mxu1 %v6788_v59 }
 0x47c   : > { %2322 = vmatpush1.msra.mxu0 %v6789_v31  ;;  %2393 = vmatpush1.msra.mxu1 %v6790_v32  ;;  %v2718_v0 = vpop.eup %2717 }
 0x47d   : > { %2323 = vmatprep.subr.mxu0 %v6791_v33  ;;  %2394 = vmatprep.subr.mxu1 %v6792_v34 }
 0x47e   : > { %2324 = vmatpush1.msra.mxu0 %v6793_v35  ;;  %2395 = vmatpush1.msra.mxu1 %v6794_v36 }
 0x47f   : > { %2325 = vmatprep.subr.mxu0 %v6795_v37  ;;  %2396 = vmatprep.subr.mxu1 %v6796_v43 }
 0x480   : > { %2326 = vmatpush1.msra.mxu0 %v6797_v44  ;;  %2397 = vmatpush1.msra.mxu1 %v6798_v47 }
 0x481   : > { %2327 = vmatprep.subr.mxu0 %v6799_v49  ;;  %2398 = vmatprep.subr.mxu1 %v6800_v23 }
 0x482   : > { %2328 = vmatpush1.msra.mxu0 %v6801_v4  ;;  %2399 = vmatpush1.msra.mxu1 %v6802_v48 }
 0x483   : > { %v2720_v5 = vpop.eup %2719  ;;  %2329 = vmatprep.subr.mxu0 %v6803_v7  ;;  %2400 = vmatprep.subr.mxu1 %v6804_v8 }
 0x484   : > { %2330 = vmatpush1.msra.mxu0 %v6805_v53  ;;  %2401 = vmatpush1.msra.mxu1 %v6806_v41  ;;  %v2158_v51 = vmul.f32 %v2720_v5, %v2718_v0 }
 0x485   : > { %2331 = vmatprep.subr.mxu0 %v6807_v40  ;;  %2402 = vmatprep.subr.mxu1 %v5642_v12 }
 0x486   : > { %2332 = vmatpush1.msra.mxu0 %v5648_v20  ;;  %2365 = vmatprep.mubr.f32.mxu0 %v6389_v21  ;;  %v2476_v50 = vsel %vm2475_vm3, %v2158_v51, %v5733_v42 }
 0x487   : > { %2403 = vmatpush1.msra.mxu1 %v5657_v55  ;;  %2436 = vmatprep.mubr.f32.mxu1 %v6389_v21  ;;  %2480 = vst [vmem:[#allocation2] sm:$0xff] %v2476_v50 }
 0x488   : > { %2366 = vmatmul.mubr.f32.vlgmr.msra.gmra.mxu0 %v2158_v51  ;;  %2437 = vmatmul.mubr.f32.vlgmr.msra.gmra.mxu1 %v2158_v51 }
 0x527   : > { %v2225_v25 = vpop.f32.mrf.mxu0  ;;  %v2296_v46 = vpop.f32.mrf.mxu1 }
 0x529   : > { %v2227_v1 = vpop.f32.mrf.mxu0  ;;  %v2298_v12 = vpop.f32.mrf.mxu1 }
 0x548   : > { %v2367_v3 = vpop.f32.mrf.mxu0  ;;  %v2438_v56 = vpop.f32.mrf.mxu1 }
 0x549   : > { %v2368_v61 = vadd.f32 %v2367_v3, %v2225_v25  ;;  %v2439_v14 = vadd.f32 %v2438_v56, %v2296_v46 }
 0x54a   : > { %v2369_v20 = vpop.f32.mrf.mxu0  ;;  %v2440_v21 = vpop.f32.mrf.mxu1 }
 0x54b   : > { %v2443_v2 = vadd.f32 %v2368_v61, %v6762_v39  ;;  %v2370_v54 = vadd.f32 %v2369_v20, %v2227_v1  ;;  %v2441_v10 = vadd.f32 %v2440_v21, %v2298_v12  ;;  %v2445_v57 = vadd.f32 %v2439_v14, %v4348_v52 }
 0x54d   : > { %v2588_v9 = vmul.f32 -1.442695, %v2443_v2  ;;  %v2444_v42 = vadd.f32 %v2370_v54, %v4341_v45  ;;  %v2446_v13 = vadd.f32 %v2441_v10, %v4345_v11 }
 0x54f   : > { %2721 = vpow2.f32 %v2588_v9  ;;  %v2589_v55 = vmul.f32 -1.442695, %v2444_v42  ;;  %v2590_v15 = vmul.f32 -1.442695, %v2446_v13 }
 0x551   : > { %2723 = vpow2.f32 %v2589_v55 }
 0x552   : > { %2725 = vpow2.f32 %v2590_v15 }
 0x55c   : > { %v2722_v63 = vpop.eup %2721 }
 0x55d   : > { %v2450_v6 = vadd.f32 1.0, %v2722_v63 }
 0x55e   : > { %v2724_v16 = vpop.eup %2723 }
 0x55f   : > { %2727 = vrcp.f32 %v2450_v6  ;;  %v2456_v39 = vadd.f32 1.0, %v2724_v16  ;;  %v2726_v45 = vpop.eup %2725 }
 0x560   : > { %2729 = vtanh.f32 %v2445_v57  ;;  %v2463_v24 = vadd.f32 1.0, %v2726_v45 }
 0x561   : > { %2731 = vrcp.f32 %v2456_v39 }
 0x562   : > { %2733 = vrcp.f32 %v2463_v24 }
 0x56c   : > { %v2728_v17 = vpop.eup %2727 }
 0x56d   : > { %v2730_v18 = vpop.eup %2729 }
 0x56e   : > { %v2732_v19 = vpop.eup %2731  ;;  %v2467_v58 = vmul.f32 %v2730_v18, %v2728_v17 }
 0x56f   : > { %v2466_v11 = vmul.f32 %v2732_v19, %v5816_v38  ;;  %v2734_v26 = vpop.eup %2733 }
 0x571   : > { %v2468_v22 = vadd.f32 %v2467_v58, %v2466_v11 }
 0x573   : > { %2735 = vtanh.f32 %v2468_v22  ;;  %v2479_v52 = vsel %vm2475_vm3, %v2468_v22, %v5816_v38 }
 0x574   : > { %2483 = vst [vmem:[#allocation5] sm:$0xff] %v2479_v52 }
 0x580   : > { %v2736_v27 = vpop.eup %2735  ;;  %2487 = sbr.rel (%p2591_p9) target bundleno = 1713 (0x6b1), region = 56 }
 0x581   : > { %v2470_v28 = vmul.f32 %v2736_v27, %v2734_v26 }
 0x583   : > { %v2478_v29 = vsel %vm2475_vm3, %v2470_v28, %v5823_v60 }
 0x584   : > { %2482 = vst [vmem:[#allocation4] sm:$0xff] %v2478_v29 }
 0x585   : > { %v2592_v30 = vld [vmem:[%s5933_s5] ss:$0 sm:$0xff]  ;;  %v2944_v31 = vmov 0  }
 0x586   : > { %v2495_v59 = vmul.f32 %v2592_v30, %v2478_v29  ;;  %2929 = vset.pattern.permute.xlu0 %v2944_v31  ;;  %v2593_v38 = vld [vmem:[#allocation6] ss:$0 sm:$0xff] }
 0x588   : > { %2496 = vadd.xlane.f32.xlu0 %v2495_v59 }
 0x611   : > { %v2497_v32 = vpop.xlane.xlu0 %2496 }
 0x612   : > { %v2505_v33 = vadd.f32 %v2593_v38, %v2497_v32 }
 0x614   : > { %v2594_v34 = vmul.f32 -1.442695, %v2505_v33 }
 0x616   : > { %2930 = vpow2.f32 %v2594_v34 }
 0x623   : > { %v2931_v35 = vpop.eup %2930 }
 0x624   : > { %v2509_v62 = vadd.f32 1.0, %v2931_v35 }
 0x626   : > { %2932 = vrcp.f32 %v2509_v62 }
 0x633   : > { %v2933_v60 = vpop.eup %2932 }
 0x634   : > { %2514 = vperm.xlu0 %2929, %v2933_v60  }
 0x6af   : > { %v2515_v36 = vpop.permute.xlu0 %2514 }
 0x6b0   : > { %2517 = vst [vmem:[%s5935_s7] sm:$0xff] %v2515_v36 }
 0x6b1 PF: > { %s19_s26 = sadd.s32 1, %s2940_s26  }
 0x6b2   : > { %p16_p10 = scmp.ge.s32.totalorder %s19_s26, 5  }
 0x6b4   :  { %18 = sbr.rel (!%p16_p10) target bundleno = 3 (0x3), region = 85 }

</bundles_post_ra>
